<compile_context>
chip_gen: v5e
topology: v5e:2x2
jax: 0.10.0
libtpu: 0.0.40
codegen_flags: <defaults>
</compile_context>

<pallas_src>
import jax
import jax.numpy as jnp
import numpy as np
from jax.experimental import pallas as pl
from jax.experimental.pallas import tpu as pltpu

_VMEM = pl.BlockSpec(memory_space=pltpu.MemorySpace.VMEM)


# ---------------------------------------------------------------------------
# Fused forward kernel
# ---------------------------------------------------------------------------
def _build_fused_kernel(B, H, W, C, K):
    """Builds the fused forward kernel + scratch shapes for static dims."""
    R0 = B * H * W                                     # conv0 activation rows
    PH1, PW1 = (H - K + 1) // 2, (W - K + 1) // 2      # pooled-0 grid (7, 7)
    R1 = B * PH1 * PW1
    R1_pad = R1 + (K - 1) * PW1 + (K - 1)              # shift padding rows
    PH2, PW2 = (PH1 - K + 1) // 2, (PW1 - K + 1) // 2  # pooled-1 grid (2, 2)
    S = PH2 * PW2

    def kernel(x2_ref, w0_ref, b0_ref, w1_ref, b1_ref, wa_ref, ba_ref,
               wm0_ref, bm0_ref, wm1_ref, bm1_ref, wc_ref, bc_ref,
               o_ref, act_ref, p0_ref, p1_ref):
        f32 = jnp.float32

        # ---- Stack0: conv(Cin->C, K) as K*K shifted-row MXU dots -----------
        acc0 = None
        for dh in range(K):
            for dw in range(K):
                lhs = x2_ref[pl.ds(dh * W + dw, R0), :]          # (R0, Cin)
                p = jnp.dot(lhs, w0_ref[dh * K + dw],
                            preferred_element_type=f32)          # (R0, C)
                acc0 = p if acc0 is None else acc0 + p
        act_ref[pl.ds(0, R0), :] = jnp.maximum(acc0 + b0_ref[...], 0.0)

        # ---- Stack0: ReLU already applied; 2x2 max-pool, compacted ---------
        for b in range(B):
            for ph in range(PH1):
                base = b * H * W + 2 * ph * W
                t00 = act_ref[pl.ds(base, PW1, 2), :]
                t01 = act_ref[pl.ds(base + 1, PW1, 2), :]
                t10 = act_ref[pl.ds(base + W, PW1, 2), :]
                t11 = act_ref[pl.ds(base + W + 1, PW1, 2), :]
                p0_ref[pl.ds((b * PH1 + ph) * PW1, PW1), :] = jnp.maximum(
                    jnp.maximum(t00, t01), jnp.maximum(t10, t11))
        # zero the shift-padding rows read by the stack1 conv
        p0_ref[pl.ds(R1, R1_pad - R1), :] = jnp.zeros((R1_pad - R1, C), f32)

        # ---- Stack1: conv(C->C, K) + fused 1x1 adapter mean + ReLU ---------
        acc1 = None
        for dh in range(K):
            for dw in range(K):
                lhs = p0_ref[pl.ds(dh * PW1 + dw, R1), :]        # (R1, C)
                p = jnp.dot(lhs, w1_ref[dh * K + dw],
                            preferred_element_type=f32)
                acc1 = p if acc1 is None else acc1 + p
        y1 = acc1 + b1_ref[...]
        fuse = jnp.dot(y1, wa_ref[...], preferred_element_type=f32) + ba_ref[...]
        act_ref[pl.ds(0, R1), :] = jnp.maximum(y1 + fuse, 0.0)

        # ---- Stack1: 2x2 max-pool into dense (b, ph, pw)-major rows --------
        for b in range(B):
            for ph in range(PH2):
                base = b * PH1 * PW1 + 2 * ph * PW1
                t00 = act_ref[pl.ds(base, PW2, 2), :]
                t01 = act_ref[pl.ds(base + 1, PW2, 2), :]
                t10 = act_ref[pl.ds(base + PW1, PW2, 2), :]
                t11 = act_ref[pl.ds(base + PW1 + 1, PW2, 2), :]
                p1_ref[pl.ds(b * S + ph * PW2, PW2), :] = jnp.maximum(
                    jnp.maximum(t00, t01), jnp.maximum(t10, t11))

        # ---- MLP0 (NCHW flatten absorbed into weight) + MLP1 + heads -------
        h0 = None
        for s in range(S):
            lhs = p1_ref[pl.ds(s, B, S), :]                      # (B, C)
            p = jnp.dot(lhs, wm0_ref[s], preferred_element_type=f32)
            h0 = p if h0 is None else h0 + p
        h0 = jnp.maximum(h0 + bm0_ref[...], 0.0)
        h1 = jnp.maximum(
            jnp.dot(h0, wm1_ref[...], preferred_element_type=f32) + bm1_ref[...],
            0.0)
        o_ref[...] = (jnp.dot(h1, wc_ref[...], preferred_element_type=f32)
                      + bc_ref[...])

    scratch = [
        pltpu.VMEM((R0, C), jnp.float32),      # pre-pool activations (reused)
        pltpu.VMEM((R1_pad, C), jnp.float32),  # pooled-0 (+ shift padding)
        pltpu.VMEM((B * S, C), jnp.float32),   # pooled-1
    ]
    return kernel, scratch


@jax.jit
def _forward_impl(packed, x_nchw):
    B, Cin, H, W = x_nchw.shape
    KK, _, C = packed["w0"].shape
    K = int(round(KK ** 0.5))

    # NCHW -> (B*H*W, Cin) row-major (b, h, w), plus zero shift-padding rows.
    # (One-time layout glue on an 8 KB input before the single fused kernel.)
    x2 = jnp.transpose(x_nchw, (0, 2, 3, 1)).reshape(B * H * W, Cin)
    pad = (K - 1) * W + (K - 1)
    x2 = jnp.concatenate([x2, jnp.zeros((pad, Cin), jnp.float32)], axis=0)

    kernel, scratch = _build_fused_kernel(B, H, W, C, K)
    n_out = packed["wc"].shape[1]
    return pl.pallas_call(
        kernel,
        out_shape=jax.ShapeDtypeStruct((B, n_out), jnp.float32),
        in_specs=[_VMEM] * 13,
        out_specs=_VMEM,
        scratch_shapes=scratch,
    )(x2, packed["w0"], packed["b0"], packed["w1"], packed["b1"],
      packed["wa"], packed["ba"], packed["wm0"], packed["bm0"],
      packed["wm1"], packed["bm1"], packed["wc"], packed["bc"])


def cnn_forward(packed, x_nchw, num_task=2):
    out = _forward_impl(packed, x_nchw)
    return list(jnp.split(out, num_task, axis=1))


# ---------------------------------------------------------------------------
# Parameter init (deterministic, PyTorch-style) and kernel-layout packing
# ---------------------------------------------------------------------------
def init_conv(key, cin, cout, k):
    k1, k2 = jax.random.split(key)
    bound = 1.0 / np.sqrt(cin * k * k)
    w = jax.random.uniform(k1, (cout, cin, k, k), jnp.float32, -bound, bound)
    b = jax.random.uniform(k2, (cout,), jnp.float32, -bound, bound)
    return w, b


def init_linear(key, fin, fout):
    k1, k2 = jax.random.split(key)
    bound = 1.0 / np.sqrt(fin)
    w = jax.random.uniform(k1, (fout, fin), jnp.float32, -bound, bound)
    b = jax.random.uniform(k2, (fout,), jnp.float32, -bound, bound)
    return w, b


def init_params(key):
    ks = jax.random.split(key, 8)
    return {
        "stack0_main": init_conv(ks[0], 4, 8, 3),
        "stack1_main": init_conv(ks[1], 8, 8, 3),
        "stack1_adapters": [init_conv(ks[2], 8, 8, 1)],
        "mlp0": init_linear(ks[3], 32, 32),
        "mlp1": init_linear(ks[4], 32, 32),
        "classify": [init_linear(ks[5], 32, 2), init_linear(ks[6], 32, 2)],
    }


def pack_params(params, H, W):
    """Repack PyTorch-layout weights into kernel-friendly layouts (trace time)."""
    w0, b0 = params["stack0_main"]            # (C, Cin, K, K), (C,)
    w1, b1 = params["stack1_main"]
    wm0, bm0 = params["mlp0"]                 # torch Linear: (out, in)
    wm1, bm1 = params["mlp1"]

    C, _, K, _ = w0.shape
    PH1, PW1 = (H - K + 1) // 2, (W - K + 1) // 2
    PH2, PW2 = (PH1 - K + 1) // 2, (PW1 - K + 1) // 2
    S = PH2 * PW2

    def conv_mats(w):
        co, ci, k, _ = w.shape
        return jnp.transpose(w, (2, 3, 1, 0)).reshape(k * k, ci, co)

    # Mean over 1x1 adapter convs is linear -> fold into one (C, C) matrix.
    adapters = params["stack1_adapters"]
    wa = sum(aw[:, :, 0, 0].T for aw, _ in adapters) / len(adapters)
    ba = sum(ab for _, ab in adapters) / len(adapters)

    # mlp0 absorbs torch's NCHW .view(B, -1): input index j = c*S + (ph*PW2+pw)
    wm0s = jnp.transpose(wm0.T.reshape(C, S, wm0.shape[0]), (1, 0, 2))  # (S,C,out)

    wc = jnp.concatenate([hw.T for hw, _ in params["classify"]], axis=1)
    bc = jnp.concatenate([hb for _, hb in params["classify"]])

    return {
        "w0": conv_mats(w0), "b0": b0.reshape(1, -1),
        "w1": conv_mats(w1), "b1": b1.reshape(1, -1),
        "wa": wa, "ba": ba.reshape(1, -1),
        "wm0": wm0s, "bm0": bm0.reshape(1, -1),
        "wm1": wm1.T, "bm1": bm1.reshape(1, -1),
        "wc": wc, "bc": bc.reshape(1, -1),
    }


# ---------------------------------------------------------------------------
# Pure-JAX reference (mirrors the PyTorch module) for a correctness check
# ---------------------------------------------------------------------------
def reference_forward(params, x):
    def conv(z, w, b):
        y = jax.lax.conv_general_dilated(
            z, w, window_strides=(1, 1), padding="VALID",
            dimension_numbers=("NCHW", "OIHW", "NCHW"))
        return y + b.reshape(1, -1, 1, 1)

    def pool(z):
        return jax.lax.reduce_window(z, -jnp.inf, jax.lax.max,
                                     (1, 1, 2, 2), (1, 1, 2, 2), "VALID")

    w, b = params["stack0_main"]
    x = pool(jax.nn.relu(conv(x, w, b)))
    w, b = params["stack1_main"]
    x = conv(x, w, b)
    ads = [conv(x, aw, ab) for aw, ab in params["stack1_adapters"]]
    x = x + sum(ads) / len(ads)
    x = pool(jax.nn.relu(x))
    x = x.reshape(x.shape[0], -1)                 # NCHW flatten, like .view(B,-1)
    for name in ("mlp0", "mlp1"):
        w, b = params[name]
        x = jax.nn.relu(x @ w.T + b)
    return [x @ cw.T + cb for cw, cb in params["classify"]]


if __name__ == "__main__":
    key = jax.random.PRNGKey(0)
    pkey, xkey = jax.random.split(key)
    params = init_params(pkey)

    x = jax.random.normal(xkey, (2, 4, 16, 16), jnp.float32)  # NCHW, as in torch

    packed = pack_params(params, H=16, W=16)
    outputs = cnn_forward(packed, x, num_task=2)
    outputs = [jax.block_until_ready(o) for o in outputs]

    assert len(outputs) == 2
    assert all(o.shape == (2, 2) and o.dtype == jnp.float32 for o in outputs)

    refs = reference_forward(params, x)
    for o, r in zip(outputs, refs):
        np.testing.assert_allclose(np.asarray(o), np.asarray(r),
                                   rtol=1e-2, atol=1e-2)
    print("KERNEL_OK")
</pallas_src>

<mosaic_0001>
module attributes {stable_mosaic.version = 11 : i64} {
  func.func @kernel(%arg0: memref<546x4xf32, #tpu.memory_space<vmem>>, %arg1: memref<9x4x8xf32, #tpu.memory_space<vmem>>, %arg2: memref<1x8xf32, #tpu.memory_space<vmem>>, %arg3: memref<9x8x8xf32, #tpu.memory_space<vmem>>, %arg4: memref<1x8xf32, #tpu.memory_space<vmem>>, %arg5: memref<8x8xf32, #tpu.memory_space<vmem>>, %arg6: memref<1x8xf32, #tpu.memory_space<vmem>>, %arg7: memref<4x8x32xf32, #tpu.memory_space<vmem>>, %arg8: memref<1x32xf32, #tpu.memory_space<vmem>>, %arg9: memref<32x32xf32, #tpu.memory_space<vmem>>, %arg10: memref<1x32xf32, #tpu.memory_space<vmem>>, %arg11: memref<32x4xf32, #tpu.memory_space<vmem>>, %arg12: memref<1x4xf32, #tpu.memory_space<vmem>>, %arg13: memref<2x4xf32, #tpu.memory_space<vmem>>, %arg14: memref<512x8xf32, #tpu.memory_space<vmem>>, %arg15: memref<114x8xf32, #tpu.memory_space<vmem>>, %arg16: memref<8x8xf32, #tpu.memory_space<vmem>>) attributes {dimension_semantics = [], scalar_prefetch = 0 : i64, scratch_operands = 3 : i64, tpu.core_type = #tpu.core_type<tc>} {
    %c0 = arith.constant 0 : index
    %c0_0 = arith.constant 0 : index
    %0 = vector.load %arg0[%c0, %c0_0] : memref<546x4xf32, #tpu.memory_space<vmem>>, vector<512x4xf32>
    %c0_1 = arith.constant 0 : index
    %c0_2 = arith.constant 0 : index
    %c0_3 = arith.constant 0 : index
    %1 = vector.load %arg1[%c0_1, %c0_2, %c0_3] : memref<9x4x8xf32, #tpu.memory_space<vmem>>, vector<1x4x8xf32>
    %2 = vector.shape_cast %1 : vector<1x4x8xf32> to vector<4x8xf32>
    %cst = arith.constant dense<0.000000e+00> : vector<512x8xf32>
    %3 = tpu.matmul %0, %2, %cst {dimension_numbers = #tpu.dot_dimension_numbers<[1], [0], [0], [1], [0, 0, 1, 1], [], []>} : vector<512x4xf32>, vector<4x8xf32>, vector<512x8xf32> -> vector<512x8xf32>
    %c1 = arith.constant 1 : index
    %c0_4 = arith.constant 0 : index
    %4 = vector.load %arg0[%c1, %c0_4] : memref<546x4xf32, #tpu.memory_space<vmem>>, vector<512x4xf32>
    %c1_5 = arith.constant 1 : index
    %c0_6 = arith.constant 0 : index
    %c0_7 = arith.constant 0 : index
    %5 = vector.load %arg1[%c1_5, %c0_6, %c0_7] : memref<9x4x8xf32, #tpu.memory_space<vmem>>, vector<1x4x8xf32>
    %6 = vector.shape_cast %5 : vector<1x4x8xf32> to vector<4x8xf32>
    %cst_8 = arith.constant dense<0.000000e+00> : vector<512x8xf32>
    %7 = tpu.matmul %4, %6, %cst_8 {dimension_numbers = #tpu.dot_dimension_numbers<[1], [0], [0], [1], [0, 0, 1, 1], [], []>} : vector<512x4xf32>, vector<4x8xf32>, vector<512x8xf32> -> vector<512x8xf32>
    %8 = arith.addf %3, %7 : vector<512x8xf32>
    %c2 = arith.constant 2 : index
    %c0_9 = arith.constant 0 : index
    %9 = vector.load %arg0[%c2, %c0_9] : memref<546x4xf32, #tpu.memory_space<vmem>>, vector<512x4xf32>
    %c2_10 = arith.constant 2 : index
    %c0_11 = arith.constant 0 : index
    %c0_12 = arith.constant 0 : index
    %10 = vector.load %arg1[%c2_10, %c0_11, %c0_12] : memref<9x4x8xf32, #tpu.memory_space<vmem>>, vector<1x4x8xf32>
    %11 = vector.shape_cast %10 : vector<1x4x8xf32> to vector<4x8xf32>
    %cst_13 = arith.constant dense<0.000000e+00> : vector<512x8xf32>
    %12 = tpu.matmul %9, %11, %cst_13 {dimension_numbers = #tpu.dot_dimension_numbers<[1], [0], [0], [1], [0, 0, 1, 1], [], []>} : vector<512x4xf32>, vector<4x8xf32>, vector<512x8xf32> -> vector<512x8xf32>
    %13 = arith.addf %8, %12 : vector<512x8xf32>
    %c16 = arith.constant 16 : index
    %c0_14 = arith.constant 0 : index
    %14 = vector.load %arg0[%c16, %c0_14] : memref<546x4xf32, #tpu.memory_space<vmem>>, vector<512x4xf32>
    %c3 = arith.constant 3 : index
    %c0_15 = arith.constant 0 : index
    %c0_16 = arith.constant 0 : index
    %15 = vector.load %arg1[%c3, %c0_15, %c0_16] : memref<9x4x8xf32, #tpu.memory_space<vmem>>, vector<1x4x8xf32>
    %16 = vector.shape_cast %15 : vector<1x4x8xf32> to vector<4x8xf32>
    %cst_17 = arith.constant dense<0.000000e+00> : vector<512x8xf32>
    %17 = tpu.matmul %14, %16, %cst_17 {dimension_numbers = #tpu.dot_dimension_numbers<[1], [0], [0], [1], [0, 0, 1, 1], [], []>} : vector<512x4xf32>, vector<4x8xf32>, vector<512x8xf32> -> vector<512x8xf32>
    %18 = arith.addf %13, %17 : vector<512x8xf32>
    %c17 = arith.constant 17 : index
    %c0_18 = arith.constant 0 : index
    %19 = vector.load %arg0[%c17, %c0_18] : memref<546x4xf32, #tpu.memory_space<vmem>>, vector<512x4xf32>
    %c4 = arith.constant 4 : index
    %c0_19 = arith.constant 0 : index
    %c0_20 = arith.constant 0 : index
    %20 = vector.load %arg1[%c4, %c0_19, %c0_20] : memref<9x4x8xf32, #tpu.memory_space<vmem>>, vector<1x4x8xf32>
    %21 = vector.shape_cast %20 : vector<1x4x8xf32> to vector<4x8xf32>
    %cst_21 = arith.constant dense<0.000000e+00> : vector<512x8xf32>
    %22 = tpu.matmul %19, %21, %cst_21 {dimension_numbers = #tpu.dot_dimension_numbers<[1], [0], [0], [1], [0, 0, 1, 1], [], []>} : vector<512x4xf32>, vector<4x8xf32>, vector<512x8xf32> -> vector<512x8xf32>
    %23 = arith.addf %18, %22 : vector<512x8xf32>
    %c18 = arith.constant 18 : index
    %c0_22 = arith.constant 0 : index
    %24 = vector.load %arg0[%c18, %c0_22] : memref<546x4xf32, #tpu.memory_space<vmem>>, vector<512x4xf32>
    %c5 = arith.constant 5 : index
    %c0_23 = arith.constant 0 : index
    %c0_24 = arith.constant 0 : index
    %25 = vector.load %arg1[%c5, %c0_23, %c0_24] : memref<9x4x8xf32, #tpu.memory_space<vmem>>, vector<1x4x8xf32>
    %26 = vector.shape_cast %25 : vector<1x4x8xf32> to vector<4x8xf32>
    %cst_25 = arith.constant dense<0.000000e+00> : vector<512x8xf32>
    %27 = tpu.matmul %24, %26, %cst_25 {dimension_numbers = #tpu.dot_dimension_numbers<[1], [0], [0], [1], [0, 0, 1, 1], [], []>} : vector<512x4xf32>, vector<4x8xf32>, vector<512x8xf32> -> vector<512x8xf32>
    %28 = arith.addf %23, %27 : vector<512x8xf32>
    %c32 = arith.constant 32 : index
    %c0_26 = arith.constant 0 : index
    %29 = vector.load %arg0[%c32, %c0_26] : memref<546x4xf32, #tpu.memory_space<vmem>>, vector<512x4xf32>
    %c6 = arith.constant 6 : index
    %c0_27 = arith.constant 0 : index
    %c0_28 = arith.constant 0 : index
    %30 = vector.load %arg1[%c6, %c0_27, %c0_28] : memref<9x4x8xf32, #tpu.memory_space<vmem>>, vector<1x4x8xf32>
    %31 = vector.shape_cast %30 : vector<1x4x8xf32> to vector<4x8xf32>
    %cst_29 = arith.constant dense<0.000000e+00> : vector<512x8xf32>
    %32 = tpu.matmul %29, %31, %cst_29 {dimension_numbers = #tpu.dot_dimension_numbers<[1], [0], [0], [1], [0, 0, 1, 1], [], []>} : vector<512x4xf32>, vector<4x8xf32>, vector<512x8xf32> -> vector<512x8xf32>
    %33 = arith.addf %28, %32 : vector<512x8xf32>
    %c33 = arith.constant 33 : index
    %c0_30 = arith.constant 0 : index
    %34 = vector.load %arg0[%c33, %c0_30] : memref<546x4xf32, #tpu.memory_space<vmem>>, vector<512x4xf32>
    %c7 = arith.constant 7 : index
    %c0_31 = arith.constant 0 : index
    %c0_32 = arith.constant 0 : index
    %35 = vector.load %arg1[%c7, %c0_31, %c0_32] : memref<9x4x8xf32, #tpu.memory_space<vmem>>, vector<1x4x8xf32>
    %36 = vector.shape_cast %35 : vector<1x4x8xf32> to vector<4x8xf32>
    %cst_33 = arith.constant dense<0.000000e+00> : vector<512x8xf32>
    %37 = tpu.matmul %34, %36, %cst_33 {dimension_numbers = #tpu.dot_dimension_numbers<[1], [0], [0], [1], [0, 0, 1, 1], [], []>} : vector<512x4xf32>, vector<4x8xf32>, vector<512x8xf32> -> vector<512x8xf32>
    %38 = arith.addf %33, %37 : vector<512x8xf32>
    %c34 = arith.constant 34 : index
    %c0_34 = arith.constant 0 : index
    %39 = vector.load %arg0[%c34, %c0_34] : memref<546x4xf32, #tpu.memory_space<vmem>>, vector<512x4xf32>
    %c8 = arith.constant 8 : index
    %c0_35 = arith.constant 0 : index
    %c0_36 = arith.constant 0 : index
    %40 = vector.load %arg1[%c8, %c0_35, %c0_36] : memref<9x4x8xf32, #tpu.memory_space<vmem>>, vector<1x4x8xf32>
    %41 = vector.shape_cast %40 : vector<1x4x8xf32> to vector<4x8xf32>
    %cst_37 = arith.constant dense<0.000000e+00> : vector<512x8xf32>
    %42 = tpu.matmul %39, %41, %cst_37 {dimension_numbers = #tpu.dot_dimension_numbers<[1], [0], [0], [1], [0, 0, 1, 1], [], []>} : vector<512x4xf32>, vector<4x8xf32>, vector<512x8xf32> -> vector<512x8xf32>
    %43 = arith.addf %38, %42 : vector<512x8xf32>
    %c0_38 = arith.constant 0 : index
    %c0_39 = arith.constant 0 : index
    %44 = vector.load %arg2[%c0_38, %c0_39] : memref<1x8xf32, #tpu.memory_space<vmem>>, vector<1x8xf32>
    %45 = vector.broadcast %44 : vector<1x8xf32> to vector<512x8xf32>
    %46 = arith.addf %43, %45 : vector<512x8xf32>
    %cst_40 = arith.constant 0.000000e+00 : f32
    %47 = vector.broadcast %cst_40 : f32 to vector<512x8xf32>
    %48 = arith.maximumf %46, %47 : vector<512x8xf32>
    %c0_41 = arith.constant 0 : index
    %c0_42 = arith.constant 0 : index
    %49 = vector.load %arg14[%c0_41, %c0_42] : memref<512x8xf32, #tpu.memory_space<vmem>>, vector<512x8xf32>
    tpu.vector_store %arg14[%c0_41, %c0_42], %48 {strides = array<i32>} : memref<512x8xf32, #tpu.memory_space<vmem>>, vector<512x8xf32>,
    %c0_43 = arith.constant 0 : index
    %c0_44 = arith.constant 0 : index
    %50 = tpu.strided_load %arg14[%c0_43, %c0_44] {strides = array<i32: 2, 1>} : memref<512x8xf32, #tpu.memory_space<vmem>>, vector<7x8xf32>
    %c1_45 = arith.constant 1 : index
    %c0_46 = arith.constant 0 : index
    %51 = tpu.strided_load %arg14[%c1_45, %c0_46] {strides = array<i32: 2, 1>} : memref<512x8xf32, #tpu.memory_space<vmem>>, vector<7x8xf32>
    %c16_47 = arith.constant 16 : index
    %c0_48 = arith.constant 0 : index
    %52 = tpu.strided_load %arg14[%c16_47, %c0_48] {strides = array<i32: 2, 1>} : memref<512x8xf32, #tpu.memory_space<vmem>>, vector<7x8xf32>
    %c17_49 = arith.constant 17 : index
    %c0_50 = arith.constant 0 : index
    %53 = tpu.strided_load %arg14[%c17_49, %c0_50] {strides = array<i32: 2, 1>} : memref<512x8xf32, #tpu.memory_space<vmem>>, vector<7x8xf32>
    %54 = arith.maximumf %50, %51 : vector<7x8xf32>
    %55 = arith.maximumf %52, %53 : vector<7x8xf32>
    %56 = arith.maximumf %54, %55 : vector<7x8xf32>
    %c0_51 = arith.constant 0 : index
    %c0_52 = arith.constant 0 : index
    %57 = vector.load %arg15[%c0_51, %c0_52] : memref<114x8xf32, #tpu.memory_space<vmem>>, vector<7x8xf32>
    tpu.vector_store %arg15[%c0_51, %c0_52], %56 {strides = array<i32>} : memref<114x8xf32, #tpu.memory_space<vmem>>, vector<7x8xf32>,
    %c32_53 = arith.constant 32 : index
    %c0_54 = arith.constant 0 : index
    %58 = tpu.strided_load %arg14[%c32_53, %c0_54] {strides = array<i32: 2, 1>} : memref<512x8xf32, #tpu.memory_space<vmem>>, vector<7x8xf32>
    %c33_55 = arith.constant 33 : index
    %c0_56 = arith.constant 0 : index
    %59 = tpu.strided_load %arg14[%c33_55, %c0_56] {strides = array<i32: 2, 1>} : memref<512x8xf32, #tpu.memory_space<vmem>>, vector<7x8xf32>
    %c48 = arith.constant 48 : index
    %c0_57 = arith.constant 0 : index
    %60 = tpu.strided_load %arg14[%c48, %c0_57] {strides = array<i32: 2, 1>} : memref<512x8xf32, #tpu.memory_space<vmem>>, vector<7x8xf32>
    %c49 = arith.constant 49 : index
    %c0_58 = arith.constant 0 : index
    %61 = tpu.strided_load %arg14[%c49, %c0_58] {strides = array<i32: 2, 1>} : memref<512x8xf32, #tpu.memory_space<vmem>>, vector<7x8xf32>
    %62 = arith.maximumf %58, %59 : vector<7x8xf32>
    %63 = arith.maximumf %60, %61 : vector<7x8xf32>
    %64 = arith.maximumf %62, %63 : vector<7x8xf32>
    %c7_59 = arith.constant 7 : index
    %c0_60 = arith.constant 0 : index
    %65 = vector.load %arg15[%c7_59, %c0_60] : memref<114x8xf32, #tpu.memory_space<vmem>>, vector<7x8xf32>
    tpu.vector_store %arg15[%c7_59, %c0_60], %64 {strides = array<i32>} : memref<114x8xf32, #tpu.memory_space<vmem>>, vector<7x8xf32>,
    %c64 = arith.constant 64 : index
    %c0_61 = arith.constant 0 : index
    %66 = tpu.strided_load %arg14[%c64, %c0_61] {strides = array<i32: 2, 1>} : memref<512x8xf32, #tpu.memory_space<vmem>>, vector<7x8xf32>
    %c65 = arith.constant 65 : index
    %c0_62 = arith.constant 0 : index
    %67 = tpu.strided_load %arg14[%c65, %c0_62] {strides = array<i32: 2, 1>} : memref<512x8xf32, #tpu.memory_space<vmem>>, vector<7x8xf32>
    %c80 = arith.constant 80 : index
    %c0_63 = arith.constant 0 : index
    %68 = tpu.strided_load %arg14[%c80, %c0_63] {strides = array<i32: 2, 1>} : memref<512x8xf32, #tpu.memory_space<vmem>>, vector<7x8xf32>
    %c81 = arith.constant 81 : index
    %c0_64 = arith.constant 0 : index
    %69 = tpu.strided_load %arg14[%c81, %c0_64] {strides = array<i32: 2, 1>} : memref<512x8xf32, #tpu.memory_space<vmem>>, vector<7x8xf32>
    %70 = arith.maximumf %66, %67 : vector<7x8xf32>
    %71 = arith.maximumf %68, %69 : vector<7x8xf32>
    %72 = arith.maximumf %70, %71 : vector<7x8xf32>
    %c14 = arith.constant 14 : index
    %c0_65 = arith.constant 0 : index
    %73 = vector.load %arg15[%c14, %c0_65] : memref<114x8xf32, #tpu.memory_space<vmem>>, vector<7x8xf32>
    tpu.vector_store %arg15[%c14, %c0_65], %72 {strides = array<i32>} : memref<114x8xf32, #tpu.memory_space<vmem>>, vector<7x8xf32>,
    %c96 = arith.constant 96 : index
    %c0_66 = arith.constant 0 : index
    %74 = tpu.strided_load %arg14[%c96, %c0_66] {strides = array<i32: 2, 1>} : memref<512x8xf32, #tpu.memory_space<vmem>>, vector<7x8xf32>
    %c97 = arith.constant 97 : index
    %c0_67 = arith.constant 0 : index
    %75 = tpu.strided_load %arg14[%c97, %c0_67] {strides = array<i32: 2, 1>} : memref<512x8xf32, #tpu.memory_space<vmem>>, vector<7x8xf32>
    %c112 = arith.constant 112 : index
    %c0_68 = arith.constant 0 : index
    %76 = tpu.strided_load %arg14[%c112, %c0_68] {strides = array<i32: 2, 1>} : memref<512x8xf32, #tpu.memory_space<vmem>>, vector<7x8xf32>
    %c113 = arith.constant 113 : index
    %c0_69 = arith.constant 0 : index
    %77 = tpu.strided_load %arg14[%c113, %c0_69] {strides = array<i32: 2, 1>} : memref<512x8xf32, #tpu.memory_space<vmem>>, vector<7x8xf32>
    %78 = arith.maximumf %74, %75 : vector<7x8xf32>
    %79 = arith.maximumf %76, %77 : vector<7x8xf32>
    %80 = arith.maximumf %78, %79 : vector<7x8xf32>
    %c21 = arith.constant 21 : index
    %c0_70 = arith.constant 0 : index
    %81 = vector.load %arg15[%c21, %c0_70] : memref<114x8xf32, #tpu.memory_space<vmem>>, vector<7x8xf32>
    tpu.vector_store %arg15[%c21, %c0_70], %80 {strides = array<i32>} : memref<114x8xf32, #tpu.memory_space<vmem>>, vector<7x8xf32>,
    %c128 = arith.constant 128 : index
    %c0_71 = arith.constant 0 : index
    %82 = tpu.strided_load %arg14[%c128, %c0_71] {strides = array<i32: 2, 1>} : memref<512x8xf32, #tpu.memory_space<vmem>>, vector<7x8xf32>
    %c129 = arith.constant 129 : index
    %c0_72 = arith.constant 0 : index
    %83 = tpu.strided_load %arg14[%c129, %c0_72] {strides = array<i32: 2, 1>} : memref<512x8xf32, #tpu.memory_space<vmem>>, vector<7x8xf32>
    %c144 = arith.constant 144 : index
    %c0_73 = arith.constant 0 : index
    %84 = tpu.strided_load %arg14[%c144, %c0_73] {strides = array<i32: 2, 1>} : memref<512x8xf32, #tpu.memory_space<vmem>>, vector<7x8xf32>
    %c145 = arith.constant 145 : index
    %c0_74 = arith.constant 0 : index
    %85 = tpu.strided_load %arg14[%c145, %c0_74] {strides = array<i32: 2, 1>} : memref<512x8xf32, #tpu.memory_space<vmem>>, vector<7x8xf32>
    %86 = arith.maximumf %82, %83 : vector<7x8xf32>
    %87 = arith.maximumf %84, %85 : vector<7x8xf32>
    %88 = arith.maximumf %86, %87 : vector<7x8xf32>
    %c28 = arith.constant 28 : index
    %c0_75 = arith.constant 0 : index
    %89 = vector.load %arg15[%c28, %c0_75] : memref<114x8xf32, #tpu.memory_space<vmem>>, vector<7x8xf32>
    tpu.vector_store %arg15[%c28, %c0_75], %88 {strides = array<i32>} : memref<114x8xf32, #tpu.memory_space<vmem>>, vector<7x8xf32>,
    %c160 = arith.constant 160 : index
    %c0_76 = arith.constant 0 : index
    %90 = tpu.strided_load %arg14[%c160, %c0_76] {strides = array<i32: 2, 1>} : memref<512x8xf32, #tpu.memory_space<vmem>>, vector<7x8xf32>
    %c161 = arith.constant 161 : index
    %c0_77 = arith.constant 0 : index
    %91 = tpu.strided_load %arg14[%c161, %c0_77] {strides = array<i32: 2, 1>} : memref<512x8xf32, #tpu.memory_space<vmem>>, vector<7x8xf32>
    %c176 = arith.constant 176 : index
    %c0_78 = arith.constant 0 : index
    %92 = tpu.strided_load %arg14[%c176, %c0_78] {strides = array<i32: 2, 1>} : memref<512x8xf32, #tpu.memory_space<vmem>>, vector<7x8xf32>
    %c177 = arith.constant 177 : index
    %c0_79 = arith.constant 0 : index
    %93 = tpu.strided_load %arg14[%c177, %c0_79] {strides = array<i32: 2, 1>} : memref<512x8xf32, #tpu.memory_space<vmem>>, vector<7x8xf32>
    %94 = arith.maximumf %90, %91 : vector<7x8xf32>
    %95 = arith.maximumf %92, %93 : vector<7x8xf32>
    %96 = arith.maximumf %94, %95 : vector<7x8xf32>
    %c35 = arith.constant 35 : index
    %c0_80 = arith.constant 0 : index
    %97 = vector.load %arg15[%c35, %c0_80] : memref<114x8xf32, #tpu.memory_space<vmem>>, vector<7x8xf32>
    tpu.vector_store %arg15[%c35, %c0_80], %96 {strides = array<i32>} : memref<114x8xf32, #tpu.memory_space<vmem>>, vector<7x8xf32>,
    %c192 = arith.constant 192 : index
    %c0_81 = arith.constant 0 : index
    %98 = tpu.strided_load %arg14[%c192, %c0_81] {strides = array<i32: 2, 1>} : memref<512x8xf32, #tpu.memory_space<vmem>>, vector<7x8xf32>
    %c193 = arith.constant 193 : index
    %c0_82 = arith.constant 0 : index
    %99 = tpu.strided_load %arg14[%c193, %c0_82] {strides = array<i32: 2, 1>} : memref<512x8xf32, #tpu.memory_space<vmem>>, vector<7x8xf32>
    %c208 = arith.constant 208 : index
    %c0_83 = arith.constant 0 : index
    %100 = tpu.strided_load %arg14[%c208, %c0_83] {strides = array<i32: 2, 1>} : memref<512x8xf32, #tpu.memory_space<vmem>>, vector<7x8xf32>
    %c209 = arith.constant 209 : index
    %c0_84 = arith.constant 0 : index
    %101 = tpu.strided_load %arg14[%c209, %c0_84] {strides = array<i32: 2, 1>} : memref<512x8xf32, #tpu.memory_space<vmem>>, vector<7x8xf32>
    %102 = arith.maximumf %98, %99 : vector<7x8xf32>
    %103 = arith.maximumf %100, %101 : vector<7x8xf32>
    %104 = arith.maximumf %102, %103 : vector<7x8xf32>
    %c42 = arith.constant 42 : index
    %c0_85 = arith.constant 0 : index
    %105 = vector.load %arg15[%c42, %c0_85] : memref<114x8xf32, #tpu.memory_space<vmem>>, vector<7x8xf32>
    tpu.vector_store %arg15[%c42, %c0_85], %104 {strides = array<i32>} : memref<114x8xf32, #tpu.memory_space<vmem>>, vector<7x8xf32>,
    %c256 = arith.constant 256 : index
    %c0_86 = arith.constant 0 : index
    %106 = tpu.strided_load %arg14[%c256, %c0_86] {strides = array<i32: 2, 1>} : memref<512x8xf32, #tpu.memory_space<vmem>>, vector<7x8xf32>
    %c257 = arith.constant 257 : index
    %c0_87 = arith.constant 0 : index
    %107 = tpu.strided_load %arg14[%c257, %c0_87] {strides = array<i32: 2, 1>} : memref<512x8xf32, #tpu.memory_space<vmem>>, vector<7x8xf32>
    %c272 = arith.constant 272 : index
    %c0_88 = arith.constant 0 : index
    %108 = tpu.strided_load %arg14[%c272, %c0_88] {strides = array<i32: 2, 1>} : memref<512x8xf32, #tpu.memory_space<vmem>>, vector<7x8xf32>
    %c273 = arith.constant 273 : index
    %c0_89 = arith.constant 0 : index
    %109 = tpu.strided_load %arg14[%c273, %c0_89] {strides = array<i32: 2, 1>} : memref<512x8xf32, #tpu.memory_space<vmem>>, vector<7x8xf32>
    %110 = arith.maximumf %106, %107 : vector<7x8xf32>
    %111 = arith.maximumf %108, %109 : vector<7x8xf32>
    %112 = arith.maximumf %110, %111 : vector<7x8xf32>
    %c49_90 = arith.constant 49 : index
    %c0_91 = arith.constant 0 : index
    %113 = vector.load %arg15[%c49_90, %c0_91] : memref<114x8xf32, #tpu.memory_space<vmem>>, vector<7x8xf32>
    tpu.vector_store %arg15[%c49_90, %c0_91], %112 {strides = array<i32>} : memref<114x8xf32, #tpu.memory_space<vmem>>, vector<7x8xf32>,
    %c288 = arith.constant 288 : index
    %c0_92 = arith.constant 0 : index
    %114 = tpu.strided_load %arg14[%c288, %c0_92] {strides = array<i32: 2, 1>} : memref<512x8xf32, #tpu.memory_space<vmem>>, vector<7x8xf32>
    %c289 = arith.constant 289 : index
    %c0_93 = arith.constant 0 : index
    %115 = tpu.strided_load %arg14[%c289, %c0_93] {strides = array<i32: 2, 1>} : memref<512x8xf32, #tpu.memory_space<vmem>>, vector<7x8xf32>
    %c304 = arith.constant 304 : index
    %c0_94 = arith.constant 0 : index
    %116 = tpu.strided_load %arg14[%c304, %c0_94] {strides = array<i32: 2, 1>} : memref<512x8xf32, #tpu.memory_space<vmem>>, vector<7x8xf32>
    %c305 = arith.constant 305 : index
    %c0_95 = arith.constant 0 : index
    %117 = tpu.strided_load %arg14[%c305, %c0_95] {strides = array<i32: 2, 1>} : memref<512x8xf32, #tpu.memory_space<vmem>>, vector<7x8xf32>
    %118 = arith.maximumf %114, %115 : vector<7x8xf32>
    %119 = arith.maximumf %116, %117 : vector<7x8xf32>
    %120 = arith.maximumf %118, %119 : vector<7x8xf32>
    %c56 = arith.constant 56 : index
    %c0_96 = arith.constant 0 : index
    %121 = vector.load %arg15[%c56, %c0_96] : memref<114x8xf32, #tpu.memory_space<vmem>>, vector<7x8xf32>
    tpu.vector_store %arg15[%c56, %c0_96], %120 {strides = array<i32>} : memref<114x8xf32, #tpu.memory_space<vmem>>, vector<7x8xf32>,
    %c320 = arith.constant 320 : index
    %c0_97 = arith.constant 0 : index
    %122 = tpu.strided_load %arg14[%c320, %c0_97] {strides = array<i32: 2, 1>} : memref<512x8xf32, #tpu.memory_space<vmem>>, vector<7x8xf32>
    %c321 = arith.constant 321 : index
    %c0_98 = arith.constant 0 : index
    %123 = tpu.strided_load %arg14[%c321, %c0_98] {strides = array<i32: 2, 1>} : memref<512x8xf32, #tpu.memory_space<vmem>>, vector<7x8xf32>
    %c336 = arith.constant 336 : index
    %c0_99 = arith.constant 0 : index
    %124 = tpu.strided_load %arg14[%c336, %c0_99] {strides = array<i32: 2, 1>} : memref<512x8xf32, #tpu.memory_space<vmem>>, vector<7x8xf32>
    %c337 = arith.constant 337 : index
    %c0_100 = arith.constant 0 : index
    %125 = tpu.strided_load %arg14[%c337, %c0_100] {strides = array<i32: 2, 1>} : memref<512x8xf32, #tpu.memory_space<vmem>>, vector<7x8xf32>
    %126 = arith.maximumf %122, %123 : vector<7x8xf32>
    %127 = arith.maximumf %124, %125 : vector<7x8xf32>
    %128 = arith.maximumf %126, %127 : vector<7x8xf32>
    %c63 = arith.constant 63 : index
    %c0_101 = arith.constant 0 : index
    %129 = vector.load %arg15[%c63, %c0_101] : memref<114x8xf32, #tpu.memory_space<vmem>>, vector<7x8xf32>
    tpu.vector_store %arg15[%c63, %c0_101], %128 {strides = array<i32>} : memref<114x8xf32, #tpu.memory_space<vmem>>, vector<7x8xf32>,
    %c352 = arith.constant 352 : index
    %c0_102 = arith.constant 0 : index
    %130 = tpu.strided_load %arg14[%c352, %c0_102] {strides = array<i32: 2, 1>} : memref<512x8xf32, #tpu.memory_space<vmem>>, vector<7x8xf32>
    %c353 = arith.constant 353 : index
    %c0_103 = arith.constant 0 : index
    %131 = tpu.strided_load %arg14[%c353, %c0_103] {strides = array<i32: 2, 1>} : memref<512x8xf32, #tpu.memory_space<vmem>>, vector<7x8xf32>
    %c368 = arith.constant 368 : index
    %c0_104 = arith.constant 0 : index
    %132 = tpu.strided_load %arg14[%c368, %c0_104] {strides = array<i32: 2, 1>} : memref<512x8xf32, #tpu.memory_space<vmem>>, vector<7x8xf32>
    %c369 = arith.constant 369 : index
    %c0_105 = arith.constant 0 : index
    %133 = tpu.strided_load %arg14[%c369, %c0_105] {strides = array<i32: 2, 1>} : memref<512x8xf32, #tpu.memory_space<vmem>>, vector<7x8xf32>
    %134 = arith.maximumf %130, %131 : vector<7x8xf32>
    %135 = arith.maximumf %132, %133 : vector<7x8xf32>
    %136 = arith.maximumf %134, %135 : vector<7x8xf32>
    %c70 = arith.constant 70 : index
    %c0_106 = arith.constant 0 : index
    %137 = vector.load %arg15[%c70, %c0_106] : memref<114x8xf32, #tpu.memory_space<vmem>>, vector<7x8xf32>
    tpu.vector_store %arg15[%c70, %c0_106], %136 {strides = array<i32>} : memref<114x8xf32, #tpu.memory_space<vmem>>, vector<7x8xf32>,
    %c384 = arith.constant 384 : index
    %c0_107 = arith.constant 0 : index
    %138 = tpu.strided_load %arg14[%c384, %c0_107] {strides = array<i32: 2, 1>} : memref<512x8xf32, #tpu.memory_space<vmem>>, vector<7x8xf32>
    %c385 = arith.constant 385 : index
    %c0_108 = arith.constant 0 : index
    %139 = tpu.strided_load %arg14[%c385, %c0_108] {strides = array<i32: 2, 1>} : memref<512x8xf32, #tpu.memory_space<vmem>>, vector<7x8xf32>
    %c400 = arith.constant 400 : index
    %c0_109 = arith.constant 0 : index
    %140 = tpu.strided_load %arg14[%c400, %c0_109] {strides = array<i32: 2, 1>} : memref<512x8xf32, #tpu.memory_space<vmem>>, vector<7x8xf32>
    %c401 = arith.constant 401 : index
    %c0_110 = arith.constant 0 : index
    %141 = tpu.strided_load %arg14[%c401, %c0_110] {strides = array<i32: 2, 1>} : memref<512x8xf32, #tpu.memory_space<vmem>>, vector<7x8xf32>
    %142 = arith.maximumf %138, %139 : vector<7x8xf32>
    %143 = arith.maximumf %140, %141 : vector<7x8xf32>
    %144 = arith.maximumf %142, %143 : vector<7x8xf32>
    %c77 = arith.constant 77 : index
    %c0_111 = arith.constant 0 : index
    %145 = vector.load %arg15[%c77, %c0_111] : memref<114x8xf32, #tpu.memory_space<vmem>>, vector<7x8xf32>
    tpu.vector_store %arg15[%c77, %c0_111], %144 {strides = array<i32>} : memref<114x8xf32, #tpu.memory_space<vmem>>, vector<7x8xf32>,
    %c416 = arith.constant 416 : index
    %c0_112 = arith.constant 0 : index
    %146 = tpu.strided_load %arg14[%c416, %c0_112] {strides = array<i32: 2, 1>} : memref<512x8xf32, #tpu.memory_space<vmem>>, vector<7x8xf32>
    %c417 = arith.constant 417 : index
    %c0_113 = arith.constant 0 : index
    %147 = tpu.strided_load %arg14[%c417, %c0_113] {strides = array<i32: 2, 1>} : memref<512x8xf32, #tpu.memory_space<vmem>>, vector<7x8xf32>
    %c432 = arith.constant 432 : index
    %c0_114 = arith.constant 0 : index
    %148 = tpu.strided_load %arg14[%c432, %c0_114] {strides = array<i32: 2, 1>} : memref<512x8xf32, #tpu.memory_space<vmem>>, vector<7x8xf32>
    %c433 = arith.constant 433 : index
    %c0_115 = arith.constant 0 : index
    %149 = tpu.strided_load %arg14[%c433, %c0_115] {strides = array<i32: 2, 1>} : memref<512x8xf32, #tpu.memory_space<vmem>>, vector<7x8xf32>
    %150 = arith.maximumf %146, %147 : vector<7x8xf32>
    %151 = arith.maximumf %148, %149 : vector<7x8xf32>
    %152 = arith.maximumf %150, %151 : vector<7x8xf32>
    %c84 = arith.constant 84 : index
    %c0_116 = arith.constant 0 : index
    %153 = vector.load %arg15[%c84, %c0_116] : memref<114x8xf32, #tpu.memory_space<vmem>>, vector<7x8xf32>
    tpu.vector_store %arg15[%c84, %c0_116], %152 {strides = array<i32>} : memref<114x8xf32, #tpu.memory_space<vmem>>, vector<7x8xf32>,
    %c448 = arith.constant 448 : index
    %c0_117 = arith.constant 0 : index
    %154 = tpu.strided_load %arg14[%c448, %c0_117] {strides = array<i32: 2, 1>} : memref<512x8xf32, #tpu.memory_space<vmem>>, vector<7x8xf32>
    %c449 = arith.constant 449 : index
    %c0_118 = arith.constant 0 : index
    %155 = tpu.strided_load %arg14[%c449, %c0_118] {strides = array<i32: 2, 1>} : memref<512x8xf32, #tpu.memory_space<vmem>>, vector<7x8xf32>
    %c464 = arith.constant 464 : index
    %c0_119 = arith.constant 0 : index
    %156 = tpu.strided_load %arg14[%c464, %c0_119] {strides = array<i32: 2, 1>} : memref<512x8xf32, #tpu.memory_space<vmem>>, vector<7x8xf32>
    %c465 = arith.constant 465 : index
    %c0_120 = arith.constant 0 : index
    %157 = tpu.strided_load %arg14[%c465, %c0_120] {strides = array<i32: 2, 1>} : memref<512x8xf32, #tpu.memory_space<vmem>>, vector<7x8xf32>
    %158 = arith.maximumf %154, %155 : vector<7x8xf32>
    %159 = arith.maximumf %156, %157 : vector<7x8xf32>
    %160 = arith.maximumf %158, %159 : vector<7x8xf32>
    %c91 = arith.constant 91 : index
    %c0_121 = arith.constant 0 : index
    %161 = vector.load %arg15[%c91, %c0_121] : memref<114x8xf32, #tpu.memory_space<vmem>>, vector<7x8xf32>
    tpu.vector_store %arg15[%c91, %c0_121], %160 {strides = array<i32>} : memref<114x8xf32, #tpu.memory_space<vmem>>, vector<7x8xf32>,
    %cst_122 = arith.constant 0.000000e+00 : f32
    %162 = vector.broadcast %cst_122 : f32 to vector<16x8xf32>
    %c98 = arith.constant 98 : index
    %c0_123 = arith.constant 0 : index
    %163 = vector.load %arg15[%c98, %c0_123] : memref<114x8xf32, #tpu.memory_space<vmem>>, vector<16x8xf32>
    tpu.vector_store %arg15[%c98, %c0_123], %162 {strides = array<i32>} : memref<114x8xf32, #tpu.memory_space<vmem>>, vector<16x8xf32>,
    %c0_124 = arith.constant 0 : index
    %c0_125 = arith.constant 0 : index
    %164 = vector.load %arg15[%c0_124, %c0_125] : memref<114x8xf32, #tpu.memory_space<vmem>>, vector<98x8xf32>
    %c0_126 = arith.constant 0 : index
    %c0_127 = arith.constant 0 : index
    %c0_128 = arith.constant 0 : index
    %165 = vector.load %arg3[%c0_126, %c0_127, %c0_128] : memref<9x8x8xf32, #tpu.memory_space<vmem>>, vector<1x8x8xf32>
    %166 = vector.shape_cast %165 : vector<1x8x8xf32> to vector<8x8xf32>
    %cst_129 = arith.constant dense<0.000000e+00> : vector<98x8xf32>
    %167 = tpu.matmul %164, %166, %cst_129 {dimension_numbers = #tpu.dot_dimension_numbers<[1], [0], [0], [1], [0, 0, 1, 1], [], []>} : vector<98x8xf32>, vector<8x8xf32>, vector<98x8xf32> -> vector<98x8xf32>
    %c1_130 = arith.constant 1 : index
    %c0_131 = arith.constant 0 : index
    %168 = vector.load %arg15[%c1_130, %c0_131] : memref<114x8xf32, #tpu.memory_space<vmem>>, vector<98x8xf32>
    %c1_132 = arith.constant 1 : index
    %c0_133 = arith.constant 0 : index
    %c0_134 = arith.constant 0 : index
    %169 = vector.load %arg3[%c1_132, %c0_133, %c0_134] : memref<9x8x8xf32, #tpu.memory_space<vmem>>, vector<1x8x8xf32>
    %170 = vector.shape_cast %169 : vector<1x8x8xf32> to vector<8x8xf32>
    %cst_135 = arith.constant dense<0.000000e+00> : vector<98x8xf32>
    %171 = tpu.matmul %168, %170, %cst_135 {dimension_numbers = #tpu.dot_dimension_numbers<[1], [0], [0], [1], [0, 0, 1, 1], [], []>} : vector<98x8xf32>, vector<8x8xf32>, vector<98x8xf32> -> vector<98x8xf32>
    %172 = arith.addf %167, %171 : vector<98x8xf32>
    %c2_136 = arith.constant 2 : index
    %c0_137 = arith.constant 0 : index
    %173 = vector.load %arg15[%c2_136, %c0_137] : memref<114x8xf32, #tpu.memory_space<vmem>>, vector<98x8xf32>
    %c2_138 = arith.constant 2 : index
    %c0_139 = arith.constant 0 : index
    %c0_140 = arith.constant 0 : index
    %174 = vector.load %arg3[%c2_138, %c0_139, %c0_140] : memref<9x8x8xf32, #tpu.memory_space<vmem>>, vector<1x8x8xf32>
    %175 = vector.shape_cast %174 : vector<1x8x8xf32> to vector<8x8xf32>
    %cst_141 = arith.constant dense<0.000000e+00> : vector<98x8xf32>
    %176 = tpu.matmul %173, %175, %cst_141 {dimension_numbers = #tpu.dot_dimension_numbers<[1], [0], [0], [1], [0, 0, 1, 1], [], []>} : vector<98x8xf32>, vector<8x8xf32>, vector<98x8xf32> -> vector<98x8xf32>
    %177 = arith.addf %172, %176 : vector<98x8xf32>
    %c7_142 = arith.constant 7 : index
    %c0_143 = arith.constant 0 : index
    %178 = vector.load %arg15[%c7_142, %c0_143] : memref<114x8xf32, #tpu.memory_space<vmem>>, vector<98x8xf32>
    %c3_144 = arith.constant 3 : index
    %c0_145 = arith.constant 0 : index
    %c0_146 = arith.constant 0 : index
    %179 = vector.load %arg3[%c3_144, %c0_145, %c0_146] : memref<9x8x8xf32, #tpu.memory_space<vmem>>, vector<1x8x8xf32>
    %180 = vector.shape_cast %179 : vector<1x8x8xf32> to vector<8x8xf32>
    %cst_147 = arith.constant dense<0.000000e+00> : vector<98x8xf32>
    %181 = tpu.matmul %178, %180, %cst_147 {dimension_numbers = #tpu.dot_dimension_numbers<[1], [0], [0], [1], [0, 0, 1, 1], [], []>} : vector<98x8xf32>, vector<8x8xf32>, vector<98x8xf32> -> vector<98x8xf32>
    %182 = arith.addf %177, %181 : vector<98x8xf32>
    %c8_148 = arith.constant 8 : index
    %c0_149 = arith.constant 0 : index
    %183 = vector.load %arg15[%c8_148, %c0_149] : memref<114x8xf32, #tpu.memory_space<vmem>>, vector<98x8xf32>
    %c4_150 = arith.constant 4 : index
    %c0_151 = arith.constant 0 : index
    %c0_152 = arith.constant 0 : index
    %184 = vector.load %arg3[%c4_150, %c0_151, %c0_152] : memref<9x8x8xf32, #tpu.memory_space<vmem>>, vector<1x8x8xf32>
    %185 = vector.shape_cast %184 : vector<1x8x8xf32> to vector<8x8xf32>
    %cst_153 = arith.constant dense<0.000000e+00> : vector<98x8xf32>
    %186 = tpu.matmul %183, %185, %cst_153 {dimension_numbers = #tpu.dot_dimension_numbers<[1], [0], [0], [1], [0, 0, 1, 1], [], []>} : vector<98x8xf32>, vector<8x8xf32>, vector<98x8xf32> -> vector<98x8xf32>
    %187 = arith.addf %182, %186 : vector<98x8xf32>
    %c9 = arith.constant 9 : index
    %c0_154 = arith.constant 0 : index
    %188 = vector.load %arg15[%c9, %c0_154] : memref<114x8xf32, #tpu.memory_space<vmem>>, vector<98x8xf32>
    %c5_155 = arith.constant 5 : index
    %c0_156 = arith.constant 0 : index
    %c0_157 = arith.constant 0 : index
    %189 = vector.load %arg3[%c5_155, %c0_156, %c0_157] : memref<9x8x8xf32, #tpu.memory_space<vmem>>, vector<1x8x8xf32>
    %190 = vector.shape_cast %189 : vector<1x8x8xf32> to vector<8x8xf32>
    %cst_158 = arith.constant dense<0.000000e+00> : vector<98x8xf32>
    %191 = tpu.matmul %188, %190, %cst_158 {dimension_numbers = #tpu.dot_dimension_numbers<[1], [0], [0], [1], [0, 0, 1, 1], [], []>} : vector<98x8xf32>, vector<8x8xf32>, vector<98x8xf32> -> vector<98x8xf32>
    %192 = arith.addf %187, %191 : vector<98x8xf32>
    %c14_159 = arith.constant 14 : index
    %c0_160 = arith.constant 0 : index
    %193 = vector.load %arg15[%c14_159, %c0_160] : memref<114x8xf32, #tpu.memory_space<vmem>>, vector<98x8xf32>
    %c6_161 = arith.constant 6 : index
    %c0_162 = arith.constant 0 : index
    %c0_163 = arith.constant 0 : index
    %194 = vector.load %arg3[%c6_161, %c0_162, %c0_163] : memref<9x8x8xf32, #tpu.memory_space<vmem>>, vector<1x8x8xf32>
    %195 = vector.shape_cast %194 : vector<1x8x8xf32> to vector<8x8xf32>
    %cst_164 = arith.constant dense<0.000000e+00> : vector<98x8xf32>
    %196 = tpu.matmul %193, %195, %cst_164 {dimension_numbers = #tpu.dot_dimension_numbers<[1], [0], [0], [1], [0, 0, 1, 1], [], []>} : vector<98x8xf32>, vector<8x8xf32>, vector<98x8xf32> -> vector<98x8xf32>
    %197 = arith.addf %192, %196 : vector<98x8xf32>
    %c15 = arith.constant 15 : index
    %c0_165 = arith.constant 0 : index
    %198 = vector.load %arg15[%c15, %c0_165] : memref<114x8xf32, #tpu.memory_space<vmem>>, vector<98x8xf32>
    %c7_166 = arith.constant 7 : index
    %c0_167 = arith.constant 0 : index
    %c0_168 = arith.constant 0 : index
    %199 = vector.load %arg3[%c7_166, %c0_167, %c0_168] : memref<9x8x8xf32, #tpu.memory_space<vmem>>, vector<1x8x8xf32>
    %200 = vector.shape_cast %199 : vector<1x8x8xf32> to vector<8x8xf32>
    %cst_169 = arith.constant dense<0.000000e+00> : vector<98x8xf32>
    %201 = tpu.matmul %198, %200, %cst_169 {dimension_numbers = #tpu.dot_dimension_numbers<[1], [0], [0], [1], [0, 0, 1, 1], [], []>} : vector<98x8xf32>, vector<8x8xf32>, vector<98x8xf32> -> vector<98x8xf32>
    %202 = arith.addf %197, %201 : vector<98x8xf32>
    %c16_170 = arith.constant 16 : index
    %c0_171 = arith.constant 0 : index
    %203 = vector.load %arg15[%c16_170, %c0_171] : memref<114x8xf32, #tpu.memory_space<vmem>>, vector<98x8xf32>
    %c8_172 = arith.constant 8 : index
    %c0_173 = arith.constant 0 : index
    %c0_174 = arith.constant 0 : index
    %204 = vector.load %arg3[%c8_172, %c0_173, %c0_174] : memref<9x8x8xf32, #tpu.memory_space<vmem>>, vector<1x8x8xf32>
    %205 = vector.shape_cast %204 : vector<1x8x8xf32> to vector<8x8xf32>
    %cst_175 = arith.constant dense<0.000000e+00> : vector<98x8xf32>
    %206 = tpu.matmul %203, %205, %cst_175 {dimension_numbers = #tpu.dot_dimension_numbers<[1], [0], [0], [1], [0, 0, 1, 1], [], []>} : vector<98x8xf32>, vector<8x8xf32>, vector<98x8xf32> -> vector<98x8xf32>
    %207 = arith.addf %202, %206 : vector<98x8xf32>
    %c0_176 = arith.constant 0 : index
    %c0_177 = arith.constant 0 : index
    %208 = vector.load %arg4[%c0_176, %c0_177] : memref<1x8xf32, #tpu.memory_space<vmem>>, vector<1x8xf32>
    %209 = vector.broadcast %208 : vector<1x8xf32> to vector<98x8xf32>
    %210 = arith.addf %207, %209 : vector<98x8xf32>
    %c0_178 = arith.constant 0 : index
    %c0_179 = arith.constant 0 : index
    %211 = vector.load %arg5[%c0_178, %c0_179] : memref<8x8xf32, #tpu.memory_space<vmem>>, vector<8x8xf32>
    %cst_180 = arith.constant dense<0.000000e+00> : vector<98x8xf32>
    %212 = tpu.matmul %210, %211, %cst_180 {dimension_numbers = #tpu.dot_dimension_numbers<[1], [0], [0], [1], [0, 0, 1, 1], [], []>} : vector<98x8xf32>, vector<8x8xf32>, vector<98x8xf32> -> vector<98x8xf32>
    %c0_181 = arith.constant 0 : index
    %c0_182 = arith.constant 0 : index
    %213 = vector.load %arg6[%c0_181, %c0_182] : memref<1x8xf32, #tpu.memory_space<vmem>>, vector<1x8xf32>
    %214 = vector.broadcast %213 : vector<1x8xf32> to vector<98x8xf32>
    %215 = arith.addf %212, %214 : vector<98x8xf32>
    %216 = arith.addf %210, %215 : vector<98x8xf32>
    %cst_183 = arith.constant 0.000000e+00 : f32
    %217 = vector.broadcast %cst_183 : f32 to vector<98x8xf32>
    %218 = arith.maximumf %216, %217 : vector<98x8xf32>
    %c0_184 = arith.constant 0 : index
    %c0_185 = arith.constant 0 : index
    %219 = vector.load %arg14[%c0_184, %c0_185] : memref<512x8xf32, #tpu.memory_space<vmem>>, vector<98x8xf32>
    tpu.vector_store %arg14[%c0_184, %c0_185], %218 {strides = array<i32>} : memref<512x8xf32, #tpu.memory_space<vmem>>, vector<98x8xf32>,
    %c0_186 = arith.constant 0 : index
    %c0_187 = arith.constant 0 : index
    %220 = tpu.strided_load %arg14[%c0_186, %c0_187] {strides = array<i32: 2, 1>} : memref<512x8xf32, #tpu.memory_space<vmem>>, vector<2x8xf32>
    %c1_188 = arith.constant 1 : index
    %c0_189 = arith.constant 0 : index
    %221 = tpu.strided_load %arg14[%c1_188, %c0_189] {strides = array<i32: 2, 1>} : memref<512x8xf32, #tpu.memory_space<vmem>>, vector<2x8xf32>
    %c7_190 = arith.constant 7 : index
    %c0_191 = arith.constant 0 : index
    %222 = tpu.strided_load %arg14[%c7_190, %c0_191] {strides = array<i32: 2, 1>} : memref<512x8xf32, #tpu.memory_space<vmem>>, vector<2x8xf32>
    %c8_192 = arith.constant 8 : index
    %c0_193 = arith.constant 0 : index
    %223 = tpu.strided_load %arg14[%c8_192, %c0_193] {strides = array<i32: 2, 1>} : memref<512x8xf32, #tpu.memory_space<vmem>>, vector<2x8xf32>
    %224 = arith.maximumf %220, %221 : vector<2x8xf32>
    %225 = arith.maximumf %222, %223 : vector<2x8xf32>
    %226 = arith.maximumf %224, %225 : vector<2x8xf32>
    %c0_194 = arith.constant 0 : index
    %c0_195 = arith.constant 0 : index
    %227 = vector.load %arg16[%c0_194, %c0_195] : memref<8x8xf32, #tpu.memory_space<vmem>>, vector<2x8xf32>
    tpu.vector_store %arg16[%c0_194, %c0_195], %226 {strides = array<i32>} : memref<8x8xf32, #tpu.memory_space<vmem>>, vector<2x8xf32>,
    %c14_196 = arith.constant 14 : index
    %c0_197 = arith.constant 0 : index
    %228 = tpu.strided_load %arg14[%c14_196, %c0_197] {strides = array<i32: 2, 1>} : memref<512x8xf32, #tpu.memory_space<vmem>>, vector<2x8xf32>
    %c15_198 = arith.constant 15 : index
    %c0_199 = arith.constant 0 : index
    %229 = tpu.strided_load %arg14[%c15_198, %c0_199] {strides = array<i32: 2, 1>} : memref<512x8xf32, #tpu.memory_space<vmem>>, vector<2x8xf32>
    %c21_200 = arith.constant 21 : index
    %c0_201 = arith.constant 0 : index
    %230 = tpu.strided_load %arg14[%c21_200, %c0_201] {strides = array<i32: 2, 1>} : memref<512x8xf32, #tpu.memory_space<vmem>>, vector<2x8xf32>
    %c22 = arith.constant 22 : index
    %c0_202 = arith.constant 0 : index
    %231 = tpu.strided_load %arg14[%c22, %c0_202] {strides = array<i32: 2, 1>} : memref<512x8xf32, #tpu.memory_space<vmem>>, vector<2x8xf32>
    %232 = arith.maximumf %228, %229 : vector<2x8xf32>
    %233 = arith.maximumf %230, %231 : vector<2x8xf32>
    %234 = arith.maximumf %232, %233 : vector<2x8xf32>
    %c2_203 = arith.constant 2 : index
    %c0_204 = arith.constant 0 : index
    %235 = vector.load %arg16[%c2_203, %c0_204] : memref<8x8xf32, #tpu.memory_space<vmem>>, vector<2x8xf32>
    tpu.vector_store %arg16[%c2_203, %c0_204], %234 {strides = array<i32>} : memref<8x8xf32, #tpu.memory_space<vmem>>, vector<2x8xf32>,
    %c49_205 = arith.constant 49 : index
    %c0_206 = arith.constant 0 : index
    %236 = tpu.strided_load %arg14[%c49_205, %c0_206] {strides = array<i32: 2, 1>} : memref<512x8xf32, #tpu.memory_space<vmem>>, vector<2x8xf32>
    %c50 = arith.constant 50 : index
    %c0_207 = arith.constant 0 : index
    %237 = tpu.strided_load %arg14[%c50, %c0_207] {strides = array<i32: 2, 1>} : memref<512x8xf32, #tpu.memory_space<vmem>>, vector<2x8xf32>
    %c56_208 = arith.constant 56 : index
    %c0_209 = arith.constant 0 : index
    %238 = tpu.strided_load %arg14[%c56_208, %c0_209] {strides = array<i32: 2, 1>} : memref<512x8xf32, #tpu.memory_space<vmem>>, vector<2x8xf32>
    %c57 = arith.constant 57 : index
    %c0_210 = arith.constant 0 : index
    %239 = tpu.strided_load %arg14[%c57, %c0_210] {strides = array<i32: 2, 1>} : memref<512x8xf32, #tpu.memory_space<vmem>>, vector<2x8xf32>
    %240 = arith.maximumf %236, %237 : vector<2x8xf32>
    %241 = arith.maximumf %238, %239 : vector<2x8xf32>
    %242 = arith.maximumf %240, %241 : vector<2x8xf32>
    %c4_211 = arith.constant 4 : index
    %c0_212 = arith.constant 0 : index
    %243 = vector.load %arg16[%c4_211, %c0_212] : memref<8x8xf32, #tpu.memory_space<vmem>>, vector<2x8xf32>
    tpu.vector_store %arg16[%c4_211, %c0_212], %242 {strides = array<i32>} : memref<8x8xf32, #tpu.memory_space<vmem>>, vector<2x8xf32>,
    %c63_213 = arith.constant 63 : index
    %c0_214 = arith.constant 0 : index
    %244 = tpu.strided_load %arg14[%c63_213, %c0_214] {strides = array<i32: 2, 1>} : memref<512x8xf32, #tpu.memory_space<vmem>>, vector<2x8xf32>
    %c64_215 = arith.constant 64 : index
    %c0_216 = arith.constant 0 : index
    %245 = tpu.strided_load %arg14[%c64_215, %c0_216] {strides = array<i32: 2, 1>} : memref<512x8xf32, #tpu.memory_space<vmem>>, vector<2x8xf32>
    %c70_217 = arith.constant 70 : index
    %c0_218 = arith.constant 0 : index
    %246 = tpu.strided_load %arg14[%c70_217, %c0_218] {strides = array<i32: 2, 1>} : memref<512x8xf32, #tpu.memory_space<vmem>>, vector<2x8xf32>
    %c71 = arith.constant 71 : index
    %c0_219 = arith.constant 0 : index
    %247 = tpu.strided_load %arg14[%c71, %c0_219] {strides = array<i32: 2, 1>} : memref<512x8xf32, #tpu.memory_space<vmem>>, vector<2x8xf32>
    %248 = arith.maximumf %244, %245 : vector<2x8xf32>
    %249 = arith.maximumf %246, %247 : vector<2x8xf32>
    %250 = arith.maximumf %248, %249 : vector<2x8xf32>
    %c6_220 = arith.constant 6 : index
    %c0_221 = arith.constant 0 : index
    %251 = vector.load %arg16[%c6_220, %c0_221] : memref<8x8xf32, #tpu.memory_space<vmem>>, vector<2x8xf32>
    tpu.vector_store %arg16[%c6_220, %c0_221], %250 {strides = array<i32>} : memref<8x8xf32, #tpu.memory_space<vmem>>, vector<2x8xf32>,
    %c0_222 = arith.constant 0 : index
    %c0_223 = arith.constant 0 : index
    %252 = tpu.strided_load %arg16[%c0_222, %c0_223] {strides = array<i32: 4, 1>} : memref<8x8xf32, #tpu.memory_space<vmem>>, vector<2x8xf32>
    %c0_224 = arith.constant 0 : index
    %c0_225 = arith.constant 0 : index
    %c0_226 = arith.constant 0 : index
    %253 = vector.load %arg7[%c0_224, %c0_225, %c0_226] : memref<4x8x32xf32, #tpu.memory_space<vmem>>, vector<1x8x32xf32>
    %254 = vector.shape_cast %253 : vector<1x8x32xf32> to vector<8x32xf32>
    %cst_227 = arith.constant dense<0.000000e+00> : vector<2x32xf32>
    %255 = tpu.matmul %252, %254, %cst_227 {dimension_numbers = #tpu.dot_dimension_numbers<[1], [0], [0], [1], [0, 0, 1, 1], [], []>} : vector<2x8xf32>, vector<8x32xf32>, vector<2x32xf32> -> vector<2x32xf32>
    %c1_228 = arith.constant 1 : index
    %c0_229 = arith.constant 0 : index
    %256 = tpu.strided_load %arg16[%c1_228, %c0_229] {strides = array<i32: 4, 1>} : memref<8x8xf32, #tpu.memory_space<vmem>>, vector<2x8xf32>
    %c1_230 = arith.constant 1 : index
    %c0_231 = arith.constant 0 : index
    %c0_232 = arith.constant 0 : index
    %257 = vector.load %arg7[%c1_230, %c0_231, %c0_232] : memref<4x8x32xf32, #tpu.memory_space<vmem>>, vector<1x8x32xf32>
    %258 = vector.shape_cast %257 : vector<1x8x32xf32> to vector<8x32xf32>
    %cst_233 = arith.constant dense<0.000000e+00> : vector<2x32xf32>
    %259 = tpu.matmul %256, %258, %cst_233 {dimension_numbers = #tpu.dot_dimension_numbers<[1], [0], [0], [1], [0, 0, 1, 1], [], []>} : vector<2x8xf32>, vector<8x32xf32>, vector<2x32xf32> -> vector<2x32xf32>
    %260 = arith.addf %255, %259 : vector<2x32xf32>
    %c2_234 = arith.constant 2 : index
    %c0_235 = arith.constant 0 : index
    %261 = tpu.strided_load %arg16[%c2_234, %c0_235] {strides = array<i32: 4, 1>} : memref<8x8xf32, #tpu.memory_space<vmem>>, vector<2x8xf32>
    %c2_236 = arith.constant 2 : index
    %c0_237 = arith.constant 0 : index
    %c0_238 = arith.constant 0 : index
    %262 = vector.load %arg7[%c2_236, %c0_237, %c0_238] : memref<4x8x32xf32, #tpu.memory_space<vmem>>, vector<1x8x32xf32>
    %263 = vector.shape_cast %262 : vector<1x8x32xf32> to vector<8x32xf32>
    %cst_239 = arith.constant dense<0.000000e+00> : vector<2x32xf32>
    %264 = tpu.matmul %261, %263, %cst_239 {dimension_numbers = #tpu.dot_dimension_numbers<[1], [0], [0], [1], [0, 0, 1, 1], [], []>} : vector<2x8xf32>, vector<8x32xf32>, vector<2x32xf32> -> vector<2x32xf32>
    %265 = arith.addf %260, %264 : vector<2x32xf32>
    %c3_240 = arith.constant 3 : index
    %c0_241 = arith.constant 0 : index
    %266 = tpu.strided_load %arg16[%c3_240, %c0_241] {strides = array<i32: 4, 1>} : memref<8x8xf32, #tpu.memory_space<vmem>>, vector<2x8xf32>
    %c3_242 = arith.constant 3 : index
    %c0_243 = arith.constant 0 : index
    %c0_244 = arith.constant 0 : index
    %267 = vector.load %arg7[%c3_242, %c0_243, %c0_244] : memref<4x8x32xf32, #tpu.memory_space<vmem>>, vector<1x8x32xf32>
    %268 = vector.shape_cast %267 : vector<1x8x32xf32> to vector<8x32xf32>
    %cst_245 = arith.constant dense<0.000000e+00> : vector<2x32xf32>
    %269 = tpu.matmul %266, %268, %cst_245 {dimension_numbers = #tpu.dot_dimension_numbers<[1], [0], [0], [1], [0, 0, 1, 1], [], []>} : vector<2x8xf32>, vector<8x32xf32>, vector<2x32xf32> -> vector<2x32xf32>
    %270 = arith.addf %265, %269 : vector<2x32xf32>
    %c0_246 = arith.constant 0 : index
    %c0_247 = arith.constant 0 : index
    %271 = vector.load %arg8[%c0_246, %c0_247] : memref<1x32xf32, #tpu.memory_space<vmem>>, vector<1x32xf32>
    %272 = vector.broadcast %271 : vector<1x32xf32> to vector<2x32xf32>
    %273 = arith.addf %270, %272 : vector<2x32xf32>
    %cst_248 = arith.constant 0.000000e+00 : f32
    %274 = vector.broadcast %cst_248 : f32 to vector<2x32xf32>
    %275 = arith.maximumf %273, %274 : vector<2x32xf32>
    %c0_249 = arith.constant 0 : index
    %c0_250 = arith.constant 0 : index
    %276 = vector.load %arg9[%c0_249, %c0_250] : memref<32x32xf32, #tpu.memory_space<vmem>>, vector<32x32xf32>
    %cst_251 = arith.constant dense<0.000000e+00> : vector<2x32xf32>
    %277 = tpu.matmul %275, %276, %cst_251 {dimension_numbers = #tpu.dot_dimension_numbers<[1], [0], [0], [1], [0, 0, 1, 1], [], []>} : vector<2x32xf32>, vector<32x32xf32>, vector<2x32xf32> -> vector<2x32xf32>
    %c0_252 = arith.constant 0 : index
    %c0_253 = arith.constant 0 : index
    %278 = vector.load %arg10[%c0_252, %c0_253] : memref<1x32xf32, #tpu.memory_space<vmem>>, vector<1x32xf32>
    %279 = vector.broadcast %278 : vector<1x32xf32> to vector<2x32xf32>
    %280 = arith.addf %277, %279 : vector<2x32xf32>
    %cst_254 = arith.constant 0.000000e+00 : f32
    %281 = vector.broadcast %cst_254 : f32 to vector<2x32xf32>
    %282 = arith.maximumf %280, %281 : vector<2x32xf32>
    %c0_255 = arith.constant 0 : index
    %c0_256 = arith.constant 0 : index
    %283 = vector.load %arg11[%c0_255, %c0_256] : memref<32x4xf32, #tpu.memory_space<vmem>>, vector<32x4xf32>
    %cst_257 = arith.constant dense<0.000000e+00> : vector<2x4xf32>
    %284 = tpu.matmul %282, %283, %cst_257 {dimension_numbers = #tpu.dot_dimension_numbers<[1], [0], [0], [1], [0, 0, 1, 1], [], []>} : vector<2x32xf32>, vector<32x4xf32>, vector<2x4xf32> -> vector<2x4xf32>
    %c0_258 = arith.constant 0 : index
    %c0_259 = arith.constant 0 : index
    %285 = vector.load %arg12[%c0_258, %c0_259] : memref<1x4xf32, #tpu.memory_space<vmem>>, vector<1x4xf32>
    %286 = vector.broadcast %285 : vector<1x4xf32> to vector<2x4xf32>
    %287 = arith.addf %284, %286 : vector<2x4xf32>
    %c0_260 = arith.constant 0 : index
    %c0_261 = arith.constant 0 : index
    %288 = vector.load %arg13[%c0_260, %c0_261] : memref<2x4xf32, #tpu.memory_space<vmem>>, vector<2x4xf32>
    tpu.vector_store %arg13[%c0_260, %c0_261], %287 {strides = array<i32>} : memref<2x4xf32, #tpu.memory_space<vmem>>, vector<2x4xf32>,
    return
  }
}

</mosaic_0001>

<bundles_post_ra>
// kernel: _forward_impl.1
= control target key start
LH: loop header
LB: loop body
LE: loop exit
PB: predicated region body
PF: predicated region fallthrough
CT: control target
= control target key end

     0   :  { %vm369_vm0 = vcmask 1043456   ;;  %vm176_vm1 = vcmask 31744   ;;  %s11533_s0 = inlined_call_operand.vmem [shape: f32[546,4], index: 0, kind: input, shape index: {}]   ;;  %s11534_s1 = inlined_call_operand.vmem [shape: f32[9,4,8], index: 1, kind: input, shape index: {}]   ;;  %s11535_s2 = inlined_call_operand.vmem [shape: f32[1,8], index: 2, kind: input, shape index: {}]   ;;  %s11536_s3 = inlined_call_operand.vmem [shape: f32[9,8,8], index: 3, kind: input, shape index: {}]   ;;  %s11537_s4 = inlined_call_operand.vmem [shape: f32[1,8], index: 4, kind: input, shape index: {}]   ;;  %s11538_s5 = inlined_call_operand.vmem [shape: f32[8,8], index: 5, kind: input, shape index: {}]   ;;  %s11539_s6 = inlined_call_operand.vmem [shape: f32[1,8], index: 6, kind: input, shape index: {}]   ;;  %s11540_s7 = inlined_call_operand.vmem [shape: f32[4,8,32], index: 7, kind: input, shape index: {}]   ;;  %s11541_s8 = inlined_call_operand.vmem [shape: f32[1,32], index: 8, kind: input, shape index: {}]   ;;  %s11542_s9 = inlined_call_operand.vmem [shape: f32[32,32], index: 9, kind: input, shape index: {}]   ;;  %s11543_s10 = inlined_call_operand.vmem [shape: f32[1,32], index: 10, kind: input, shape index: {}]   ;;  %s11544_s11 = inlined_call_operand.vmem [shape: f32[32,4], index: 11, kind: input, shape index: {}]   ;;  %s11545_s12 = inlined_call_operand.vmem [shape: f32[1,4], index: 12, kind: input, shape index: {}]   ;;  %s11546_s13 = inlined_call_operand.hbm [shape: f32[2,4], index: 13, kind: output, shape index: {}]  }
   0x1   :  { %v6568_v0 = vld [vmem:[%s11534_s1 + $0x4] sm:$0xf]  ;;  %v109_v1 = vld [vmem:[%s11534_s1] sm:$0xf]  ;;  %v160_v3 = vld [vmem:[%s11533_s0 + $0x191] sm:$0xff] }
   0x2   :  { %v110_v2 = vld [vmem:[%s11533_s0 + $0x1] sm:$0xff]  ;;  %6569 = vmatpush.msk.msra.mxu0 %vm369_vm0, %v6568_v0  ;;  %7308 = vmatpush.msk.msra.mxu2 %vm369_vm0, %v6568_v0  ;;  %v6831_v5 = vld [vmem:[%s11534_s1 + $0x10] sm:$0xf]  ;;  %v161_v8 = vld [vmem:[%s11533_s0 + $0x199] sm:$0xff] }
   0x3   :  { %v45_v4 = vld [vmem:[%s11533_s0] sm:$0xff]  ;;  %6634 = vmatpush.msk.msra.mxu1 %vm369_vm0, %v109_v1  ;;  %6570 = vmatmul.msk.f32.vlgmr.msra.gmra.mxu0 %vm176_vm1, %v110_v2  ;;  %v168_v6 = vld [vmem:[%s11533_s0 + $0x1d1] sm:$0xff]  ;;  %v111_v7 = vld [vmem:[%s11533_s0 + $0x9] sm:$0xff] }
   0x4   :  { %6620 = vmatmul.msk.f32.vlgmr.msra.gmra.mxu2 %vm176_vm1, %v160_v3  ;;  %6635 = vmatmul.msk.f32.vlgmr.msra.gmra.mxu1 %vm176_vm1, %v45_v4  ;;  %v46_v9 = vld [vmem:[%s11533_s0 + $0x8] sm:$0xff]  ;;  %v169_v10 = vld [vmem:[%s11533_s0 + $0x1d9] sm:$0xff] }
   0x5   :  { %6832 = vmatpush.msk.msrb.mxu0 %vm369_vm0, %v6831_v5  ;;  %7309 = vmatpush.msk.msra.mxu3 %vm369_vm0, %v6568_v0 }
   0x6   :  { %6628 = vmatmul.msk.f32.vlgmr.msra.gmra.mxu3 %vm176_vm1, %v168_v6 }
   0x7   :  { %7310 = vmatpush.msk.msrb.mxu3 %vm369_vm0, %v109_v1 }
   0xb   :  { %6571 = vmatmul.msk.f32.gmra.mxu0 %vm176_vm1, %v111_v7 }
   0xc   :  { %18 = vsyncpa [#allocation6], 0  ;;  %6621 = vmatmul.msk.f32.gmra.mxu2 %vm176_vm1, %v161_v8  ;;  %6636 = vmatmul.msk.f32.gmra.mxu1 %vm176_vm1, %v46_v9  ;;  %v112_v11 = vld [vmem:[%s11533_s0 + $0x11] sm:$0xff]  ;;  %v162_v12 = vld [vmem:[%s11533_s0 + $0x1a1] sm:$0xff]  ;;  %vm4856_vm2 = vcmask 64512   ;;  %vm4931_vm3 = vcmask 63488  }
   0xd   :  { %v47_v13 = vld [vmem:[%s11533_s0 + $0x10] sm:$0xff]  ;;  %v170_v14 = vld [vmem:[%s11533_s0 + $0x1e1] sm:$0xff]  ;;  %v113_v15 = vld [vmem:[%s11533_s0 + $0x19] sm:$0xff]  ;;  %vm6326_vm4 = vcmask 58368   ;;  %vm6494_vm5 = vcmask 261120   ;;  %s7355_s23 = smov [#allocation5]  }
   0xe   :  { %6629 = vmatmul.msk.f32.gmra.mxu3 %vm176_vm1, %v169_v10  ;;  %v163_v16 = vld [vmem:[%s11533_s0 + $0x1a9] sm:$0xff]  ;;  %v48_v17 = vld [vmem:[%s11533_s0 + $0x18] sm:$0xff]  ;;  %v114_v20 = vld [vmem:[%s11533_s0 + $0x21] sm:$0xff]  ;;  %vm6550_vm6 = vcmask 25600  }
   0xf   :  { %v171_v18 = vld [vmem:[%s11533_s0 + $0x1e9] sm:$0xff]  ;;  %v164_v21 = vld [vmem:[%s11533_s0 + $0x1b1] sm:$0xff]  ;;  %v49_v22 = vld [vmem:[%s11533_s0 + $0x20] sm:$0xff] }
  0x10   :  { %v6699_v19 = vld [vmem:[%s11534_s1 + $0x8] sm:$0xf]  ;;  %v172_v23 = vld [vmem:[%s11533_s0 + $0x1f1] sm:$0xff]  ;;  %v6765_v24 = vld [vmem:[%s11534_s1 + $0xc] sm:$0xf] }
  0x11   :  { %6700 = vmatpush.msk.msrb.mxu2 %vm369_vm0, %v6699_v19  ;;  %6766 = vmatpush.msk.msra.mxu3 %vm369_vm0, %v6765_v24  ;;  %v115_v25 = vld [vmem:[%s11533_s0 + $0x29] sm:$0xff]  ;;  %v165_v26 = vld [vmem:[%s11533_s0 + $0x1b9] sm:$0xff]  ;;  %v116_v29 = vld [vmem:[%s11533_s0 + $0x31] sm:$0xff] }
  0x12   :  { %v50_v27 = vld [vmem:[%s11533_s0 + $0x28] sm:$0xff]  ;;  %v173_v28 = vld [vmem:[%s11533_s0 + $0x1f9] sm:$0xff]  ;;  %v51_v31 = vld [vmem:[%s11533_s0 + $0x30] sm:$0xff] }
  0x13   :  { %6572 = vmatmul.msk.f32.gmra.mxu0 %vm176_vm1, %v112_v11  ;;  %v166_v30 = vld [vmem:[%s11533_s0 + $0x1c1] sm:$0xff]  ;;  %v107_v32 = vld [vmem:[%s11533_s0 + $0x1f0] sm:$0xff]  ;;  %v117_v33 = vld [vmem:[%s11533_s0 + $0x39] sm:$0xff] }
  0x14   :  { %6622 = vmatmul.msk.f32.gmra.mxu2 %vm176_vm1, %v162_v12  ;;  %6637 = vmatmul.msk.f32.gmra.mxu1 %vm176_vm1, %v47_v13  ;;  %v167_v34 = vld [vmem:[%s11533_s0 + $0x1c9] sm:$0xff]  ;;  %v52_v35 = vld [vmem:[%s11533_s0 + $0x38] sm:$0xff]  ;;  %v118_v37 = vld [vmem:[%s11533_s0 + $0x41] sm:$0xff] }
  0x15   :  { %v108_v36 = vld [vmem:[%s11533_s0 + $0x1f8] sm:$0xff]  ;;  %v53_v38 = vld [vmem:[%s11533_s0 + $0x40] sm:$0xff]  ;;  %v119_v40 = vld [vmem:[%s11533_s0 + $0x49] sm:$0xff] }
  0x16   :  { %6630 = vmatmul.msk.f32.gmra.mxu3 %vm176_vm1, %v170_v14  ;;  %v986_v39 = vld [vmem:[%s11533_s0 + $0x2] sm:$0xff]  ;;  %v987_v42 = vld [vmem:[%s11533_s0 + $0xa] sm:$0xff]  ;;  %v988_v45 = vld [vmem:[%s11533_s0 + $0x12] sm:$0xff] }
  0x17   :  { %v54_v41 = vld [vmem:[%s11533_s0 + $0x48] sm:$0xff]  ;;  %v120_v43 = vld [vmem:[%s11533_s0 + $0x51] sm:$0xff]  ;;  %v121_v46 = vld [vmem:[%s11533_s0 + $0x59] sm:$0xff] }
  0x18   :  { %v55_v44 = vld [vmem:[%s11533_s0 + $0x50] sm:$0xff]  ;;  %v56_v47 = vld [vmem:[%s11533_s0 + $0x58] sm:$0xff]  ;;  %v122_v49 = vld [vmem:[%s11533_s0 + $0x61] sm:$0xff] }
  0x19   :  { %v989_v48 = vld [vmem:[%s11533_s0 + $0x1a] sm:$0xff]  ;;  %v990_v51 = vld [vmem:[%s11533_s0 + $0x22] sm:$0xff]  ;;  %v991_v54 = vld [vmem:[%s11533_s0 + $0x2a] sm:$0xff] }
  0x1a   :  { %v57_v50 = vld [vmem:[%s11533_s0 + $0x60] sm:$0xff]  ;;  %v123_v52 = vld [vmem:[%s11533_s0 + $0x69] sm:$0xff]  ;;  %v124_v55 = vld [vmem:[%s11533_s0 + $0x71] sm:$0xff] }
  0x1b   :  { %6573 = vmatmul.msk.f32.gmra.mxu0 %vm176_vm1, %v113_v15  ;;  %v58_v53 = vld [vmem:[%s11533_s0 + $0x68] sm:$0xff]  ;;  %v7661_v56 = vld [vmem:[%s11533_s0 + $0x70] sm:$0xff]  ;;  %v125_v58 = vld [vmem:[%s11533_s0 + $0x79] sm:$0xff] }
  0x1c   :  { %6623 = vmatmul.msk.f32.gmra.mxu2 %vm176_vm1, %v163_v16  ;;  %6638 = vmatmul.msk.f32.gmra.mxu1 %vm176_vm1, %v48_v17  ;;  %v992_v57 = vld [vmem:[%s11533_s0 + $0x32] sm:$0xff]  ;;  %v993_v60 = vld [vmem:[%s11533_s0 + $0x3a] sm:$0xff]  ;;  %v994_v1 = vld [vmem:[%s11533_s0 + $0x42] sm:$0xff] }
  0x1d   :  { %v7677_v59 = vld [vmem:[%s11533_s0 + $0x78] sm:$0xff]  ;;  %v126_v62 = vld [vmem:[%s11533_s0 + $0x81] sm:$0xff]  ;;  %v127_v4 = vld [vmem:[%s11533_s0 + $0x89] sm:$0xff] }
  0x1e   :  { %6631 = vmatmul.msk.f32.gmra.mxu3 %vm176_vm1, %v171_v18  ;;  %v7697_v0 = vld [vmem:[%s11533_s0 + $0x80] sm:$0xff]  ;;  %v7721_v7 = vld [vmem:[%s11533_s0 + $0x88] sm:$0xff]  ;;  %v128_v11 = vld [vmem:[%s11533_s0 + $0x91] sm:$0xff] }
  0x1f   :  { %v995_v8 = vld [vmem:[%s11533_s0 + $0x4a] sm:$0xff]  ;;  %v996_v15 = vld [vmem:[%s11533_s0 + $0x52] sm:$0xff] }
  0x20   :  { %v7745_v14 = vld [vmem:[%s11533_s0 + $0x90] sm:$0xff]  ;;  %v129_v18 = vld [vmem:[%s11533_s0 + $0x99] sm:$0xff] }
  0x23   :  { %6574 = vmatmul.msk.f32.gmra.mxu0 %vm176_vm1, %v114_v20 }
  0x24   :  { %6624 = vmatmul.msk.f32.gmra.mxu2 %vm176_vm1, %v164_v21  ;;  %6639 = vmatmul.msk.f32.gmra.mxu1 %vm176_vm1, %v49_v22  ;;  %v7767_v21 = vld [vmem:[%s11533_s0 + $0x98] sm:$0xff] }
  0x26   :  { %6632 = vmatmul.msk.f32.gmra.mxu3 %vm176_vm1, %v172_v23 }
  0x2b   :  { %6575 = vmatmul.msk.f32.gmra.mxu0 %vm176_vm1, %v115_v25  ;;  %v130_v25 = vld [vmem:[%s11533_s0 + $0xa1] sm:$0xff] }
  0x2c   :  { %6625 = vmatmul.msk.f32.gmra.mxu2 %vm176_vm1, %v165_v26  ;;  %6640 = vmatmul.msk.f32.gmra.mxu1 %vm176_vm1, %v50_v27 }
  0x2e   :  { %6633 = vmatmul.msk.f32.gmra.mxu3 %vm176_vm1, %v173_v28  ;;  %v7789_v28 = vld [vmem:[%s11533_s0 + $0xa0] sm:$0xff] }
  0x33   :  { %6576 = vmatmul.msk.f32.gmra.mxu0 %vm176_vm1, %v116_v29  ;;  %v998_v29 = vld [vmem:[%s11533_s0 + $0x62] sm:$0xff] }
  0x34   :  { %6626 = vmatmul.msk.f32.gmra.mxu2 %vm176_vm1, %v166_v30  ;;  %6641 = vmatmul.msk.f32.gmra.mxu1 %vm176_vm1, %v51_v31 }
  0x36   :  { %6697 = vmatmul.msk.f32.vlgmr.msrb.gmra.mxu3 %vm176_vm1, %v107_v32  ;;  %v131_v32 = vld [vmem:[%s11533_s0 + $0xa9] sm:$0xff] }
  0x3b   :  { %6577 = vmatmul.msk.f32.gmra.mxu0 %vm176_vm1, %v117_v33 }
  0x3c   :  { %6627 = vmatmul.msk.f32.gmra.mxu2 %vm176_vm1, %v167_v34  ;;  %6642 = vmatmul.msk.f32.gmra.mxu1 %vm176_vm1, %v52_v35 }
  0x3e   :  { %6698 = vmatmul.msk.f32.gmra.mxu3 %vm176_vm1, %v108_v36  ;;  %v999_v36 = vld [vmem:[%s11533_s0 + $0x6a] sm:$0xff] }
  0x43   :  { %6578 = vmatmul.msk.f32.gmra.mxu0 %vm176_vm1, %v118_v37 }
  0x44   :  { %6643 = vmatmul.msk.f32.gmra.mxu1 %vm176_vm1, %v53_v38  ;;  %6701 = vmatmul.msk.f32.vlgmr.msrb.gmra.mxu2 %vm176_vm1, %v986_v39  ;;  %v132_v39 = vld [vmem:[%s11533_s0 + $0xb1] sm:$0xff] }
  0x46   :  { %6767 = vmatmul.msk.f32.vlgmr.msra.gmra.mxu3 %vm176_vm1, %v47_v13 }
  0x4b   :  { %6579 = vmatmul.msk.f32.gmra.mxu0 %vm176_vm1, %v119_v40 }
  0x4c   :  { %6644 = vmatmul.msk.f32.gmra.mxu1 %vm176_vm1, %v54_v41  ;;  %6702 = vmatmul.msk.f32.gmra.mxu2 %vm176_vm1, %v987_v42  ;;  %v7835_v42 = vld [vmem:[%s11533_s0 + $0xb0] sm:$0xff] }
  0x4e   :  { %6768 = vmatmul.msk.f32.gmra.mxu3 %vm176_vm1, %v48_v17 }
  0x53   :  { %6580 = vmatmul.msk.f32.gmra.mxu0 %vm176_vm1, %v120_v43  ;;  %v1000_v43 = vld [vmem:[%s11533_s0 + $0x72] sm:$0xff] }
  0x54   :  { %6645 = vmatmul.msk.f32.gmra.mxu1 %vm176_vm1, %v55_v44  ;;  %6703 = vmatmul.msk.f32.gmra.mxu2 %vm176_vm1, %v988_v45 }
  0x56   :  { %6769 = vmatmul.msk.f32.gmra.mxu3 %vm176_vm1, %v49_v22  ;;  %v997_v22 = vld [vmem:[%s11533_s0 + $0x5a] sm:$0xff] }
  0x5b   :  { %6581 = vmatmul.msk.f32.gmra.mxu0 %vm176_vm1, %v121_v46  ;;  %v133_v46 = vld [vmem:[%s11533_s0 + $0xb9] sm:$0xff] }
  0x5c   :  { %6646 = vmatmul.msk.f32.gmra.mxu1 %vm176_vm1, %v56_v47  ;;  %6704 = vmatmul.msk.f32.gmra.mxu2 %vm176_vm1, %v989_v48 }
  0x5e   :  { %6770 = vmatmul.msk.f32.gmra.mxu3 %vm176_vm1, %v50_v27 }
  0x63   :  { %6582 = vmatmul.msk.f32.gmra.mxu0 %vm176_vm1, %v122_v49  ;;  %v7858_v49 = vld [vmem:[%s11533_s0 + $0xb8] sm:$0xff] }
  0x64   :  { %6647 = vmatmul.msk.f32.gmra.mxu1 %vm176_vm1, %v57_v50  ;;  %6705 = vmatmul.msk.f32.gmra.mxu2 %vm176_vm1, %v990_v51 }
  0x66   :  { %6771 = vmatmul.msk.f32.gmra.mxu3 %vm176_vm1, %v51_v31 }
  0x6b   :  { %6583 = vmatmul.msk.f32.gmra.mxu0 %vm176_vm1, %v123_v52 }
  0x6c   :  { %6648 = vmatmul.msk.f32.gmra.mxu1 %vm176_vm1, %v58_v53  ;;  %6706 = vmatmul.msk.f32.gmra.mxu2 %vm176_vm1, %v991_v54 }
  0x6e   :  { %6772 = vmatmul.msk.f32.gmra.mxu3 %vm176_vm1, %v52_v35  ;;  %v7812_v35 = vld [vmem:[%s11533_s0 + $0xa8] sm:$0xff] }
  0x73   :  { %6584 = vmatmul.msk.f32.gmra.mxu0 %vm176_vm1, %v124_v55 }
  0x74   :  { %6649 = vmatmul.msk.f32.gmra.mxu1 %vm176_vm1, %v7661_v56  ;;  %6707 = vmatmul.msk.f32.gmra.mxu2 %vm176_vm1, %v992_v57  ;;  %v1002_v57 = vld [vmem:[%s11533_s0 + $0x82] sm:$0xff] }
  0x76   :  { %6773 = vmatmul.msk.f32.gmra.mxu3 %vm176_vm1, %v53_v38 }
  0x7b   :  { %6585 = vmatmul.msk.f32.gmra.mxu0 %vm176_vm1, %v125_v58 }
  0x7c   :  { %6650 = vmatmul.msk.f32.gmra.mxu1 %vm176_vm1, %v7677_v59  ;;  %6708 = vmatmul.msk.f32.gmra.mxu2 %vm176_vm1, %v993_v60 }
  0x7e   :  { %6774 = vmatmul.msk.f32.gmra.mxu3 %vm176_vm1, %v54_v41 }
  0x80   :  { %v7687_v61 = vpop.f32.mrf.mxu0 }
  0x81   :  { %v7692_v63 = vpop.f32.mrf.mxu1 }
  0x82   :  { %v795_v58 = vadd.f32 %v7692_v63, %v7687_v61  ;;  %v1003_v61 = vld [vmem:[%s11533_s0 + $0x8a] sm:$0xff] }
  0x83   :  { %6586 = vmatmul.msk.f32.gmra.mxu0 %vm176_vm1, %v126_v62 }
  0x84   :  { %6651 = vmatmul.msk.f32.gmra.mxu1 %vm176_vm1, %v7697_v0  ;;  %6709 = vmatmul.msk.f32.gmra.mxu2 %vm176_vm1, %v994_v1 }
  0x86   :  { %6775 = vmatmul.msk.f32.gmra.mxu3 %vm176_vm1, %v55_v44 }
  0x87   :  { %v7707_v2 = vpop.f32.mrf.mxu2 }
  0x88   :  { %v7709_v3 = vpop.f32.mrf.mxu0 }
  0x89   :  { %v7714_v5 = vpop.f32.mrf.mxu3  ;;  %v7716_v6 = vpop.f32.mrf.mxu1 }
  0x8b   :  { %6587 = vmatmul.msk.f32.gmra.mxu0 %vm176_vm1, %v127_v4 }
  0x8c   :  { %6652 = vmatmul.msk.f32.gmra.mxu1 %vm176_vm1, %v7721_v7  ;;  %6710 = vmatmul.msk.f32.gmra.mxu2 %vm176_vm1, %v995_v8  ;;  %v798_v8 = vadd.f32 %v7716_v6, %v7709_v3  ;;  %v1004_v3 = vld [vmem:[%s11533_s0 + $0x92] sm:$0xff] }
  0x8e   :  { %6776 = vmatmul.msk.f32.gmra.mxu3 %vm176_vm1, %v56_v47 }
  0x8f   :  { %v7731_v9 = vpop.f32.mrf.mxu2 }
  0x90   :  { %v7733_v10 = vpop.f32.mrf.mxu0 }
  0x91   :  { %v7738_v12 = vpop.f32.mrf.mxu3  ;;  %v7740_v13 = vpop.f32.mrf.mxu1 }
  0x93   :  { %6588 = vmatmul.msk.f32.gmra.mxu0 %vm176_vm1, %v128_v11 }
  0x94   :  { %6653 = vmatmul.msk.f32.gmra.mxu1 %vm176_vm1, %v7745_v14  ;;  %6711 = vmatmul.msk.f32.gmra.mxu2 %vm176_vm1, %v996_v15 }
  0x96   :  { %6777 = vmatmul.msk.f32.gmra.mxu3 %vm176_vm1, %v57_v50  ;;  %v1001_v50 = vld [vmem:[%s11533_s0 + $0x7a] sm:$0xff] }
  0x97   :  { %v7755_v16 = vpop.f32.mrf.mxu2 }
  0x98   :  { %v7757_v17 = vpop.f32.mrf.mxu0 }
  0x99   :  { %v570_v19 = vpop.f32.mrf.mxu3  ;;  %v7762_v20 = vpop.f32.mrf.mxu1 }
  0x9b   :  { %6589 = vmatmul.msk.f32.gmra.mxu0 %vm176_vm1, %v129_v18  ;;  %v136_v18 = vld [vmem:[%s11533_s0 + $0xd1] sm:$0xff] }
  0x9c   :  { %6654 = vmatmul.msk.f32.gmra.mxu1 %vm176_vm1, %v7767_v21  ;;  %6712 = vmatmul.msk.f32.gmra.mxu2 %vm176_vm1, %v997_v22 }
  0x9e   :  { %6778 = vmatmul.msk.f32.gmra.mxu3 %vm176_vm1, %v58_v53  ;;  %v134_v53 = vld [vmem:[%s11533_s0 + $0xc1] sm:$0xff] }
  0x9f   :  { %v7777_v23 = vpop.f32.mrf.mxu2 }
  0xa0   :  { %v7779_v24 = vpop.f32.mrf.mxu0 }
  0xa1   :  { %v573_v26 = vpop.f32.mrf.mxu3  ;;  %v7784_v27 = vpop.f32.mrf.mxu1 }
  0xa3   :  { %6590 = vmatmul.msk.f32.gmra.mxu0 %vm176_vm1, %v130_v25  ;;  %v7929_v25 = vld [vmem:[%s11533_s0 + $0xd0] sm:$0xff] }
  0xa4   :  { %6655 = vmatmul.msk.f32.gmra.mxu1 %vm176_vm1, %v7789_v28  ;;  %6713 = vmatmul.msk.f32.gmra.mxu2 %vm176_vm1, %v998_v29 }
  0xa6   :  { %6779 = vmatmul.msk.f32.gmra.mxu3 %vm176_vm1, %v7661_v56  ;;  %v7881_v56 = vld [vmem:[%s11533_s0 + $0xc0] sm:$0xff] }
  0xa7   :  { %v7800_v30 = vpop.f32.mrf.mxu2 }
  0xa8   :  { %v7802_v31 = vpop.f32.mrf.mxu0 }
  0xa9   :  { %v576_v33 = vpop.f32.mrf.mxu3  ;;  %v7807_v34 = vpop.f32.mrf.mxu1 }
  0xaa   :  { %v137_v33 = vld [vmem:[%s11533_s0 + $0xd9] sm:$0xff] }
  0xab   :  { %6591 = vmatmul.msk.f32.gmra.mxu0 %vm176_vm1, %v131_v32 }
  0xac   :  { %6656 = vmatmul.msk.f32.gmra.mxu1 %vm176_vm1, %v7812_v35  ;;  %6714 = vmatmul.msk.f32.gmra.mxu2 %vm176_vm1, %v999_v36 }
  0xae   :  { %6780 = vmatmul.msk.f32.gmra.mxu3 %vm176_vm1, %v7677_v59 }
  0xaf   :  { %v7823_v37 = vpop.f32.mrf.mxu2 }
  0xb0   :  { %v7825_v38 = vpop.f32.mrf.mxu0 }
  0xb1   :  { %v579_v40 = vpop.f32.mrf.mxu3  ;;  %v7830_v41 = vpop.f32.mrf.mxu1 }
  0xb2   :  { %v7954_v40 = vld [vmem:[%s11533_s0 + $0xd8] sm:$0xff] }
  0xb3   :  { %6592 = vmatmul.msk.f32.gmra.mxu0 %vm176_vm1, %v132_v39 }
  0xb4   :  { %6657 = vmatmul.msk.f32.gmra.mxu1 %vm176_vm1, %v7835_v42  ;;  %6715 = vmatmul.msk.f32.gmra.mxu2 %vm176_vm1, %v1000_v43 }
  0xb6   :  { %6781 = vmatmul.msk.f32.gmra.mxu3 %vm176_vm1, %v7697_v0  ;;  %v135_v0 = vld [vmem:[%s11533_s0 + $0xc9] sm:$0xff] }
  0xb7   :  { %v7846_v44 = vpop.f32.mrf.mxu2 }
  0xb8   :  { %v7848_v45 = vpop.f32.mrf.mxu0 }
  0xb9   :  { %v7853_v47 = vpop.f32.mrf.mxu1  ;;  %v980_v48 = vpop.f32.mrf.mxu3 }
  0xbb   :  { %6593 = vmatmul.msk.f32.gmra.mxu0 %vm176_vm1, %v133_v46 }
  0xbc   :  { %6658 = vmatmul.msk.f32.gmra.mxu1 %vm176_vm1, %v7858_v49  ;;  %6716 = vmatmul.msk.f32.gmra.mxu2 %vm176_vm1, %v1001_v50  ;;  %v138_v50 = vld [vmem:[%s11533_s0 + $0xe1] sm:$0xff] }
  0xbe   :  { %6782 = vmatmul.msk.f32.gmra.mxu3 %vm176_vm1, %v7721_v7  ;;  %v7904_v7 = vld [vmem:[%s11533_s0 + $0xc8] sm:$0xff] }
  0xbf   :  { %v7869_v51 = vpop.f32.mrf.mxu2 }
  0xc0   :  { %v7871_v52 = vpop.f32.mrf.mxu0 }
  0xc1   :  { %v7876_v54 = vpop.f32.mrf.mxu1  ;;  %v983_v55 = vpop.f32.mrf.mxu3 }
  0xc3   :  { %6594 = vmatmul.msk.f32.gmra.mxu0 %vm176_vm1, %v134_v53 }
  0xc4   :  { %6659 = vmatmul.msk.f32.gmra.mxu1 %vm176_vm1, %v7881_v56  ;;  %6717 = vmatmul.msk.f32.gmra.mxu2 %vm176_vm1, %v1002_v57  ;;  %v7979_v57 = vld [vmem:[%s11533_s0 + $0xe0] sm:$0xff] }
  0xc6   :  { %6783 = vmatmul.msk.f32.gmra.mxu3 %vm176_vm1, %v7745_v14 }
  0xc7   :  { %v1264_v59 = vpop.f32.mrf.mxu2 }
  0xc8   :  { %v1456_v60 = vadd.f32 %v1264_v59, %v795_v58  ;;  %v7894_v62 = vpop.f32.mrf.mxu0 }
  0xc9   :  { %v7899_v1 = vpop.f32.mrf.mxu1  ;;  %v1798_v4 = vpop.f32.mrf.mxu3 }
  0xca   :  { %v7909_v63 = vadd.f32 %v1798_v4, %v1456_v60 }
  0xcb   :  { %6595 = vmatmul.msk.f32.gmra.mxu0 %vm176_vm1, %v135_v0  ;;  %v139_v0 = vld [vmem:[%s11533_s0 + $0xe9] sm:$0xff] }
  0xcc   :  { %6660 = vmatmul.msk.f32.gmra.mxu1 %vm176_vm1, %v7904_v7  ;;  %6718 = vmatmul.msk.f32.gmra.mxu2 %vm176_vm1, %v1003_v61 }
  0xce   :  { %6784 = vmatmul.msk.f32.gmra.mxu3 %vm176_vm1, %v7767_v21  ;;  %v801_v21 = vadd.f32 %v7740_v13, %v7733_v10  ;;  %v1005_v10 = vld [vmem:[%s11533_s0 + $0x9a] sm:$0xff] }
  0xcf   :  { %v1267_v11 = vpop.f32.mrf.mxu2 }
  0xd0   :  { %v1457_v14 = vadd.f32 %v1267_v11, %v798_v8  ;;  %v7919_v15 = vpop.f32.mrf.mxu0  ;;  %v8004_v8 = vld [vmem:[%s11533_s0 + $0xe8] sm:$0xff] }
  0xd1   :  { %v7924_v19 = vpop.f32.mrf.mxu1  ;;  %v1801_v22 = vpop.f32.mrf.mxu3 }
  0xd2   :  { %v7934_v6 = vadd.f32 %v1801_v22, %v1457_v14  ;;  %v140_v22 = vld [vmem:[%s11533_s0 + $0xf1] sm:$0xff] }
  0xd3   :  { %6596 = vmatmul.msk.f32.gmra.mxu0 %vm176_vm1, %v136_v18 }
  0xd4   :  { %6661 = vmatmul.msk.f32.gmra.mxu1 %vm176_vm1, %v7929_v25  ;;  %6719 = vmatmul.msk.f32.gmra.mxu2 %vm176_vm1, %v1004_v3 }
  0xd6   :  { %6785 = vmatmul.msk.f32.gmra.mxu3 %vm176_vm1, %v7789_v28  ;;  %v804_v28 = vadd.f32 %v7762_v20, %v7757_v17  ;;  %v1006_v17 = vld [vmem:[%s11533_s0 + $0xa2] sm:$0xff] }
  0xd7   :  { %v1270_v26 = vpop.f32.mrf.mxu2 }
  0xd8   :  { %v1458_v29 = vadd.f32 %v1270_v26, %v801_v21  ;;  %v7944_v32 = vpop.f32.mrf.mxu0  ;;  %v8029_v26 = vld [vmem:[%s11533_s0 + $0xf0] sm:$0xff] }
  0xd9   :  { %v7949_v36 = vpop.f32.mrf.mxu1  ;;  %v1804_v39 = vpop.f32.mrf.mxu3 }
  0xda   :  { %v7959_v13 = vadd.f32 %v1804_v39, %v1458_v29 }
  0xdb   :  { %6597 = vmatmul.msk.f32.gmra.mxu0 %vm176_vm1, %v137_v33 }
  0xdc   :  { %6662 = vmatmul.msk.f32.gmra.mxu1 %vm176_vm1, %v7954_v40  ;;  %6720 = vmatmul.msk.f32.gmra.mxu2 %vm176_vm1, %v1005_v10  ;;  %v141_v10 = vld [vmem:[%s11533_s0 + $0xf9] sm:$0xff] }
  0xde   :  { %6786 = vmatmul.msk.f32.gmra.mxu3 %vm176_vm1, %v7812_v35  ;;  %v807_v35 = vadd.f32 %v7784_v27, %v7779_v24  ;;  %v1007_v24 = vld [vmem:[%s11533_s0 + $0xaa] sm:$0xff] }
  0xdf   :  { %v1273_v43 = vpop.f32.mrf.mxu2 }
  0xe0   :  { %v1459_v46 = vadd.f32 %v1273_v43, %v804_v28  ;;  %v7969_v48 = vpop.f32.mrf.mxu0 }
  0xe1   :  { %v7974_v53 = vpop.f32.mrf.mxu1  ;;  %v1807_v55 = vpop.f32.mrf.mxu3 }
  0xe2   :  { %v7984_v20 = vadd.f32 %v1807_v55, %v1459_v46  ;;  %v8054_v46 = vld [vmem:[%s11533_s0 + $0xf8] sm:$0xff] }
  0xe3   :  { %6598 = vmatmul.msk.f32.gmra.mxu0 %vm176_vm1, %v138_v50 }
  0xe4   :  { %6663 = vmatmul.msk.f32.gmra.mxu1 %vm176_vm1, %v7979_v57  ;;  %6721 = vmatmul.msk.f32.gmra.mxu2 %vm176_vm1, %v1006_v17 }
  0xe6   :  { %6787 = vmatmul.msk.f32.gmra.mxu3 %vm176_vm1, %v7835_v42  ;;  %v810_v42 = vadd.f32 %v7807_v34, %v7802_v31  ;;  %v1008_v31 = vld [vmem:[%s11533_s0 + $0xb2] sm:$0xff] }
  0xe7   :  { %v1276_v58 = vpop.f32.mrf.mxu2 }
  0xe8   :  { %v1460_v59 = vadd.f32 %v1276_v58, %v807_v35  ;;  %v7994_v60 = vpop.f32.mrf.mxu0  ;;  %v142_v35 = vld [vmem:[%s11533_s0 + $0x101] sm:$0xff] }
  0xe9   :  { %v7999_v4 = vpop.f32.mrf.mxu1  ;;  %v1810_v61 = vpop.f32.mrf.mxu3 }
  0xea   :  { %v8009_v27 = vadd.f32 %v1810_v61, %v1460_v59 }
  0xeb   :  { %6599 = vmatmul.msk.f32.gmra.mxu0 %vm176_vm1, %v139_v0  ;;  %v8079_v0 = vld [vmem:[%s11533_s0 + $0x100] sm:$0xff] }
  0xec   :  { %6664 = vmatmul.msk.f32.gmra.mxu1 %vm176_vm1, %v8004_v8  ;;  %6722 = vmatmul.msk.f32.gmra.mxu2 %vm176_vm1, %v1007_v24 }
  0xee   :  { %6788 = vmatmul.msk.f32.gmra.mxu3 %vm176_vm1, %v7858_v49  ;;  %v813_v49 = vadd.f32 %v7830_v41, %v7825_v38  ;;  %v1009_v38 = vld [vmem:[%s11533_s0 + $0xba] sm:$0xff] }
  0xef   :  { %v1279_v11 = vpop.f32.mrf.mxu2 }
  0xf0   :  { %v1461_v14 = vadd.f32 %v1279_v11, %v810_v42  ;;  %v8019_v18 = vpop.f32.mrf.mxu0  ;;  %v143_v11 = vld [vmem:[%s11533_s0 + $0x109] sm:$0xff] }
  0xf1   :  { %v8024_v3 = vpop.f32.mrf.mxu1  ;;  %v1813_v21 = vpop.f32.mrf.mxu3 }
  0xf2   :  { %v8034_v34 = vadd.f32 %v1813_v21, %v1461_v14  ;;  %v8104_v21 = vld [vmem:[%s11533_s0 + $0x108] sm:$0xff] }
  0xf3   :  { %6600 = vmatmul.msk.f32.gmra.mxu0 %vm176_vm1, %v140_v22 }
  0xf4   :  { %6665 = vmatmul.msk.f32.gmra.mxu1 %vm176_vm1, %v8029_v26  ;;  %6723 = vmatmul.msk.f32.gmra.mxu2 %vm176_vm1, %v1008_v31 }
  0xf6   :  { %6789 = vmatmul.msk.f32.gmra.mxu3 %vm176_vm1, %v7881_v56  ;;  %v816_v56 = vadd.f32 %v7853_v47, %v7848_v45  ;;  %v1010_v45 = vld [vmem:[%s11533_s0 + $0xc2] sm:$0xff] }
  0xf7   :  { %v1282_v29 = vpop.f32.mrf.mxu2 }
  0xf8   :  { %v1462_v33 = vadd.f32 %v1282_v29, %v813_v49  ;;  %v8044_v39 = vpop.f32.mrf.mxu0 }
  0xf9   :  { %v8049_v28 = vpop.f32.mrf.mxu1  ;;  %v1816_v43 = vpop.f32.mrf.mxu3 }
  0xfa   :  { %v8059_v41 = vadd.f32 %v1816_v43, %v1462_v33  ;;  %v144_v33 = vld [vmem:[%s11533_s0 + $0x111] sm:$0xff] }
  0xfb   :  { %6601 = vmatmul.msk.f32.gmra.mxu0 %vm176_vm1, %v141_v10 }
  0xfc   :  { %11549 = vst [vmem:[#allocation8_spill] sm:$0xff] %v8059_v41  ;;  %6666 = vmatmul.msk.f32.gmra.mxu1 %vm176_vm1, %v8054_v46  ;;  %6724 = vmatmul.msk.f32.gmra.mxu2 %vm176_vm1, %v1009_v38  ;;  %v8129_v38 = vld [vmem:[%s11533_s0 + $0x110] sm:$0xff] }
  0xfe   :  { %6790 = vmatmul.msk.f32.gmra.mxu3 %vm176_vm1, %v7904_v7  ;;  %v819_v7 = vadd.f32 %v7876_v54, %v7871_v52  ;;  %v1011_v52 = vld [vmem:[%s11533_s0 + $0xca] sm:$0xff] }
  0xff   :  { %v1285_v50 = vpop.f32.mrf.mxu2 }
 0x100   :  { %v1463_v55 = vadd.f32 %v1285_v50, %v816_v56  ;;  %v8069_v17 = vpop.f32.mrf.mxu0 }
 0x101   :  { %v8074_v58 = vpop.f32.mrf.mxu1  ;;  %v1819_v59 = vpop.f32.mrf.mxu3 }
 0x102   :  { %v8084_v47 = vadd.f32 %v1819_v59, %v1463_v55 }
 0x103   :  { %6602 = vmatmul.msk.f32.gmra.mxu0 %vm176_vm1, %v142_v35  ;;  %v145_v35 = vld [vmem:[%s11533_s0 + $0x119] sm:$0xff] }
 0x104   :  { %11550 = vst [vmem:[#allocation9_spill] sm:$0xff] %v8084_v47  ;;  %6667 = vmatmul.msk.f32.gmra.mxu1 %vm176_vm1, %v8079_v0  ;;  %6725 = vmatmul.msk.f32.gmra.mxu2 %vm176_vm1, %v1010_v45 }
 0x106   :  { %6791 = vmatmul.msk.f32.gmra.mxu3 %vm176_vm1, %v7929_v25  ;;  %v822_v25 = vadd.f32 %v7899_v1, %v7894_v62  ;;  %v1012_v62 = vld [vmem:[%s11533_s0 + $0xd2] sm:$0xff] }
 0x107   :  { %v1288_v61 = vpop.f32.mrf.mxu2 }
 0x108   :  { %v1464_v24 = vadd.f32 %v1288_v61, %v819_v7  ;;  %v8094_v42 = vpop.f32.mrf.mxu0  ;;  %v8154_v7 = vld [vmem:[%s11533_s0 + $0x118] sm:$0xff] }
 0x109   :  { %v8099_v14 = vpop.f32.mrf.mxu1  ;;  %v1822_v22 = vpop.f32.mrf.mxu3 }
 0x10a   :  { %v8109_v54 = vadd.f32 %v1822_v22, %v1464_v24  ;;  %v146_v22 = vld [vmem:[%s11533_s0 + $0x121] sm:$0xff] }
 0x10b   :  { %6603 = vmatmul.msk.f32.gmra.mxu0 %vm176_vm1, %v143_v11 }
 0x10c   :  { %11551 = vst [vmem:[#allocation10_spill] sm:$0xff] %v8109_v54  ;;  %6668 = vmatmul.msk.f32.gmra.mxu1 %vm176_vm1, %v8104_v21  ;;  %6726 = vmatmul.msk.f32.gmra.mxu2 %vm176_vm1, %v1011_v52 }
 0x10e   :  { %6792 = vmatmul.msk.f32.gmra.mxu3 %vm176_vm1, %v7954_v40  ;;  %v825_v40 = vadd.f32 %v7924_v19, %v7919_v15  ;;  %v1013_v15 = vld [vmem:[%s11533_s0 + $0xda] sm:$0xff] }
 0x10f   :  { %v1291_v31 = vpop.f32.mrf.mxu2 }
 0x110   :  { %v1465_v49 = vadd.f32 %v1291_v31, %v822_v25  ;;  %v8119_v29 = vpop.f32.mrf.mxu0  ;;  %v8179_v31 = vld [vmem:[%s11533_s0 + $0x120] sm:$0xff] }
 0x111   :  { %v8124_v10 = vpop.f32.mrf.mxu1  ;;  %v1825_v43 = vpop.f32.mrf.mxu3 }
 0x112   :  { %v8134_v1 = vadd.f32 %v1825_v43, %v1465_v49 }
 0x113   :  { %6604 = vmatmul.msk.f32.gmra.mxu0 %vm176_vm1, %v144_v33 }
 0x114   :  { %11552 = vst [vmem:[#allocation11_spill] sm:$0xff] %v8134_v1  ;;  %6669 = vmatmul.msk.f32.gmra.mxu1 %vm176_vm1, %v8129_v38  ;;  %6727 = vmatmul.msk.f32.gmra.mxu2 %vm176_vm1, %v1012_v62  ;;  %v147_v62 = vld [vmem:[%s11533_s0 + $0x129] sm:$0xff] }
 0x116   :  { %6793 = vmatmul.msk.f32.gmra.mxu3 %vm176_vm1, %v7979_v57  ;;  %v828_v57 = vadd.f32 %v7949_v36, %v7944_v32  ;;  %v1014_v32 = vld [vmem:[%s11533_s0 + $0xe2] sm:$0xff] }
 0x117   :  { %v1294_v56 = vpop.f32.mrf.mxu2 }
 0x118   :  { %v1466_v50 = vadd.f32 %v1294_v56, %v825_v40  ;;  %v8144_v55 = vpop.f32.mrf.mxu0 }
 0x119   :  { %v8149_v59 = vpop.f32.mrf.mxu1  ;;  %v1828_v45 = vpop.f32.mrf.mxu3 }
 0x11a   :  { %v8159_v19 = vadd.f32 %v1828_v45, %v1466_v50  ;;  %v8204_v50 = vld [vmem:[%s11533_s0 + $0x128] sm:$0xff] }
 0x11b   :  { %6605 = vmatmul.msk.f32.gmra.mxu0 %vm176_vm1, %v145_v35 }
 0x11c   :  { %11553 = vst [vmem:[#allocation12_spill] sm:$0xff] %v8159_v19  ;;  %6670 = vmatmul.msk.f32.gmra.mxu1 %vm176_vm1, %v8154_v7  ;;  %6728 = vmatmul.msk.f32.gmra.mxu2 %vm176_vm1, %v1013_v15 }
 0x11e   :  { %6794 = vmatmul.msk.f32.gmra.mxu3 %vm176_vm1, %v8004_v8  ;;  %v831_v8 = vadd.f32 %v7974_v53, %v7969_v48  ;;  %v1015_v48 = vld [vmem:[%s11533_s0 + $0xea] sm:$0xff] }
 0x11f   :  { %v1297_v61 = vpop.f32.mrf.mxu2 }
 0x120   :  { %v1467_v24 = vadd.f32 %v1297_v61, %v828_v57  ;;  %v8169_v11 = vpop.f32.mrf.mxu0  ;;  %v148_v57 = vld [vmem:[%s11533_s0 + $0x131] sm:$0xff] }
 0x121   :  { %v8174_v52 = vpop.f32.mrf.mxu1  ;;  %v1831_v25 = vpop.f32.mrf.mxu3 }
 0x122   :  { %v8184_v36 = vadd.f32 %v1831_v25, %v1467_v24 }
 0x123   :  { %6606 = vmatmul.msk.f32.gmra.mxu0 %vm176_vm1, %v146_v22  ;;  %v8229_v22 = vld [vmem:[%s11533_s0 + $0x130] sm:$0xff] }
 0x124   :  { %11554 = vst [vmem:[#allocation13_spill] sm:$0xff] %v8184_v36  ;;  %6671 = vmatmul.msk.f32.gmra.mxu1 %vm176_vm1, %v8179_v31  ;;  %6729 = vmatmul.msk.f32.gmra.mxu2 %vm176_vm1, %v1014_v32 }
 0x126   :  { %6795 = vmatmul.msk.f32.gmra.mxu3 %vm176_vm1, %v8029_v26  ;;  %v834_v26 = vadd.f32 %v7999_v4, %v7994_v60  ;;  %v1016_v60 = vld [vmem:[%s11533_s0 + $0xf2] sm:$0xff] }
 0x127   :  { %v1300_v49 = vpop.f32.mrf.mxu2 }
 0x128   :  { %v1468_v33 = vadd.f32 %v1300_v49, %v831_v8  ;;  %v8194_v43 = vpop.f32.mrf.mxu0  ;;  %v149_v49 = vld [vmem:[%s11533_s0 + $0x139] sm:$0xff] }
 0x129   :  { %v8199_v40 = vpop.f32.mrf.mxu1  ;;  %v1834_v56 = vpop.f32.mrf.mxu3 }
 0x12a   :  { %v8209_v53 = vadd.f32 %v1834_v56, %v1468_v33  ;;  %v8254_v56 = vld [vmem:[%s11533_s0 + $0x138] sm:$0xff] }
 0x12b   :  { %6607 = vmatmul.msk.f32.gmra.mxu0 %vm176_vm1, %v147_v62 }
 0x12c   :  { %11555 = vst [vmem:[#allocation14_spill] sm:$0xff] %v8209_v53  ;;  %6672 = vmatmul.msk.f32.gmra.mxu1 %vm176_vm1, %v8204_v50  ;;  %6730 = vmatmul.msk.f32.gmra.mxu2 %vm176_vm1, %v1015_v48 }
 0x12e   :  { %6796 = vmatmul.msk.f32.gmra.mxu3 %vm176_vm1, %v8054_v46  ;;  %v837_v46 = vadd.f32 %v8024_v3, %v8019_v18  ;;  %v1017_v18 = vld [vmem:[%s11533_s0 + $0xfa] sm:$0xff] }
 0x12f   :  { %v1303_v35 = vpop.f32.mrf.mxu2 }
 0x130   :  { %v1469_v45 = vadd.f32 %v1303_v35, %v834_v26  ;;  %v8219_v15 = vpop.f32.mrf.mxu0 }
 0x131   :  { %v8224_v61 = vpop.f32.mrf.mxu1  ;;  %v1837_v24 = vpop.f32.mrf.mxu3 }
 0x132   :  { %v8234_v4 = vadd.f32 %v1837_v24, %v1469_v45  ;;  %v150_v45 = vld [vmem:[%s11533_s0 + $0x141] sm:$0xff] }
 0x133   :  { %6608 = vmatmul.msk.f32.gmra.mxu0 %vm176_vm1, %v148_v57 }
 0x134   :  { %11556 = vst [vmem:[#allocation15_spill] sm:$0xff] %v8234_v4  ;;  %6673 = vmatmul.msk.f32.gmra.mxu1 %vm176_vm1, %v8229_v22  ;;  %6731 = vmatmul.msk.f32.gmra.mxu2 %vm176_vm1, %v1016_v60  ;;  %v8279_v60 = vld [vmem:[%s11533_s0 + $0x140] sm:$0xff] }
 0x136   :  { %6797 = vmatmul.msk.f32.gmra.mxu3 %vm176_vm1, %v8079_v0  ;;  %v840_v0 = vadd.f32 %v8049_v28, %v8044_v39  ;;  %v1018_v39 = vld [vmem:[%s11533_s0 + $0x102] sm:$0xff] }
 0x137   :  { %v1306_v25 = vpop.f32.mrf.mxu2 }
 0x138   :  { %v1470_v32 = vadd.f32 %v1306_v25, %v837_v46  ;;  %v8244_v8 = vpop.f32.mrf.mxu0 }
 0x139   :  { %v8249_v33 = vpop.f32.mrf.mxu1  ;;  %v1840_v62 = vpop.f32.mrf.mxu3 }
 0x13a   :  { %v8259_v3 = vadd.f32 %v1840_v62, %v1470_v32 }
 0x13b   :  { %6609 = vmatmul.msk.f32.gmra.mxu0 %vm176_vm1, %v149_v49  ;;  %v151_v49 = vld [vmem:[%s11533_s0 + $0x149] sm:$0xff] }
 0x13c   :  { %11557 = vst [vmem:[#allocation16_spill] sm:$0xff] %v8259_v3  ;;  %6674 = vmatmul.msk.f32.gmra.mxu1 %vm176_vm1, %v8254_v56  ;;  %6732 = vmatmul.msk.f32.gmra.mxu2 %vm176_vm1, %v1017_v18 }
 0x13e   :  { %6798 = vmatmul.msk.f32.gmra.mxu3 %vm176_vm1, %v8104_v21  ;;  %v843_v21 = vadd.f32 %v8074_v58, %v8069_v17  ;;  %v1019_v17 = vld [vmem:[%s11533_s0 + $0x10a] sm:$0xff] }
 0x13f   :  { %v1309_v48 = vpop.f32.mrf.mxu2 }
 0x140   :  { %v1471_v26 = vadd.f32 %v1309_v48, %v840_v0  ;;  %v8269_v35 = vpop.f32.mrf.mxu0  ;;  %v8304_v0 = vld [vmem:[%s11533_s0 + $0x148] sm:$0xff] }
 0x141   :  { %v8274_v57 = vpop.f32.mrf.mxu1  ;;  %v1843_v24 = vpop.f32.mrf.mxu3 }
 0x142   :  { %v8284_v28 = vadd.f32 %v1843_v24, %v1471_v26  ;;  %v152_v24 = vld [vmem:[%s11533_s0 + $0x151] sm:$0xff] }
 0x143   :  { %6610 = vmatmul.msk.f32.gmra.mxu0 %vm176_vm1, %v150_v45 }
 0x144   :  { %11558 = vst [vmem:[#allocation17_spill] sm:$0xff] %v8284_v28  ;;  %6675 = vmatmul.msk.f32.gmra.mxu1 %vm176_vm1, %v8279_v60  ;;  %6733 = vmatmul.msk.f32.gmra.mxu2 %vm176_vm1, %v1018_v39 }
 0x146   :  { %6799 = vmatmul.msk.f32.gmra.mxu3 %vm176_vm1, %v8129_v38  ;;  %v846_v38 = vadd.f32 %v8099_v14, %v8094_v42  ;;  %v1020_v42 = vld [vmem:[%s11533_s0 + $0x112] sm:$0xff] }
 0x147   :  { %v1312_v46 = vpop.f32.mrf.mxu2 }
 0x148   :  { %v1472_v25 = vadd.f32 %v1312_v46, %v843_v21  ;;  %v8294_v32 = vpop.f32.mrf.mxu0  ;;  %v8329_v46 = vld [vmem:[%s11533_s0 + $0x150] sm:$0xff] }
 0x149   :  { %v8299_v62 = vpop.f32.mrf.mxu1  ;;  %v1846_v18 = vpop.f32.mrf.mxu3 }
 0x14a   :  { %v8309_v58 = vadd.f32 %v1846_v18, %v1472_v25 }
 0x14b   :  { %6611 = vmatmul.msk.f32.gmra.mxu0 %vm176_vm1, %v151_v49 }
 0x14c   :  { %11559 = vst [vmem:[#allocation18_spill] sm:$0xff] %v8309_v58  ;;  %6676 = vmatmul.msk.f32.gmra.mxu1 %vm176_vm1, %v8304_v0  ;;  %6734 = vmatmul.msk.f32.gmra.mxu2 %vm176_vm1, %v1019_v17  ;;  %v153_v17 = vld [vmem:[%s11533_s0 + $0x159] sm:$0xff] }
 0x14e   :  { %6800 = vmatmul.msk.f32.gmra.mxu3 %vm176_vm1, %v8154_v7  ;;  %v849_v7 = vadd.f32 %v8124_v10, %v8119_v29  ;;  %v1021_v29 = vld [vmem:[%s11533_s0 + $0x11a] sm:$0xff] }
 0x14f   :  { %v1315_v48 = vpop.f32.mrf.mxu2 }
 0x150   :  { %v1473_v26 = vadd.f32 %v1315_v48, %v846_v38  ;;  %v8319_v45 = vpop.f32.mrf.mxu0 }
 0x151   :  { %v8324_v39 = vpop.f32.mrf.mxu1  ;;  %v1849_v21 = vpop.f32.mrf.mxu3 }
 0x152   :  { %v8334_v14 = vadd.f32 %v1849_v21, %v1473_v26  ;;  %v8354_v26 = vld [vmem:[%s11533_s0 + $0x158] sm:$0xff] }
 0x153   :  { %6612 = vmatmul.msk.f32.gmra.mxu0 %vm176_vm1, %v152_v24 }
 0x154   :  { %11560 = vst [vmem:[#allocation19_spill] sm:$0xff] %v8334_v14  ;;  %6677 = vmatmul.msk.f32.gmra.mxu1 %vm176_vm1, %v8329_v46  ;;  %6735 = vmatmul.msk.f32.gmra.mxu2 %vm176_vm1, %v1020_v42 }
 0x156   :  { %6801 = vmatmul.msk.f32.gmra.mxu3 %vm176_vm1, %v8179_v31  ;;  %v852_v31 = vadd.f32 %v8149_v59, %v8144_v55  ;;  %v1022_v55 = vld [vmem:[%s11533_s0 + $0x122] sm:$0xff] }
 0x157   :  { %v1318_v25 = vpop.f32.mrf.mxu2 }
 0x158   :  { %v1474_v49 = vadd.f32 %v1318_v25, %v849_v7  ;;  %v8344_v18 = vpop.f32.mrf.mxu0  ;;  %v154_v7 = vld [vmem:[%s11533_s0 + $0x161] sm:$0xff] }
 0x159   :  { %v8349_v38 = vpop.f32.mrf.mxu1  ;;  %v1852_v48 = vpop.f32.mrf.mxu3 }
 0x15a   :  { %v8359_v10 = vadd.f32 %v1852_v48, %v1474_v49 }
 0x15b   :  { %6613 = vmatmul.msk.f32.gmra.mxu0 %vm176_vm1, %v153_v17  ;;  %v8375_v17 = vld [vmem:[%s11533_s0 + $0x160] sm:$0xff] }
 0x15c   :  { %11561 = vst [vmem:[#allocation20_spill] sm:$0xff] %v8359_v10  ;;  %6678 = vmatmul.msk.f32.gmra.mxu1 %vm176_vm1, %v8354_v26  ;;  %6736 = vmatmul.msk.f32.gmra.mxu2 %vm176_vm1, %v1021_v29  ;;  %v8698_v10 = vld [vmem:[%s11533_s0 + $0x49] sm:$0xff] }
 0x15e   :  { %6802 = vmatmul.msk.f32.gmra.mxu3 %vm176_vm1, %v8204_v50  ;;  %v855_v50 = vadd.f32 %v8174_v52, %v8169_v11  ;;  %v1023_v11 = vld [vmem:[%s11533_s0 + $0x12a] sm:$0xff] }
 0x15f   :  { %v1321_v24 = vpop.f32.mrf.mxu2 }
 0x160   :  { %v1475_v21 = vadd.f32 %v1321_v24, %v852_v31  ;;  %v474_v42 = vpop.f32.mrf.mxu0  ;;  %v155_v24 = vld [vmem:[%s11533_s0 + $0x169] sm:$0xff] }
 0x161   :  { %v878_v25 = vpop.f32.mrf.mxu1  ;;  %v1855_v49 = vpop.f32.mrf.mxu3 }
 0x162   :  { %v8380_v59 = vadd.f32 %v1855_v49, %v1475_v21  ;;  %v7029_v25 = vld [vmem:[%s11534_s1 + $0x1c] sm:$0xf]  ;;  %v858_v49 = vadd.f32 %v8199_v40, %v8194_v43  ;;  %v1024_v43 = vld [vmem:[%s11533_s0 + $0x132] sm:$0xff] }
 0x163   :  { %6614 = vmatmul.msk.f32.gmra.mxu0 %vm176_vm1, %v154_v7  ;;  %v8396_v7 = vld [vmem:[%s11533_s0 + $0x168] sm:$0xff]  ;;  %7030 = vmatpush.msk.msrb.mxu3 %vm369_vm0, %v7029_v25 }
 0x164   :  { %11562 = vst [vmem:[#allocation21_spill] sm:$0xff] %v8380_v59  ;;  %6679 = vmatmul.msk.f32.gmra.mxu1 %vm176_vm1, %v8375_v17  ;;  %6737 = vmatmul.msk.f32.gmra.mxu2 %vm176_vm1, %v1022_v55 }
 0x166   :  { %6803 = vmatmul.msk.f32.gmra.mxu3 %vm176_vm1, %v8229_v22  ;;  %v6963_v22 = vld [vmem:[%s11534_s1 + $0x18] sm:$0xf] }
 0x167   :  { %v1324_v48 = vpop.f32.mrf.mxu2  ;;  %6964 = vmatpush.msk.msra.mxu2 %vm369_vm0, %v6963_v22 }
 0x168   :  { %v1476_v29 = vadd.f32 %v1324_v48, %v855_v50  ;;  %v477_v31 = vpop.f32.mrf.mxu0 }
 0x169   :  { %v881_v21 = vpop.f32.mrf.mxu1  ;;  %v1858_v42 = vpop.f32.mrf.mxu3 }
 0x16a   :  { %v8401_v52 = vadd.f32 %v1858_v42, %v1476_v29  ;;  %v156_v29 = vld [vmem:[%s11533_s0 + $0x171] sm:$0xff]  ;;  %v861_v42 = vadd.f32 %v8224_v61, %v8219_v15  ;;  %v1025_v15 = vld [vmem:[%s11533_s0 + $0x13a] sm:$0xff] }
 0x16b   :  { %6615 = vmatmul.msk.f32.gmra.mxu0 %vm176_vm1, %v155_v24  ;;  %v8425_v21 = vld [vmem:[%s11533_s0 + $0x170] sm:$0xff] }
 0x16c   :  { %11563 = vst [vmem:[#allocation22_spill] sm:$0xff] %v8401_v52  ;;  %6680 = vmatmul.msk.f32.gmra.mxu1 %vm176_vm1, %v8396_v7  ;;  %6738 = vmatmul.msk.f32.gmra.mxu2 %vm176_vm1, %v1023_v11  ;;  %v8679_v52 = vld [vmem:[%s11533_s0 + $0x1c0] sm:$0xff] }
 0x16e   :  { %6804 = vmatmul.msk.f32.gmra.mxu3 %vm176_vm1, %v8254_v56  ;;  %v7095_v56 = vld [vmem:[%s11534_s1 + $0x20] sm:$0xf] }
 0x16f   :  { %v1327_v55 = vpop.f32.mrf.mxu2  ;;  %7096 = vmatpush.msk.msra.mxu0 %vm369_vm0, %v7095_v56  ;;  %v158_v56 = vld [vmem:[%s11533_s0 + $0x181] sm:$0xff] }
 0x170   :  { %v1477_v50 = vadd.f32 %v1327_v55, %v858_v49  ;;  %v480_v48 = vpop.f32.mrf.mxu0  ;;  %v157_v49 = vld [vmem:[%s11533_s0 + $0x179] sm:$0xff] }
 0x171   :  { %v884_v31 = vpop.f32.mrf.mxu1  ;;  %v1861_v24 = vpop.f32.mrf.mxu3  ;;  %v8450_v48 = vld [vmem:[%s11533_s0 + $0x178] sm:$0xff] }
 0x172   :  { %v8430_v40 = vadd.f32 %v1861_v24, %v1477_v50 }
 0x173   :  { %6616 = vmatmul.msk.f32.gmra.mxu0 %vm176_vm1, %v156_v29  ;;  %v6897_v29 = vld [vmem:[%s11534_s1 + $0x14] sm:$0xf] }
 0x174   :  { %11564 = vst [vmem:[#allocation23_spill] sm:$0xff] %v8430_v40  ;;  %6681 = vmatmul.msk.f32.gmra.mxu1 %vm176_vm1, %v8425_v21  ;;  %6739 = vmatmul.msk.f32.gmra.mxu2 %vm176_vm1, %v1024_v43 }
 0x175   :  { %6898 = vmatpush.msk.msrb.mxu1 %vm369_vm0, %v6897_v29  ;;  %v8504_v29 = vld [vmem:[%s11533_s0 + $0x188] sm:$0xff] }
 0x176   :  { %6805 = vmatmul.msk.f32.gmra.mxu3 %vm176_vm1, %v8279_v60  ;;  %v864_v60 = vadd.f32 %v8249_v33, %v8244_v8  ;;  %v8479_v33 = vld [vmem:[%s11533_s0 + $0x180] sm:$0xff] }
 0x177   :  { %v1330_v11 = vpop.f32.mrf.mxu2 }
 0x178   :  { %v1478_v22 = vadd.f32 %v1330_v11, %v861_v42  ;;  %v483_v25 = vpop.f32.mrf.mxu0 }
 0x179   :  { %v887_v55 = vpop.f32.mrf.mxu1  ;;  %v1864_v50 = vpop.f32.mrf.mxu3 }
 0x17a   :  { %v8455_v61 = vadd.f32 %v1864_v50, %v1478_v22  ;;  %v867_v22 = vadd.f32 %v8274_v57, %v8269_v35  ;;  %v159_v50 = vld [vmem:[%s11533_s0 + $0x189] sm:$0xff] }
 0x17b   :  { %6617 = vmatmul.msk.f32.gmra.mxu0 %vm176_vm1, %v157_v49  ;;  %v1027_v35 = vld [vmem:[%s11533_s0 + $0x14a] sm:$0xff] }
 0x17c   :  { %11565 = vst [vmem:[#allocation24_spill] sm:$0xff] %v8455_v61  ;;  %6682 = vmatmul.msk.f32.gmra.mxu1 %vm176_vm1, %v8450_v48  ;;  %6740 = vmatmul.msk.f32.gmra.mxu2 %vm176_vm1, %v1025_v15 }
 0x17e   :  { %6806 = vmatmul.msk.f32.gmra.mxu3 %vm176_vm1, %v8304_v0  ;;  %v1026_v0 = vld [vmem:[%s11533_s0 + $0x142] sm:$0xff] }
 0x17f   :  { %v1333_v31 = vpop.f32.mrf.mxu2 }
 0x180   :  { %v1479_v24 = vadd.f32 %v1333_v31, %v864_v60  ;;  %v8469_v43 = vpop.f32.mrf.mxu0 }
 0x181   :  { %v8474_v42 = vpop.f32.mrf.mxu1  ;;  %v1867_v8 = vpop.f32.mrf.mxu3 }
 0x182   :  { %v8484_v11 = vadd.f32 %v1867_v8, %v1479_v24  ;;  %v2054_v8 = vld [vmem:[%s11533_s0 + $0x11] sm:$0xff] }
 0x183   :  { %6618 = vmatmul.msk.f32.gmra.mxu0 %vm176_vm1, %v158_v56 }
 0x184   :  { %11566 = vst [vmem:[#allocation25_spill] sm:$0xff] %v8484_v11  ;;  %6683 = vmatmul.msk.f32.gmra.mxu1 %vm176_vm1, %v8479_v33  ;;  %6741 = vmatmul.msk.f32.gmra.mxu2 %vm176_vm1, %v1026_v0  ;;  %v8655_v11 = vld [vmem:[%s11533_s0 + $0x1b8] sm:$0xff] }
 0x186   :  { %6807 = vmatmul.msk.f32.gmra.mxu3 %vm176_vm1, %v8329_v46  ;;  %v870_v46 = vadd.f32 %v8299_v62, %v8294_v32  ;;  %v1028_v32 = vld [vmem:[%s11533_s0 + $0x152] sm:$0xff] }
 0x187   :  { %v1336_v25 = vpop.f32.mrf.mxu2 }
 0x188   :  { %v1480_v49 = vadd.f32 %v1336_v25, %v867_v22  ;;  %v8494_v55 = vpop.f32.mrf.mxu0  ;;  %v8529_v25 = vld [vmem:[%s11533_s0 + $0x190] sm:$0xff] }
 0x189   :  { %v8499_v15 = vpop.f32.mrf.mxu1  ;;  %v1870_v60 = vpop.f32.mrf.mxu3 }
 0x18a   :  { %v8509_v57 = vadd.f32 %v1870_v60, %v1480_v49 }
 0x18b   :  { %6619 = vmatmul.msk.f32.gmra.mxu0 %vm176_vm1, %v159_v50 }
 0x18c   :  { %11567 = vst [vmem:[#allocation26_spill] sm:$0xff] %v8509_v57  ;;  %6684 = vmatmul.msk.f32.gmra.mxu1 %vm176_vm1, %v8504_v29  ;;  %6742 = vmatmul.msk.f32.gmra.mxu2 %vm176_vm1, %v1027_v35  ;;  %v2055_v35 = vld [vmem:[%s11533_s0 + $0x19] sm:$0xff] }
 0x18e   :  { %6808 = vmatmul.msk.f32.gmra.mxu3 %vm176_vm1, %v8354_v26  ;;  %v873_v26 = vadd.f32 %v8324_v39, %v8319_v45  ;;  %v1029_v45 = vld [vmem:[%s11533_s0 + $0x15a] sm:$0xff] }
 0x18f   :  { %v1339_v31 = vpop.f32.mrf.mxu2 }
 0x190   :  { %v1481_v24 = vadd.f32 %v1339_v31, %v870_v46  ;;  %v8519_v56 = vpop.f32.mrf.mxu0 }
 0x191   :  { %v8524_v0 = vpop.f32.mrf.mxu1  ;;  %v1873_v22 = vpop.f32.mrf.mxu3 }
 0x192   :  { %v8534_v62 = vadd.f32 %v1873_v22, %v1481_v24  ;;  %v8554_v24 = vld [vmem:[%s11533_s0 + $0x198] sm:$0xff] }
 0x193   :  { %6833 = vmatmul.msk.f32.vlgmr.msrb.gmra.mxu0 %vm176_vm1, %v2054_v8 }
 0x194   :  { %11568 = vst [vmem:[#allocation27_spill] sm:$0xff] %v8534_v62  ;;  %6685 = vmatmul.msk.f32.gmra.mxu1 %vm176_vm1, %v8529_v25  ;;  %6743 = vmatmul.msk.f32.gmra.mxu2 %vm176_vm1, %v1028_v32 }
 0x196   :  { %6809 = vmatmul.msk.f32.gmra.mxu3 %vm176_vm1, %v8375_v17  ;;  %v876_v17 = vadd.f32 %v8349_v38, %v8344_v18  ;;  %v1030_v18 = vld [vmem:[%s11533_s0 + $0x162] sm:$0xff] }
 0x197   :  { %v1342_v49 = vpop.f32.mrf.mxu2 }
 0x198   :  { %v1482_v50 = vadd.f32 %v1342_v49, %v873_v26  ;;  %v8544_v60 = vpop.f32.mrf.mxu0  ;;  %v8574_v26 = vld [vmem:[%s11533_s0 + $0x21] sm:$0xff] }
 0x199   :  { %v8549_v46 = vpop.f32.mrf.mxu1  ;;  %v1876_v31 = vpop.f32.mrf.mxu3 }
 0x19a   :  { %v8559_v39 = vadd.f32 %v1876_v31, %v1482_v50 }
 0x19b   :  { %6834 = vmatmul.msk.f32.gmra.mxu0 %vm176_vm1, %v2055_v35  ;;  %v8581_v35 = vld [vmem:[%s11533_s0 + $0x1a0] sm:$0xff] }
 0x19c   :  { %11569 = vst [vmem:[#allocation28_spill] sm:$0xff] %v8559_v39  ;;  %6686 = vmatmul.msk.f32.gmra.mxu1 %vm176_vm1, %v8554_v24  ;;  %6744 = vmatmul.msk.f32.gmra.mxu2 %vm176_vm1, %v1029_v45  ;;  %v8600_v45 = vld [vmem:[%s11533_s0 + $0x29] sm:$0xff] }
 0x19d   :  { %v8631_v39 = vld [vmem:[%s11533_s0 + $0x1b0] sm:$0xff] }
 0x19e   :  { %6810 = vmatmul.msk.f32.gmra.mxu3 %vm176_vm1, %v8396_v7 }
 0x19f   :  { %v1345_v8 = vpop.f32.mrf.mxu2 }
 0x1a0   :  { %v1483_v22 = vadd.f32 %v1345_v8, %v876_v17  ;;  %v8569_v32 = vpop.f32.mrf.mxu0 }
 0x1a1   :  { %v8576_v49 = vpop.f32.mrf.mxu1  ;;  %v1879_v50 = vpop.f32.mrf.mxu3 }
 0x1a2   :  { %v8586_v38 = vadd.f32 %v1879_v50, %v1483_v22  ;;  %v8607_v22 = vld [vmem:[%s11533_s0 + $0x1a8] sm:$0xff] }
 0x1a3   :  { %6835 = vmatmul.msk.f32.gmra.mxu0 %vm176_vm1, %v8574_v26 }
 0x1a4   :  { %11570 = vst [vmem:[#allocation29_spill] sm:$0xff] %v8586_v38  ;;  %6687 = vmatmul.msk.f32.gmra.mxu1 %vm176_vm1, %v8581_v35  ;;  %6745 = vmatmul.msk.f32.gmra.mxu2 %vm176_vm1, %v1030_v18 }
 0x1a6   :  { %6811 = vmatmul.msk.f32.gmra.mxu3 %vm176_vm1, %v8425_v21  ;;  %v1031_v21 = vld [vmem:[%s11533_s0 + $0x16a] sm:$0xff] }
 0x1a7   :  { %v1348_v7 = vpop.f32.mrf.mxu2 }
 0x1a8   :  { %v8595_v31 = vpop.f32.mrf.mxu0  ;;  %v8624_v7 = vld [vmem:[%s11533_s0 + $0x31] sm:$0xff] }
 0x1a9   :  { %v8602_v17 = vpop.f32.mrf.mxu1  ;;  %v1882_v8 = vpop.f32.mrf.mxu3 }
 0x1ab   :  { %6836 = vmatmul.msk.f32.gmra.mxu0 %vm176_vm1, %v8600_v45 }
 0x1ac   :  { %6688 = vmatmul.msk.f32.gmra.mxu1 %vm176_vm1, %v8607_v22  ;;  %6746 = vmatmul.msk.f32.gmra.mxu2 %vm176_vm1, %v1031_v21 }
 0x1ae   :  { %6812 = vmatmul.msk.f32.gmra.mxu3 %vm176_vm1, %v8450_v48  ;;  %v1032_v48 = vld [vmem:[%s11533_s0 + $0x172] sm:$0xff] }
 0x1af   :  { %v1351_v50 = vpop.f32.mrf.mxu2 }
 0x1b0   :  { %v8619_v18 = vpop.f32.mrf.mxu0  ;;  %v8648_v50 = vld [vmem:[%s11533_s0 + $0x39] sm:$0xff] }
 0x1b1   :  { %v8626_v8 = vpop.f32.mrf.mxu1  ;;  %v1885_v38 = vpop.f32.mrf.mxu3 }
 0x1b3   :  { %6837 = vmatmul.msk.f32.gmra.mxu0 %vm176_vm1, %v8624_v7 }
 0x1b4   :  { %6689 = vmatmul.msk.f32.gmra.mxu1 %vm176_vm1, %v8631_v39  ;;  %6747 = vmatmul.msk.f32.gmra.mxu2 %vm176_vm1, %v1032_v48 }
 0x1b6   :  { %6813 = vmatmul.msk.f32.gmra.mxu3 %vm176_vm1, %v8479_v33  ;;  %v1033_v33 = vld [vmem:[%s11533_s0 + $0x17a] sm:$0xff] }
 0x1b7   :  { %v1354_v38 = vpop.f32.mrf.mxu2 }
 0x1b8   :  { %v8643_v21 = vpop.f32.mrf.mxu0  ;;  %v8672_v38 = vld [vmem:[%s11533_s0 + $0x41] sm:$0xff] }
 0x1b9   :  { %v8650_v62 = vpop.f32.mrf.mxu1  ;;  %v1888_v57 = vpop.f32.mrf.mxu3 }
 0x1bb   :  { %6838 = vmatmul.msk.f32.gmra.mxu0 %vm176_vm1, %v8648_v50 }
 0x1bc   :  { %6690 = vmatmul.msk.f32.gmra.mxu1 %vm176_vm1, %v8655_v11  ;;  %6748 = vmatmul.msk.f32.gmra.mxu2 %vm176_vm1, %v1033_v33 }
 0x1be   :  { %6814 = vmatmul.msk.f32.gmra.mxu3 %vm176_vm1, %v8504_v29  ;;  %v1034_v29 = vld [vmem:[%s11533_s0 + $0x182] sm:$0xff] }
 0x1bf   :  { %v1357_v57 = vpop.f32.mrf.mxu2 }
 0x1c0   :  { %v8667_v48 = vpop.f32.mrf.mxu0 }
 0x1c1   :  { %v8674_v61 = vpop.f32.mrf.mxu1  ;;  %v1891_v40 = vpop.f32.mrf.mxu3 }
 0x1c2   :  { %v891_v40 = vadd.f32 %v8474_v42, %v8469_v43  ;;  %v1035_v43 = vld [vmem:[%s11533_s0 + $0x18a] sm:$0xff] }
 0x1c3   :  { %6839 = vmatmul.msk.f32.gmra.mxu0 %vm176_vm1, %v8672_v38 }
 0x1c4   :  { %6691 = vmatmul.msk.f32.gmra.mxu1 %vm176_vm1, %v8679_v52  ;;  %6749 = vmatmul.msk.f32.gmra.mxu2 %vm176_vm1, %v1034_v29  ;;  %v8705_v29 = vld [vmem:[%s11533_s0 + $0x1c8] sm:$0xff] }
 0x1c6   :  { %6815 = vmatmul.msk.f32.gmra.mxu3 %vm176_vm1, %v8529_v25  ;;  %v894_v25 = vadd.f32 %v8499_v15, %v8494_v55  ;;  %v1036_v55 = vld [vmem:[%s11533_s0 + $0x192] sm:$0xff] }
 0x1c7   :  { %v1360_v33 = vpop.f32.mrf.mxu2 }
 0x1c8   :  { %v1488_v57 = vadd.f32 %v1360_v33, %v891_v40  ;;  %v8693_v59 = vpop.f32.mrf.mxu0 }
 0x1c9   :  { %v8700_v14 = vpop.f32.mrf.mxu1  ;;  %v1894_v58 = vpop.f32.mrf.mxu3 }
 0x1ca   :  { %v8710_v42 = vadd.f32 %v1894_v58, %v1488_v57  ;;  %v8726_v58 = vld [vmem:[%s11533_s0 + $0x51] sm:$0xff] }
 0x1cb   :  { %6840 = vmatmul.msk.f32.gmra.mxu0 %vm176_vm1, %v8698_v10 }
 0x1cc   :  { %11571 = vst [vmem:[#allocation30_spill] sm:$0xff] %v8710_v42  ;;  %6692 = vmatmul.msk.f32.gmra.mxu1 %vm176_vm1, %v8705_v29  ;;  %6750 = vmatmul.msk.f32.gmra.mxu2 %vm176_vm1, %v1035_v43  ;;  %v8733_v43 = vld [vmem:[%s11533_s0 + $0x1d0] sm:$0xff] }
 0x1ce   :  { %6816 = vmatmul.msk.f32.gmra.mxu3 %vm176_vm1, %v8554_v24  ;;  %v897_v24 = vadd.f32 %v8524_v0, %v8519_v56  ;;  %v1037_v56 = vld [vmem:[%s11533_s0 + $0x19a] sm:$0xff] }
 0x1cf   :  { %v1363_v40 = vpop.f32.mrf.mxu2 }
 0x1d0   :  { %v1489_v33 = vadd.f32 %v1363_v40, %v894_v25  ;;  %v8721_v28 = vpop.f32.mrf.mxu0 }
 0x1d1   :  { %v8728_v57 = vpop.f32.mrf.mxu1  ;;  %v1897_v42 = vpop.f32.mrf.mxu3 }
 0x1d2   :  { %v8738_v15 = vadd.f32 %v1897_v42, %v1489_v33  ;;  %v8754_v42 = vld [vmem:[%s11533_s0 + $0x59] sm:$0xff] }
 0x1d3   :  { %6841 = vmatmul.msk.f32.gmra.mxu0 %vm176_vm1, %v8726_v58 }
 0x1d4   :  { %11572 = vst [vmem:[#allocation31_spill] sm:$0xff] %v8738_v15  ;;  %6693 = vmatmul.msk.f32.gmra.mxu1 %vm176_vm1, %v8733_v43  ;;  %6751 = vmatmul.msk.f32.gmra.mxu2 %vm176_vm1, %v1036_v55  ;;  %v8761_v55 = vld [vmem:[%s11533_s0 + $0x1d8] sm:$0xff] }
 0x1d6   :  { %6817 = vmatmul.msk.f32.gmra.mxu3 %vm176_vm1, %v8581_v35  ;;  %v900_v35 = vadd.f32 %v8549_v46, %v8544_v60  ;;  %v1038_v60 = vld [vmem:[%s11533_s0 + $0x1a2] sm:$0xff] }
 0x1d7   :  { %v1366_v25 = vpop.f32.mrf.mxu2 }
 0x1d8   :  { %v1490_v40 = vadd.f32 %v1366_v25, %v897_v24  ;;  %v8749_v3 = vpop.f32.mrf.mxu0 }
 0x1d9   :  { %v8756_v33 = vpop.f32.mrf.mxu1  ;;  %v1900_v15 = vpop.f32.mrf.mxu3 }
 0x1da   :  { %v8766_v0 = vadd.f32 %v1900_v15, %v1490_v40  ;;  %v8782_v15 = vld [vmem:[%s11533_s0 + $0x61] sm:$0xff] }
 0x1db   :  { %6842 = vmatmul.msk.f32.gmra.mxu0 %vm176_vm1, %v8754_v42 }
 0x1dc   :  { %11573 = vst [vmem:[#allocation32_spill] sm:$0xff] %v8766_v0  ;;  %6694 = vmatmul.msk.f32.gmra.mxu1 %vm176_vm1, %v8761_v55  ;;  %6752 = vmatmul.msk.f32.gmra.mxu2 %vm176_vm1, %v1037_v56  ;;  %v8789_v56 = vld [vmem:[%s11533_s0 + $0x1e0] sm:$0xff] }
 0x1de   :  { %6818 = vmatmul.msk.f32.gmra.mxu3 %vm176_vm1, %v8607_v22  ;;  %v903_v22 = vadd.f32 %v8576_v49, %v8569_v32  ;;  %v906_v49 = vadd.f32 %v8602_v17, %v8595_v31  ;;  %v909_v17 = vadd.f32 %v8626_v8, %v8619_v18  ;;  %v912_v8 = vadd.f32 %v8650_v62, %v8643_v21  ;;  %v2590_v62 = vld [vmem:[%s11533_s0 + $0x22] sm:$0xff] }
 0x1df   :  { %v1369_v24 = vpop.f32.mrf.mxu2 }
 0x1e0   :  { %v1491_v25 = vadd.f32 %v1369_v24, %v900_v35  ;;  %v8777_v4 = vpop.f32.mrf.mxu0 }
 0x1e1   :  { %v8784_v40 = vpop.f32.mrf.mxu1  ;;  %v1903_v0 = vpop.f32.mrf.mxu3 }
 0x1e2   :  { %v8794_v46 = vadd.f32 %v1903_v0, %v1491_v25  ;;  %v8810_v0 = vld [vmem:[%s11533_s0 + $0x69] sm:$0xff] }
 0x1e3   :  { %6843 = vmatmul.msk.f32.gmra.mxu0 %vm176_vm1, %v8782_v15 }
 0x1e4   :  { %11574 = vst [vmem:[#allocation33_spill] sm:$0xff] %v8794_v46  ;;  %6695 = vmatmul.msk.f32.gmra.mxu1 %vm176_vm1, %v8789_v56  ;;  %6753 = vmatmul.msk.f32.gmra.mxu2 %vm176_vm1, %v1038_v60  ;;  %v8817_v60 = vld [vmem:[%s11533_s0 + $0x1e8] sm:$0xff] }
 0x1e6   :  { %6819 = vmatmul.msk.f32.gmra.mxu3 %vm176_vm1, %v8631_v39  ;;  %v1039_v39 = vld [vmem:[%s11533_s0 + $0x1aa] sm:$0xff] }
 0x1e7   :  { %v1372_v35 = vpop.f32.mrf.mxu2 }
 0x1e8   :  { %v1492_v24 = vadd.f32 %v1372_v35, %v903_v22  ;;  %v8805_v53 = vpop.f32.mrf.mxu0 }
 0x1e9   :  { %v8812_v25 = vpop.f32.mrf.mxu1  ;;  %v1906_v46 = vpop.f32.mrf.mxu3 }
 0x1ea   :  { %v8822_v32 = vadd.f32 %v1906_v46, %v1492_v24  ;;  %v8838_v46 = vld [vmem:[%s11533_s0 + $0x71] sm:$0xff] }
 0x1eb   :  { %6844 = vmatmul.msk.f32.gmra.mxu0 %vm176_vm1, %v8810_v0 }
 0x1ec   :  { %11575 = vst [vmem:[#allocation34_spill] sm:$0xff] %v8822_v32  ;;  %6696 = vmatmul.msk.f32.gmra.mxu1 %vm176_vm1, %v8817_v60  ;;  %6754 = vmatmul.msk.f32.gmra.mxu2 %vm176_vm1, %v1039_v39  ;;  %v1040_v39 = vld [vmem:[%s11533_s0 + $0x1b2] sm:$0xff] }
 0x1ee   :  { %6820 = vmatmul.msk.f32.gmra.mxu3 %vm176_vm1, %v8655_v11  ;;  %v2588_v11 = vld [vmem:[%s11533_s0 + $0x12] sm:$0xff] }
 0x1ef   :  { %v1375_v22 = vpop.f32.mrf.mxu2 }
 0x1f0   :  { %v1493_v35 = vadd.f32 %v1375_v22, %v906_v49  ;;  %v8833_v36 = vpop.f32.mrf.mxu0 }
 0x1f1   :  { %v8840_v24 = vpop.f32.mrf.mxu1  ;;  %v1909_v32 = vpop.f32.mrf.mxu3 }
 0x1f2   :  { %v8848_v31 = vadd.f32 %v1909_v32, %v1493_v35  ;;  %v8863_v32 = vld [vmem:[%s11533_s0 + $0x79] sm:$0xff] }
 0x1f3   :  { %6845 = vmatmul.msk.f32.gmra.mxu0 %vm176_vm1, %v8838_v46 }
 0x1f4   :  { %11576 = vst [vmem:[#allocation35_spill] sm:$0xff] %v8848_v31  ;;  %6755 = vmatmul.msk.f32.gmra.mxu2 %vm176_vm1, %v1040_v39  ;;  %6899 = vmatmul.msk.f32.vlgmr.msrb.gmra.mxu1 %vm176_vm1, %v2588_v11  ;;  %v1041_v11 = vld [vmem:[%s11533_s0 + $0x1ba] sm:$0xff] }
 0x1f6   :  { %6821 = vmatmul.msk.f32.gmra.mxu3 %vm176_vm1, %v8679_v52  ;;  %v2589_v52 = vld [vmem:[%s11533_s0 + $0x1a] sm:$0xff] }
 0x1f7   :  { %v1378_v49 = vpop.f32.mrf.mxu2 }
 0x1f8   :  { %v1494_v22 = vadd.f32 %v1378_v49, %v909_v17  ;;  %v8858_v19 = vpop.f32.mrf.mxu0 }
 0x1f9   :  { %v8865_v35 = vpop.f32.mrf.mxu1  ;;  %v1912_v39 = vpop.f32.mrf.mxu3 }
 0x1fa   :  { %v8873_v18 = vadd.f32 %v1912_v39, %v1494_v22  ;;  %v8888_v22 = vld [vmem:[%s11533_s0 + $0x81] sm:$0xff] }
 0x1fb   :  { %6846 = vmatmul.msk.f32.gmra.mxu0 %vm176_vm1, %v8863_v32 }
 0x1fc   :  { %11577 = vst [vmem:[#allocation36_spill] sm:$0xff] %v8873_v18  ;;  %6756 = vmatmul.msk.f32.gmra.mxu2 %vm176_vm1, %v1041_v11  ;;  %6900 = vmatmul.msk.f32.gmra.mxu1 %vm176_vm1, %v2589_v52  ;;  %v1042_v52 = vld [vmem:[%s11533_s0 + $0x1c2] sm:$0xff] }
 0x1fe   :  { %6822 = vmatmul.msk.f32.gmra.mxu3 %vm176_vm1, %v8705_v29  ;;  %v915_v29 = vadd.f32 %v8674_v61, %v8667_v48  ;;  %v2591_v61 = vld [vmem:[%s11533_s0 + $0x2a] sm:$0xff] }
 0x1ff   :  { %v1381_v17 = vpop.f32.mrf.mxu2 }
 0x200   :  { %v1495_v49 = vadd.f32 %v1381_v17, %v912_v8  ;;  %v8883_v31 = vpop.f32.mrf.mxu0 }
 0x201   :  { %v8890_v39 = vpop.f32.mrf.mxu1  ;;  %v1915_v11 = vpop.f32.mrf.mxu3 }
 0x202   :  { %v8898_v21 = vadd.f32 %v1915_v11, %v1495_v49  ;;  %v8913_v49 = vld [vmem:[%s11533_s0 + $0x89] sm:$0xff] }
 0x203   :  { %6847 = vmatmul.msk.f32.gmra.mxu0 %vm176_vm1, %v8888_v22 }
 0x204   :  { %11578 = vst [vmem:[#allocation37_spill] sm:$0xff] %v8898_v21  ;;  %6757 = vmatmul.msk.f32.gmra.mxu2 %vm176_vm1, %v1042_v52  ;;  %6901 = vmatmul.msk.f32.gmra.mxu1 %vm176_vm1, %v2590_v62  ;;  %v1043_v62 = vld [vmem:[%s11533_s0 + $0x1ca] sm:$0xff] }
 0x206   :  { %6823 = vmatmul.msk.f32.gmra.mxu3 %vm176_vm1, %v8733_v43  ;;  %v918_v43 = vadd.f32 %v8700_v14, %v8693_v59  ;;  %v2592_v14 = vld [vmem:[%s11533_s0 + $0x32] sm:$0xff] }
 0x207   :  { %v1384_v8 = vpop.f32.mrf.mxu2 }
 0x208   :  { %v1496_v17 = vadd.f32 %v1384_v8, %v915_v29  ;;  %v8908_v18 = vpop.f32.mrf.mxu0 }
 0x209   :  { %v8915_v11 = vpop.f32.mrf.mxu1  ;;  %v1918_v52 = vpop.f32.mrf.mxu3 }
 0x20a   :  { %v8923_v48 = vadd.f32 %v1918_v52, %v1496_v17  ;;  %v8938_v17 = vld [vmem:[%s11533_s0 + $0x91] sm:$0xff] }
 0x20b   :  { %6848 = vmatmul.msk.f32.gmra.mxu0 %vm176_vm1, %v8913_v49 }
 0x20c   :  { %11579 = vst [vmem:[#allocation38_spill] sm:$0xff] %v8923_v48  ;;  %6758 = vmatmul.msk.f32.gmra.mxu2 %vm176_vm1, %v1043_v62  ;;  %6902 = vmatmul.msk.f32.gmra.mxu1 %vm176_vm1, %v2591_v61  ;;  %v1044_v61 = vld [vmem:[%s11533_s0 + $0x1d2] sm:$0xff] }
 0x20e   :  { %6824 = vmatmul.msk.f32.gmra.mxu3 %vm176_vm1, %v8761_v55  ;;  %v921_v55 = vadd.f32 %v8728_v57, %v8721_v28  ;;  %v2593_v28 = vld [vmem:[%s11533_s0 + $0x3a] sm:$0xff] }
 0x20f   :  { %v1387_v29 = vpop.f32.mrf.mxu2 }
 0x210   :  { %v1497_v8 = vadd.f32 %v1387_v29, %v918_v43  ;;  %v8933_v21 = vpop.f32.mrf.mxu0 }
 0x211   :  { %v8940_v52 = vpop.f32.mrf.mxu1  ;;  %v1921_v62 = vpop.f32.mrf.mxu3 }
 0x212   :  { %v8948_v59 = vadd.f32 %v1921_v62, %v1497_v8  ;;  %v8963_v8 = vld [vmem:[%s11533_s0 + $0x99] sm:$0xff] }
 0x213   :  { %6849 = vmatmul.msk.f32.gmra.mxu0 %vm176_vm1, %v8938_v17 }
 0x214   :  { %11580 = vst [vmem:[#allocation39_spill] sm:$0xff] %v8948_v59  ;;  %6759 = vmatmul.msk.f32.gmra.mxu2 %vm176_vm1, %v1044_v61  ;;  %6903 = vmatmul.msk.f32.gmra.mxu1 %vm176_vm1, %v2592_v14  ;;  %v1045_v14 = vld [vmem:[%s11533_s0 + $0x1da] sm:$0xff] }
 0x216   :  { %6825 = vmatmul.msk.f32.gmra.mxu3 %vm176_vm1, %v8789_v56  ;;  %v924_v56 = vadd.f32 %v8756_v33, %v8749_v3  ;;  %v2594_v3 = vld [vmem:[%s11533_s0 + $0x42] sm:$0xff] }
 0x217   :  { %v1390_v43 = vpop.f32.mrf.mxu2 }
 0x218   :  { %v1498_v29 = vadd.f32 %v1390_v43, %v921_v55  ;;  %v8958_v48 = vpop.f32.mrf.mxu0 }
 0x219   :  { %v8965_v62 = vpop.f32.mrf.mxu1  ;;  %v1924_v61 = vpop.f32.mrf.mxu3 }
 0x21a   :  { %v8973_v57 = vadd.f32 %v1924_v61, %v1498_v29  ;;  %v8988_v29 = vld [vmem:[%s11533_s0 + $0xa1] sm:$0xff] }
 0x21b   :  { %6850 = vmatmul.msk.f32.gmra.mxu0 %vm176_vm1, %v8963_v8 }
 0x21c   :  { %11581 = vst [vmem:[#allocation40_spill] sm:$0xff] %v8973_v57  ;;  %6760 = vmatmul.msk.f32.gmra.mxu2 %vm176_vm1, %v1045_v14  ;;  %6904 = vmatmul.msk.f32.gmra.mxu1 %vm176_vm1, %v2593_v28  ;;  %v1046_v28 = vld [vmem:[%s11533_s0 + $0x1e2] sm:$0xff] }
 0x21e   :  { %6826 = vmatmul.msk.f32.gmra.mxu3 %vm176_vm1, %v8817_v60  ;;  %v1580_v60 = vld [vmem:[%s11533_s0 + $0x1f0] sm:$0xff] }
 0x21f   :  { %v1393_v55 = vpop.f32.mrf.mxu2 }
 0x220   :  { %v1499_v43 = vadd.f32 %v1393_v55, %v924_v56  ;;  %v8983_v59 = vpop.f32.mrf.mxu0  ;;  %v927_v56 = vadd.f32 %v8784_v40, %v8777_v4  ;;  %v2595_v4 = vld [vmem:[%s11533_s0 + $0x4a] sm:$0xff] }
 0x221   :  { %v8990_v61 = vpop.f32.mrf.mxu1  ;;  %v1927_v14 = vpop.f32.mrf.mxu3 }
 0x222   :  { %v8998_v33 = vadd.f32 %v1927_v14, %v1499_v43  ;;  %v9015_v14 = vld [vmem:[%s11533_s0 + $0xa9] sm:$0xff] }
 0x223   :  { %6851 = vmatmul.msk.f32.gmra.mxu0 %vm176_vm1, %v8988_v29 }
 0x224   :  { %11582 = vst [vmem:[#allocation41_spill] sm:$0xff] %v8998_v33  ;;  %6761 = vmatmul.msk.f32.gmra.mxu2 %vm176_vm1, %v1046_v28  ;;  %6905 = vmatmul.msk.f32.gmra.mxu1 %vm176_vm1, %v2594_v3  ;;  %v1047_v28 = vld [vmem:[%s11533_s0 + $0x1ea] sm:$0xff]  ;;  %v1581_v3 = vld [vmem:[%s11533_s0 + $0x1f8] sm:$0xff] }
 0x226   :  { %6827 = vmatmul.msk.f32.gmra.mxu3 %vm176_vm1, %v1580_v60  ;;  %v930_v60 = vadd.f32 %v8812_v25, %v8805_v53  ;;  %v2596_v53 = vld [vmem:[%s11533_s0 + $0x52] sm:$0xff] }
 0x227   :  { %v1396_v55 = vpop.f32.mrf.mxu2 }
 0x228   :  { %v1500_v57 = vadd.f32 %v1396_v55, %v927_v56  ;;  %v9010_v43 = vpop.f32.mrf.mxu0 }
 0x229   :  { %v9017_v33 = vpop.f32.mrf.mxu1  ;;  %v1930_v1 = vpop.f32.mrf.mxu3 }
 0x22a   :  { %v9025_v40 = vadd.f32 %v1930_v1, %v1500_v57  ;;  %v9042_v57 = vld [vmem:[%s11533_s0 + $0xb1] sm:$0xff] }
 0x22b   :  { %6852 = vmatmul.msk.f32.gmra.mxu0 %vm176_vm1, %v9015_v14 }
 0x22c   :  { %11583 = vst [vmem:[#allocation42_spill] sm:$0xff] %v9025_v40  ;;  %6762 = vmatmul.msk.f32.gmra.mxu2 %vm176_vm1, %v1047_v28  ;;  %6906 = vmatmul.msk.f32.gmra.mxu1 %vm176_vm1, %v2595_v4  ;;  %v1048_v28 = vld [vmem:[%s11533_s0 + $0x1f2] sm:$0xff]  ;;  %v1582_v4 = vld [vmem:[%s11533_s0 + $0x200] sm:$0xff] }
 0x22e   :  { %6828 = vmatmul.msk.f32.gmra.mxu3 %vm176_vm1, %v1581_v3  ;;  %v933_v3 = vadd.f32 %v8840_v24, %v8833_v36  ;;  %v2597_v36 = vld [vmem:[%s11533_s0 + $0x5a] sm:$0xff] }
 0x22f   :  { %v1399_v56 = vpop.f32.mrf.mxu2 }
 0x230   :  { %v1501_v55 = vadd.f32 %v1399_v56, %v930_v60  ;;  %v9037_v1 = vpop.f32.mrf.mxu0 }
 0x231   :  { %v9044_v40 = vpop.f32.mrf.mxu1  ;;  %v1933_v54 = vpop.f32.mrf.mxu3 }
 0x232   :  { %v9052_v25 = vadd.f32 %v1933_v54, %v1501_v55  ;;  %v9069_v55 = vld [vmem:[%s11533_s0 + $0xb9] sm:$0xff] }
 0x233   :  { %6853 = vmatmul.msk.f32.gmra.mxu0 %vm176_vm1, %v9042_v57 }
 0x234   :  { %11584 = vst [vmem:[#allocation43_spill] sm:$0xff] %v9052_v25  ;;  %6763 = vmatmul.msk.f32.gmra.mxu2 %vm176_vm1, %v1048_v28  ;;  %6907 = vmatmul.msk.f32.gmra.mxu1 %vm176_vm1, %v2596_v53  ;;  %v1049_v28 = vld [vmem:[%s11533_s0 + $0x1fa] sm:$0xff]  ;;  %v1583_v53 = vld [vmem:[%s11533_s0 + $0x208] sm:$0xff] }
 0x236   :  { %6829 = vmatmul.msk.f32.gmra.mxu3 %vm176_vm1, %v1582_v4  ;;  %v936_v4 = vadd.f32 %v8865_v35, %v8858_v19  ;;  %v3122_v19 = vld [vmem:[%s11533_s0 + $0x20] sm:$0xff] }
 0x237   :  { %v1402_v60 = vpop.f32.mrf.mxu2 }
 0x238   :  { %v1502_v56 = vadd.f32 %v1402_v60, %v933_v3  ;;  %v9064_v54 = vpop.f32.mrf.mxu0 }
 0x239   :  { %v9071_v25 = vpop.f32.mrf.mxu1  ;;  %v1936_v47 = vpop.f32.mrf.mxu3 }
 0x23a   :  { %v9079_v24 = vadd.f32 %v1936_v47, %v1502_v56  ;;  %v9096_v56 = vld [vmem:[%s11533_s0 + $0xc1] sm:$0xff] }
 0x23b   :  { %6854 = vmatmul.msk.f32.gmra.mxu0 %vm176_vm1, %v9069_v55 }
 0x23c   :  { %11585 = vst [vmem:[#allocation44_spill] sm:$0xff] %v9079_v24  ;;  %6764 = vmatmul.msk.f32.gmra.mxu2 %vm176_vm1, %v1049_v28  ;;  %6908 = vmatmul.msk.f32.gmra.mxu1 %vm176_vm1, %v2597_v36  ;;  %v2598_v28 = vld [vmem:[%s11533_s0 + $0x62] sm:$0xff]  ;;  %v939_v36 = vadd.f32 %v8890_v39, %v8883_v31  ;;  %v942_v39 = vadd.f32 %v8915_v11, %v8908_v18 }
 0x23d   :  { %v945_v11 = vadd.f32 %v8940_v52, %v7707_v2  ;;  %v3125_v2 = vld [vmem:[%s11533_s0 + $0x38] sm:$0xff]  ;;  %v948_v52 = vadd.f32 %v8965_v62, %v7731_v9  ;;  %v3126_v9 = vld [vmem:[%s11533_s0 + $0x40] sm:$0xff]  ;;  %v951_v62 = vadd.f32 %v8990_v61, %v7755_v16  ;;  %v3127_v16 = vld [vmem:[%s11533_s0 + $0x48] sm:$0xff]  ;;  %v954_v61 = vadd.f32 %v9017_v33, %v7777_v23 }
 0x23e   :  { %6830 = vmatmul.msk.f32.gmra.mxu3 %vm176_vm1, %v1583_v53  ;;  %v3128_v23 = vld [vmem:[%s11533_s0 + $0x50] sm:$0xff]  ;;  %v957_v33 = vadd.f32 %v9044_v40, %v7800_v30  ;;  %v3129_v30 = vld [vmem:[%s11533_s0 + $0x58] sm:$0xff]  ;;  %v960_v40 = vadd.f32 %v9071_v25, %v7823_v37  ;;  %v3130_v37 = vld [vmem:[%s11533_s0 + $0x60] sm:$0xff] }
 0x23f   :  { %v1405_v3 = vpop.f32.mrf.mxu2 }
 0x240   :  { %v1503_v60 = vadd.f32 %v1405_v3, %v936_v4  ;;  %v9091_v47 = vpop.f32.mrf.mxu0 }
 0x241   :  { %v9098_v24 = vpop.f32.mrf.mxu1  ;;  %v1939_v41 = vpop.f32.mrf.mxu3 }
 0x242   :  { %v9106_v35 = vadd.f32 %v1939_v41, %v1503_v60  ;;  %v9121_v41 = vld [vmem:[%s11533_s0 + $0xc9] sm:$0xff]  ;;  %v963_v25 = vadd.f32 %v9098_v24, %v7846_v44 }
 0x243   :  { %6855 = vmatmul.msk.f32.gmra.mxu0 %vm176_vm1, %v9096_v56  ;;  %v3131_v44 = vld [vmem:[%s11533_s0 + $0x68] sm:$0xff] }
 0x244   :  { %11586 = vst [vmem:[#allocation45_spill] sm:$0xff] %v9106_v35  ;;  %6909 = vmatmul.msk.f32.gmra.mxu1 %vm176_vm1, %v2598_v28  ;;  %6965 = vmatmul.msk.f32.vlgmr.msra.gmra.mxu2 %vm176_vm1, %v3122_v19  ;;  %v2599_v19 = vld [vmem:[%s11533_s0 + $0x6a] sm:$0xff] }
 0x246   :  { %7031 = vmatmul.msk.f32.vlgmr.msrb.gmra.mxu3 %vm176_vm1, %v8574_v26  ;;  %v3123_v26 = vld [vmem:[%s11533_s0 + $0x28] sm:$0xff] }
 0x247   :  { %v1408_v53 = vpop.f32.mrf.mxu2 }
 0x248   :  { %v1504_v4 = vadd.f32 %v1408_v53, %v939_v36  ;;  %v9116_v3 = vpop.f32.mrf.mxu0 }
 0x249   :  { %v9123_v60 = vpop.f32.mrf.mxu1  ;;  %v1942_v28 = vpop.f32.mrf.mxu3 }
 0x24a   :  { %v9131_v31 = vadd.f32 %v1942_v28, %v1504_v4  ;;  %v9146_v4 = vld [vmem:[%s11533_s0 + $0xd1] sm:$0xff]  ;;  %v966_v24 = vadd.f32 %v9123_v60, %v7869_v51 }
 0x24b   :  { %6856 = vmatmul.msk.f32.gmra.mxu0 %vm176_vm1, %v9121_v41  ;;  %v3132_v51 = vld [vmem:[%s11533_s0 + $0x70] sm:$0xff] }
 0x24c   :  { %11587 = vst [vmem:[#allocation46_spill] sm:$0xff] %v9131_v31  ;;  %6910 = vmatmul.msk.f32.gmra.mxu1 %vm176_vm1, %v2599_v19  ;;  %6966 = vmatmul.msk.f32.gmra.mxu2 %vm176_vm1, %v3123_v26  ;;  %v2600_v26 = vld [vmem:[%s11533_s0 + $0x72] sm:$0xff] }
 0x24e   :  { %7032 = vmatmul.msk.f32.gmra.mxu3 %vm176_vm1, %v8600_v45  ;;  %v3124_v45 = vld [vmem:[%s11533_s0 + $0x30] sm:$0xff] }
 0x24f   :  { %v1411_v36 = vpop.f32.mrf.mxu2 }
 0x250   :  { %v1505_v53 = vadd.f32 %v1411_v36, %v942_v39  ;;  %v9141_v35 = vpop.f32.mrf.mxu0 }
 0x251   :  { %v9148_v28 = vpop.f32.mrf.mxu1  ;;  %v1945_v19 = vpop.f32.mrf.mxu3 }
 0x252   :  { %v9156_v18 = vadd.f32 %v1945_v19, %v1505_v53  ;;  %v9171_v53 = vld [vmem:[%s11533_s0 + $0xd9] sm:$0xff]  ;;  %v969_v60 = vadd.f32 %v9148_v28, %v7714_v5 }
 0x253   :  { %6857 = vmatmul.msk.f32.gmra.mxu0 %vm176_vm1, %v9146_v4  ;;  %v3133_v5 = vld [vmem:[%s11533_s0 + $0x78] sm:$0xff] }
 0x254   :  { %11588 = vst [vmem:[#allocation47_spill] sm:$0xff] %v9156_v18  ;;  %6911 = vmatmul.msk.f32.gmra.mxu1 %vm176_vm1, %v2600_v26  ;;  %6967 = vmatmul.msk.f32.gmra.mxu2 %vm176_vm1, %v3124_v45  ;;  %v2601_v45 = vld [vmem:[%s11533_s0 + $0x7a] sm:$0xff] }
 0x256   :  { %7033 = vmatmul.msk.f32.gmra.mxu3 %vm176_vm1, %v8624_v7 }
 0x257   :  { %v1414_v39 = vpop.f32.mrf.mxu2 }
 0x258   :  { %v1506_v36 = vadd.f32 %v1414_v39, %v945_v11  ;;  %v9166_v31 = vpop.f32.mrf.mxu0 }
 0x259   :  { %v9173_v19 = vpop.f32.mrf.mxu1  ;;  %v1948_v26 = vpop.f32.mrf.mxu3 }
 0x25a   :  { %v9181_v7 = vadd.f32 %v1948_v26, %v1506_v36  ;;  %v9196_v36 = vld [vmem:[%s11533_s0 + $0xe1] sm:$0xff]  ;;  %v972_v28 = vadd.f32 %v9173_v19, %v7738_v12 }
 0x25b   :  { %6858 = vmatmul.msk.f32.gmra.mxu0 %vm176_vm1, %v9171_v53  ;;  %v3134_v12 = vld [vmem:[%s11533_s0 + $0x80] sm:$0xff] }
 0x25c   :  { %11589 = vst [vmem:[#allocation48_spill] sm:$0xff] %v9181_v7  ;;  %6912 = vmatmul.msk.f32.gmra.mxu1 %vm176_vm1, %v2601_v45  ;;  %6968 = vmatmul.msk.f32.gmra.mxu2 %vm176_vm1, %v3125_v2  ;;  %v2602_v45 = vld [vmem:[%s11533_s0 + $0x82] sm:$0xff] }
 0x25e   :  { %7034 = vmatmul.msk.f32.gmra.mxu3 %vm176_vm1, %v8648_v50 }
 0x25f   :  { %v1417_v11 = vpop.f32.mrf.mxu2 }
 0x260   :  { %v1507_v39 = vadd.f32 %v1417_v11, %v948_v52  ;;  %v9191_v18 = vpop.f32.mrf.mxu0 }
 0x261   :  { %v974_v26 = vpop.f32.mrf.mxu1  ;;  %v1951_v7 = vpop.f32.mrf.mxu3 }
 0x262   :  { %v9204_v50 = vadd.f32 %v1951_v7, %v1507_v39  ;;  %v9219_v7 = vld [vmem:[%s11533_s0 + $0xe9] sm:$0xff] }
 0x263   :  { %6859 = vmatmul.msk.f32.gmra.mxu0 %vm176_vm1, %v9196_v36 }
 0x264   :  { %11590 = vst [vmem:[#allocation49_spill] sm:$0xff] %v9204_v50  ;;  %6913 = vmatmul.msk.f32.gmra.mxu1 %vm176_vm1, %v2602_v45  ;;  %6969 = vmatmul.msk.f32.gmra.mxu2 %vm176_vm1, %v3126_v9  ;;  %v2603_v45 = vld [vmem:[%s11533_s0 + $0x8a] sm:$0xff]  ;;  %v9478_v50 = vld [vmem:[%s11533_s0 + $0x141] sm:$0xff] }
 0x265   :  { %11603 = vst [vmem:[#allocation62_spill] sm:$0xff] %v9478_v50 }
 0x266   :  { %7035 = vmatmul.msk.f32.gmra.mxu3 %vm176_vm1, %v8672_v38 }
 0x267   :  { %v1420_v2 = vpop.f32.mrf.mxu2 }
 0x268   :  { %v1508_v52 = vadd.f32 %v1420_v2, %v951_v62  ;;  %v9214_v11 = vpop.f32.mrf.mxu0 }
 0x269   :  { %v977_v39 = vpop.f32.mrf.mxu1  ;;  %v1954_v26 = vpop.f32.mrf.mxu3 }
 0x26a   :  { %v9227_v38 = vadd.f32 %v1954_v26, %v1508_v52  ;;  %v9242_v52 = vld [vmem:[%s11533_s0 + $0xf1] sm:$0xff] }
 0x26b   :  { %6860 = vmatmul.msk.f32.gmra.mxu0 %vm176_vm1, %v9219_v7 }
 0x26c   :  { %11591 = vst [vmem:[#allocation50_spill] sm:$0xff] %v9227_v38  ;;  %6914 = vmatmul.msk.f32.gmra.mxu1 %vm176_vm1, %v2603_v45  ;;  %6970 = vmatmul.msk.f32.gmra.mxu2 %vm176_vm1, %v3127_v16  ;;  %v2604_v45 = vld [vmem:[%s11533_s0 + $0x92] sm:$0xff] }
 0x26e   :  { %7036 = vmatmul.msk.f32.gmra.mxu3 %vm176_vm1, %v8698_v10 }
 0x26f   :  { %v1423_v9 = vpop.f32.mrf.mxu2 }
 0x270   :  { %v1509_v62 = vadd.f32 %v1423_v9, %v954_v61  ;;  %v9237_v2 = vpop.f32.mrf.mxu0 }
 0x271   :  { %v1957_v39 = vpop.f32.mrf.mxu3  ;;  %v9244_v26 = vpop.f32.mrf.mxu1 }
 0x272   :  { %v9252_v10 = vadd.f32 %v1957_v39, %v1509_v62  ;;  %v9267_v62 = vld [vmem:[%s11533_s0 + $0xf9] sm:$0xff] }
 0x273   :  { %6861 = vmatmul.msk.f32.gmra.mxu0 %vm176_vm1, %v9242_v52 }
 0x274   :  { %11592 = vst [vmem:[#allocation51_spill] sm:$0xff] %v9252_v10  ;;  %6915 = vmatmul.msk.f32.gmra.mxu1 %vm176_vm1, %v2604_v45  ;;  %6971 = vmatmul.msk.f32.gmra.mxu2 %vm176_vm1, %v3128_v23  ;;  %v2605_v45 = vld [vmem:[%s11533_s0 + $0x9a] sm:$0xff] }
 0x276   :  { %7037 = vmatmul.msk.f32.gmra.mxu3 %vm176_vm1, %v8726_v58 }
 0x277   :  { %v1426_v16 = vpop.f32.mrf.mxu2 }
 0x278   :  { %v1510_v61 = vadd.f32 %v1426_v16, %v957_v33  ;;  %v9262_v9 = vpop.f32.mrf.mxu0 }
 0x279   :  { %v1960_v39 = vpop.f32.mrf.mxu3  ;;  %v9269_v10 = vpop.f32.mrf.mxu1 }
 0x27a   :  { %v9277_v58 = vadd.f32 %v1960_v39, %v1510_v61  ;;  %v9292_v61 = vld [vmem:[%s11533_s0 + $0x101] sm:$0xff] }
 0x27b   :  { %6862 = vmatmul.msk.f32.gmra.mxu0 %vm176_vm1, %v9267_v62 }
 0x27c   :  { %11593 = vst [vmem:[#allocation52_spill] sm:$0xff] %v9277_v58  ;;  %6916 = vmatmul.msk.f32.gmra.mxu1 %vm176_vm1, %v2605_v45  ;;  %6972 = vmatmul.msk.f32.gmra.mxu2 %vm176_vm1, %v3129_v30  ;;  %v2606_v45 = vld [vmem:[%s11533_s0 + $0xa2] sm:$0xff] }
 0x27e   :  { %7038 = vmatmul.msk.f32.gmra.mxu3 %vm176_vm1, %v8754_v42 }
 0x27f   :  { %v1429_v23 = vpop.f32.mrf.mxu2 }
 0x280   :  { %v1511_v33 = vadd.f32 %v1429_v23, %v960_v40  ;;  %v9287_v16 = vpop.f32.mrf.mxu0 }
 0x281   :  { %v1963_v39 = vpop.f32.mrf.mxu3  ;;  %v9294_v58 = vpop.f32.mrf.mxu1 }
 0x282   :  { %v9302_v42 = vadd.f32 %v1963_v39, %v1511_v33  ;;  %v9317_v33 = vld [vmem:[%s11533_s0 + $0x109] sm:$0xff] }
 0x283   :  { %6863 = vmatmul.msk.f32.gmra.mxu0 %vm176_vm1, %v9292_v61 }
 0x284   :  { %11594 = vst [vmem:[#allocation53_spill] sm:$0xff] %v9302_v42  ;;  %6917 = vmatmul.msk.f32.gmra.mxu1 %vm176_vm1, %v2606_v45  ;;  %6973 = vmatmul.msk.f32.gmra.mxu2 %vm176_vm1, %v3130_v37  ;;  %v2607_v45 = vld [vmem:[%s11533_s0 + $0xaa] sm:$0xff] }
 0x286   :  { %7039 = vmatmul.msk.f32.gmra.mxu3 %vm176_vm1, %v8782_v15 }
 0x287   :  { %v1432_v30 = vpop.f32.mrf.mxu2 }
 0x288   :  { %v1512_v40 = vadd.f32 %v1432_v30, %v963_v25  ;;  %v9312_v23 = vpop.f32.mrf.mxu0 }
 0x289   :  { %v1966_v39 = vpop.f32.mrf.mxu3  ;;  %v9319_v42 = vpop.f32.mrf.mxu1 }
 0x28a   :  { %v9327_v15 = vadd.f32 %v1966_v39, %v1512_v40  ;;  %v9342_v40 = vld [vmem:[%s11533_s0 + $0x111] sm:$0xff] }
 0x28b   :  { %6864 = vmatmul.msk.f32.gmra.mxu0 %vm176_vm1, %v9317_v33 }
 0x28c   :  { %11595 = vst [vmem:[#allocation54_spill] sm:$0xff] %v9327_v15  ;;  %6918 = vmatmul.msk.f32.gmra.mxu1 %vm176_vm1, %v2607_v45  ;;  %6974 = vmatmul.msk.f32.gmra.mxu2 %vm176_vm1, %v3131_v44  ;;  %v2608_v45 = vld [vmem:[%s11533_s0 + $0xb2] sm:$0xff] }
 0x28e   :  { %7040 = vmatmul.msk.f32.gmra.mxu3 %vm176_vm1, %v8810_v0 }
 0x28f   :  { %v1435_v37 = vpop.f32.mrf.mxu2 }
 0x290   :  { %v1513_v25 = vadd.f32 %v1435_v37, %v966_v24  ;;  %v9337_v30 = vpop.f32.mrf.mxu0 }
 0x291   :  { %v1969_v39 = vpop.f32.mrf.mxu3  ;;  %v9344_v15 = vpop.f32.mrf.mxu1 }
 0x292   :  { %v9352_v0 = vadd.f32 %v1969_v39, %v1513_v25  ;;  %v9367_v25 = vld [vmem:[%s11533_s0 + $0x119] sm:$0xff] }
 0x293   :  { %6865 = vmatmul.msk.f32.gmra.mxu0 %vm176_vm1, %v9342_v40 }
 0x294   :  { %11596 = vst [vmem:[#allocation55_spill] sm:$0xff] %v9352_v0  ;;  %6919 = vmatmul.msk.f32.gmra.mxu1 %vm176_vm1, %v2608_v45  ;;  %6975 = vmatmul.msk.f32.gmra.mxu2 %vm176_vm1, %v3132_v51  ;;  %v2609_v45 = vld [vmem:[%s11533_s0 + $0xba] sm:$0xff] }
 0x296   :  { %7041 = vmatmul.msk.f32.gmra.mxu3 %vm176_vm1, %v8838_v46 }
 0x297   :  { %v1438_v44 = vpop.f32.mrf.mxu2 }
 0x298   :  { %v1514_v24 = vadd.f32 %v1438_v44, %v969_v60  ;;  %v9362_v37 = vpop.f32.mrf.mxu0 }
 0x299   :  { %v1972_v39 = vpop.f32.mrf.mxu3  ;;  %v9369_v0 = vpop.f32.mrf.mxu1 }
 0x29a   :  { %v9377_v46 = vadd.f32 %v1972_v39, %v1514_v24  ;;  %v9392_v24 = vld [vmem:[%s11533_s0 + $0x121] sm:$0xff] }
 0x29b   :  { %6866 = vmatmul.msk.f32.gmra.mxu0 %vm176_vm1, %v9367_v25 }
 0x29c   :  { %11597 = vst [vmem:[#allocation56_spill] sm:$0xff] %v9377_v46  ;;  %6920 = vmatmul.msk.f32.gmra.mxu1 %vm176_vm1, %v2609_v45  ;;  %6976 = vmatmul.msk.f32.gmra.mxu2 %vm176_vm1, %v3133_v5  ;;  %v2610_v45 = vld [vmem:[%s11533_s0 + $0xc2] sm:$0xff]  ;;  %v2612_v46 = vld [vmem:[%s11533_s0 + $0xd2] sm:$0xff] }
 0x29e   :  { %7042 = vmatmul.msk.f32.gmra.mxu3 %vm176_vm1, %v8863_v32 }
 0x29f   :  { %v1441_v51 = vpop.f32.mrf.mxu2 }
 0x2a0   :  { %v1515_v60 = vadd.f32 %v1441_v51, %v972_v28  ;;  %v9387_v44 = vpop.f32.mrf.mxu0  ;;  %v9415_v51 = vld [vmem:[%s11533_s0 + $0x129] sm:$0xff] }
 0x2a1   :  { %v1975_v39 = vpop.f32.mrf.mxu3  ;;  %v9402_v32 = vpop.f32.mrf.mxu1 }
 0x2a2   :  { %v9400_v19 = vadd.f32 %v1975_v39, %v1515_v60  ;;  %v2611_v39 = vld [vmem:[%s11533_s0 + $0xca] sm:$0xff] }
 0x2a3   :  { %6867 = vmatmul.msk.f32.gmra.mxu0 %vm176_vm1, %v9392_v24 }
 0x2a4   :  { %11598 = vst [vmem:[#allocation57_spill] sm:$0xff] %v9400_v19  ;;  %6921 = vmatmul.msk.f32.gmra.mxu1 %vm176_vm1, %v2610_v45  ;;  %6977 = vmatmul.msk.f32.gmra.mxu2 %vm176_vm1, %v3134_v12  ;;  %v3135_v45 = vld [vmem:[%s11533_s0 + $0x88] sm:$0xff] }
 0x2a6   :  { %7043 = vmatmul.msk.f32.gmra.mxu3 %vm176_vm1, %v8888_v22 }
 0x2a7   :  { %v1444_v5 = vpop.f32.mrf.mxu2 }
 0x2a8   :  { %v9410_v28 = vpop.f32.mrf.mxu0 }
 0x2a9   :  { %v1978_v60 = vpop.f32.mrf.mxu3  ;;  %v9425_v22 = vpop.f32.mrf.mxu1 }
 0x2aa   :  { %v9436_v60 = vld [vmem:[%s11533_s0 + $0x131] sm:$0xff] }
 0x2ab   :  { %6868 = vmatmul.msk.f32.gmra.mxu0 %vm176_vm1, %v9415_v51 }
 0x2ac   :  { %6922 = vmatmul.msk.f32.gmra.mxu1 %vm176_vm1, %v2611_v39  ;;  %6978 = vmatmul.msk.f32.gmra.mxu2 %vm176_vm1, %v3135_v45  ;;  %v3136_v39 = vld [vmem:[%s11533_s0 + $0x90] sm:$0xff] }
 0x2ae   :  { %7044 = vmatmul.msk.f32.gmra.mxu3 %vm176_vm1, %v8913_v49 }
 0x2af   :  { %v1447_v12 = vpop.f32.mrf.mxu2 }
 0x2b0   :  { %v9431_v5 = vpop.f32.mrf.mxu0  ;;  %v9457_v12 = vld [vmem:[%s11533_s0 + $0x139] sm:$0xff] }
 0x2b1   :  { %11599 = vst [vmem:[#allocation58_spill] sm:$0xff] %v9431_v5  ;;  %v1981_v19 = vpop.f32.mrf.mxu3  ;;  %v9448_v49 = vpop.f32.mrf.mxu1 }
 0x2b2   :  { %11601 = vst [vmem:[#allocation60_spill] sm:$0xff] %v9457_v12 }
 0x2b3   :  { %6869 = vmatmul.msk.f32.gmra.mxu0 %vm176_vm1, %v9436_v60 }
 0x2b4   :  { %6923 = vmatmul.msk.f32.gmra.mxu1 %vm176_vm1, %v2612_v46  ;;  %6979 = vmatmul.msk.f32.gmra.mxu2 %vm176_vm1, %v3136_v39  ;;  %v2613_v46 = vld [vmem:[%s11533_s0 + $0xda] sm:$0xff] }
 0x2b5   :  { %v3137_v39 = vld [vmem:[%s11533_s0 + $0x98] sm:$0xff] }
 0x2b6   :  { %7045 = vmatmul.msk.f32.gmra.mxu3 %vm176_vm1, %v8938_v17 }
 0x2b7   :  { %v1450_v19 = vpop.f32.mrf.mxu2 }
 0x2b8   :  { %v9452_v45 = vpop.f32.mrf.mxu0 }
 0x2b9   :  { %11600 = vst [vmem:[#allocation59_spill] sm:$0xff] %v9452_v45  ;;  %v1984_v38 = vpop.f32.mrf.mxu3 }
 0x2ba   :  { %v9471_v38 = vpop.f32.mrf.mxu1 }
 0x2bb   :  { %6870 = vmatmul.msk.f32.gmra.mxu0 %vm176_vm1, %v9457_v12 }
 0x2bc   :  { %6924 = vmatmul.msk.f32.gmra.mxu1 %vm176_vm1, %v2613_v46  ;;  %6980 = vmatmul.msk.f32.gmra.mxu2 %vm176_vm1, %v3137_v39  ;;  %v2614_v46 = vld [vmem:[%s11533_s0 + $0xe2] sm:$0xff] }
 0x2bd   :  { %v3138_v39 = vld [vmem:[%s11533_s0 + $0xa0] sm:$0xff] }
 0x2be   :  { %7046 = vmatmul.msk.f32.gmra.mxu3 %vm176_vm1, %v8963_v8  ;;  %v2524_v8 = vadd.f32 %v8933_v21, %v7909_v63  ;;  %v2615_v63 = vld [vmem:[%s11533_s0 + $0xea] sm:$0xff] }
 0x2bf   :  { %v1453_v17 = vpop.f32.mrf.mxu2  ;;  %v3139_v21 = vld [vmem:[%s11533_s0 + $0xa8] sm:$0xff] }
 0x2c0   :  { %v9473_v19 = vpop.f32.mrf.mxu0 }
 0x2c1   :  { %11602 = vst [vmem:[#allocation61_spill] sm:$0xff] %v9473_v19  ;;  %v1987_v45 = vpop.f32.mrf.mxu3 }
 0x2c2   :  { %v3058_v45 = vadd.f32 %v9244_v26, %v2524_v8  ;;  %v9508_v26 = vpop.f32.mrf.mxu1 }
 0x2c3   :  { %6871 = vmatmul.msk.f32.gmra.mxu0 %vm176_vm1, %v9478_v50  ;;  %v9500_v50 = vld [vmem:[%s11533_s0 + $0x149] sm:$0xff] }
 0x2c4   :  { %6925 = vmatmul.msk.f32.gmra.mxu1 %vm176_vm1, %v2614_v46  ;;  %6981 = vmatmul.msk.f32.gmra.mxu2 %vm176_vm1, %v3138_v39  ;;  %v2525_v46 = vadd.f32 %v8958_v48, %v7934_v6  ;;  %v2616_v6 = vld [vmem:[%s11533_s0 + $0xf2] sm:$0xff] }
 0x2c5   :  { %v3140_v48 = vld [vmem:[%s11533_s0 + $0xb0] sm:$0xff] }
 0x2c6   :  { %7047 = vmatmul.msk.f32.gmra.mxu3 %vm176_vm1, %v8988_v29  ;;  %v3059_v39 = vadd.f32 %v9269_v10, %v2525_v46 }
 0x2c7   :  { %v3400_v17 = vpop.f32.mrf.mxu2 }
 0x2c8   :  { %v3592_v19 = vadd.f32 %v3400_v17, %v3058_v45  ;;  %v9495_v5 = vpop.f32.mrf.mxu0 }
 0x2c9   :  { %v3934_v12 = vpop.f32.mrf.mxu3 }
 0x2ca   :  { %v9510_v29 = vadd.f32 %v3934_v12, %v3592_v19  ;;  %v9526_v12 = vld [vmem:[%s11533_s0 + $0x151] sm:$0xff] }
 0x2cb   :  { %6872 = vmatmul.msk.f32.gmra.mxu0 %vm176_vm1, %v9500_v50 }
 0x2cc   :  { %6926 = vmatmul.msk.f32.gmra.mxu1 %vm176_vm1, %v2615_v63  ;;  %6982 = vmatmul.msk.f32.gmra.mxu2 %vm176_vm1, %v3139_v21  ;;  %v9540_v63 = vpop.f32.mrf.mxu1 }
 0x2ce   :  { %7048 = vmatmul.msk.f32.gmra.mxu3 %vm176_vm1, %v9015_v14  ;;  %v2526_v14 = vadd.f32 %v8983_v59, %v7959_v13  ;;  %v2617_v59 = vld [vmem:[%s11533_s0 + $0xfa] sm:$0xff] }
 0x2cf   :  { %v3403_v8 = vpop.f32.mrf.mxu2 }
 0x2d0   :  { %v3593_v45 = vadd.f32 %v3403_v8, %v3059_v39  ;;  %v9521_v17 = vpop.f32.mrf.mxu0  ;;  %v3060_v21 = vadd.f32 %v9294_v58, %v2526_v14  ;;  %v3141_v58 = vld [vmem:[%s11533_s0 + $0xb8] sm:$0xff] }
 0x2d1   :  { %v3937_v19 = vpop.f32.mrf.mxu3 }
 0x2d2   :  { %v9534_v10 = vadd.f32 %v3937_v19, %v3593_v45  ;;  %v9552_v45 = vld [vmem:[%s11533_s0 + $0x159] sm:$0xff] }
 0x2d3   :  { %6873 = vmatmul.msk.f32.gmra.mxu0 %vm176_vm1, %v9526_v12 }
 0x2d4   :  { %6927 = vmatmul.msk.f32.gmra.mxu1 %vm176_vm1, %v2616_v6  ;;  %6983 = vmatmul.msk.f32.gmra.mxu2 %vm176_vm1, %v3140_v48  ;;  %v9569_v48 = vpop.f32.mrf.mxu1 }
 0x2d6   :  { %7049 = vmatmul.msk.f32.gmra.mxu3 %vm176_vm1, %v9042_v57  ;;  %v2527_v57 = vadd.f32 %v9010_v43, %v7984_v20  ;;  %v2618_v43 = vld [vmem:[%s11533_s0 + $0x102] sm:$0xff] }
 0x2d7   :  { %v3406_v46 = vpop.f32.mrf.mxu2 }
 0x2d8   :  { %v3594_v39 = vadd.f32 %v3406_v46, %v3060_v21  ;;  %v9547_v8 = vpop.f32.mrf.mxu0  ;;  %v3061_v6 = vadd.f32 %v9319_v42, %v2527_v57  ;;  %v3142_v42 = vld [vmem:[%s11533_s0 + $0xc0] sm:$0xff] }
 0x2d9   :  { %v3940_v13 = vpop.f32.mrf.mxu3 }
 0x2da   :  { %v9560_v19 = vadd.f32 %v3940_v13, %v3594_v39  ;;  %v9578_v39 = vld [vmem:[%s11533_s0 + $0x161] sm:$0xff] }
 0x2db   :  { %6874 = vmatmul.msk.f32.gmra.mxu0 %vm176_vm1, %v9552_v45 }
 0x2dc   :  { %6928 = vmatmul.msk.f32.gmra.mxu1 %vm176_vm1, %v2617_v59  ;;  %6984 = vmatmul.msk.f32.gmra.mxu2 %vm176_vm1, %v3141_v58  ;;  %v9597_v57 = vpop.f32.mrf.mxu1 }
 0x2de   :  { %7050 = vmatmul.msk.f32.gmra.mxu3 %vm176_vm1, %v9069_v55  ;;  %v2528_v55 = vadd.f32 %v9037_v1, %v8009_v27  ;;  %v2619_v1 = vld [vmem:[%s11533_s0 + $0x10a] sm:$0xff] }
 0x2df   :  { %v3409_v14 = vpop.f32.mrf.mxu2 }
 0x2e0   :  { %v3595_v21 = vadd.f32 %v3409_v14, %v3061_v6  ;;  %v9573_v46 = vpop.f32.mrf.mxu0  ;;  %v3062_v59 = vadd.f32 %v9344_v15, %v2528_v55 }
 0x2e1   :  { %v3943_v20 = vpop.f32.mrf.mxu3 }
 0x2e2   :  { %v9586_v13 = vadd.f32 %v3943_v20, %v3595_v21  ;;  %v9604_v21 = vld [vmem:[%s11533_s0 + $0x169] sm:$0xff]  ;;  %v2529_v20 = vadd.f32 %v9064_v54, %v8034_v34  ;;  %v2620_v34 = vld [vmem:[%s11533_s0 + $0x112] sm:$0xff] }
 0x2e3   :  { %6875 = vmatmul.msk.f32.gmra.mxu0 %vm176_vm1, %v9578_v39  ;;  %v3144_v54 = vld [vmem:[%s11533_s0 + $0xd0] sm:$0xff] }
 0x2e4   :  { %6929 = vmatmul.msk.f32.gmra.mxu1 %vm176_vm1, %v2618_v43  ;;  %6985 = vmatmul.msk.f32.gmra.mxu2 %vm176_vm1, %v3142_v42  ;;  %v3063_v43 = vadd.f32 %v9369_v0, %v2529_v20  ;;  %v9634_v0 = vpop.f32.mrf.mxu1 }
 0x2e6   :  { %7051 = vmatmul.msk.f32.gmra.mxu3 %vm176_vm1, %v9096_v56  ;;  %v3143_v56 = vld [vmem:[%s11533_s0 + $0xc8] sm:$0xff] }
 0x2e7   :  { %v3412_v58 = vpop.f32.mrf.mxu2 }
 0x2e8   :  { %v3596_v6 = vadd.f32 %v3412_v58, %v3062_v59  ;;  %v9599_v14 = vpop.f32.mrf.mxu0  ;;  %v9626_v58 = vld [vmem:[%s11533_s0 + $0x171] sm:$0xff] }
 0x2e9   :  { %v3946_v27 = vpop.f32.mrf.mxu3 }
 0x2ea   :  { %v9612_v15 = vadd.f32 %v3946_v27, %v3596_v6  ;;  %v11604_v27 = vld [vmem:[#allocation8_spill] sm:$0xff] }
 0x2eb   :  { %6876 = vmatmul.msk.f32.gmra.mxu0 %vm176_vm1, %v9604_v21 }
 0x2ec   :  { %6930 = vmatmul.msk.f32.gmra.mxu1 %vm176_vm1, %v2619_v1  ;;  %6986 = vmatmul.msk.f32.gmra.mxu2 %vm176_vm1, %v3143_v56  ;;  %v2530_v1 = vadd.f32 %v9091_v47, %v11604_v27  ;;  %v2621_v47 = vld [vmem:[%s11533_s0 + $0x11a] sm:$0xff] }
 0x2ee   :  { %7052 = vmatmul.msk.f32.gmra.mxu3 %vm176_vm1, %v9121_v41  ;;  %v3064_v56 = vadd.f32 %v9402_v32, %v2530_v1  ;;  %v3145_v32 = vld [vmem:[%s11533_s0 + $0xd8] sm:$0xff] }
 0x2ef   :  { %v3415_v42 = vpop.f32.mrf.mxu2 }
 0x2f0   :  { %v3597_v55 = vadd.f32 %v3415_v42, %v3063_v43  ;;  %v2416_v59 = vpop.f32.mrf.mxu0 }
 0x2f1   :  { %v3949_v6 = vpop.f32.mrf.mxu3 }
 0x2f2   :  { %v9636_v41 = vadd.f32 %v3949_v6, %v3597_v55  ;;  %v9650_v55 = vld [vmem:[%s11533_s0 + $0x179] sm:$0xff] }
 0x2f3   :  { %6877 = vmatmul.msk.f32.gmra.mxu0 %vm176_vm1, %v9626_v58 }
 0x2f4   :  { %6931 = vmatmul.msk.f32.gmra.mxu1 %vm176_vm1, %v2620_v34  ;;  %6987 = vmatmul.msk.f32.gmra.mxu2 %vm176_vm1, %v3144_v54  ;;  %v9664_v54 = vpop.f32.mrf.mxu1 }
 0x2f6   :  { %7053 = vmatmul.msk.f32.gmra.mxu3 %vm176_vm1, %v9146_v4  ;;  %v11605_v4 = vld [vmem:[#allocation9_spill] sm:$0xff] }
 0x2f7   :  { %v3418_v20 = vpop.f32.mrf.mxu2  ;;  %v2531_v34 = vadd.f32 %v9116_v3, %v11605_v4 }
 0x2f8   :  { %v3598_v43 = vadd.f32 %v3418_v20, %v3064_v56  ;;  %v2419_v42 = vpop.f32.mrf.mxu0 }
 0x2f9   :  { %v3952_v59 = vpop.f32.mrf.mxu3  ;;  %v3065_v27 = vadd.f32 %v9425_v22, %v2531_v34  ;;  %v2622_v42 = vld [vmem:[%s11533_s0 + $0x122] sm:$0xff] }
 0x2fa   :  { %v9658_v6 = vadd.f32 %v3952_v59, %v3598_v43  ;;  %v9674_v43 = vld [vmem:[%s11533_s0 + $0x181] sm:$0xff] }
 0x2fb   :  { %6878 = vmatmul.msk.f32.gmra.mxu0 %vm176_vm1, %v9650_v55  ;;  %v3146_v22 = vld [vmem:[%s11533_s0 + $0xe0] sm:$0xff] }
 0x2fc   :  { %6932 = vmatmul.msk.f32.gmra.mxu1 %vm176_vm1, %v2621_v47  ;;  %6988 = vmatmul.msk.f32.gmra.mxu2 %vm176_vm1, %v3145_v32  ;;  %v9691_v4 = vpop.f32.mrf.mxu1 }
 0x2fe   :  { %7054 = vmatmul.msk.f32.gmra.mxu3 %vm176_vm1, %v9171_v53  ;;  %v11606_v53 = vld [vmem:[#allocation10_spill] sm:$0xff] }
 0x2ff   :  { %v3421_v1 = vpop.f32.mrf.mxu2  ;;  %v2532_v47 = vadd.f32 %v9141_v35, %v11606_v53 }
 0x300   :  { %v3599_v56 = vadd.f32 %v3421_v1, %v3065_v27  ;;  %v2422_v20 = vpop.f32.mrf.mxu0 }
 0x301   :  { %v3955_v3 = vpop.f32.mrf.mxu3  ;;  %v3066_v32 = vadd.f32 %v9448_v49, %v2532_v47  ;;  %v2623_v20 = vld [vmem:[%s11533_s0 + $0x12a] sm:$0xff] }
 0x302   :  { %v9682_v59 = vadd.f32 %v3955_v3, %v3599_v56  ;;  %v9698_v56 = vld [vmem:[%s11533_s0 + $0x189] sm:$0xff] }
 0x303   :  { %6879 = vmatmul.msk.f32.gmra.mxu0 %vm176_vm1, %v9674_v43  ;;  %v3147_v49 = vld [vmem:[%s11533_s0 + $0xe8] sm:$0xff] }
 0x304   :  { %6933 = vmatmul.msk.f32.gmra.mxu1 %vm176_vm1, %v2622_v42  ;;  %6989 = vmatmul.msk.f32.gmra.mxu2 %vm176_vm1, %v3146_v22  ;;  %v9717_v47 = vpop.f32.mrf.mxu1 }
 0x306   :  { %7055 = vmatmul.msk.f32.gmra.mxu3 %vm176_vm1, %v9196_v36  ;;  %v11607_v36 = vld [vmem:[#allocation11_spill] sm:$0xff] }
 0x307   :  { %v3424_v34 = vpop.f32.mrf.mxu2  ;;  %v2533_v42 = vadd.f32 %v9166_v31, %v11607_v36 }
 0x308   :  { %v3600_v27 = vadd.f32 %v3424_v34, %v3066_v32  ;;  %v2425_v1 = vpop.f32.mrf.mxu0 }
 0x309   :  { %v3958_v35 = vpop.f32.mrf.mxu3  ;;  %v3067_v22 = vadd.f32 %v9471_v38, %v2533_v42  ;;  %v2624_v1 = vld [vmem:[%s11533_s0 + $0x132] sm:$0xff] }
 0x30a   :  { %v9706_v3 = vadd.f32 %v3958_v35, %v3600_v27  ;;  %v9724_v27 = vld [vmem:[%s11533_s0 + $0x191] sm:$0xff]  ;;  %v11608_v35 = vld [vmem:[#allocation12_spill] sm:$0xff] }
 0x30b   :  { %6880 = vmatmul.msk.f32.gmra.mxu0 %vm176_vm1, %v9698_v56 }
 0x30c   :  { %6934 = vmatmul.msk.f32.gmra.mxu1 %vm176_vm1, %v2623_v20  ;;  %6990 = vmatmul.msk.f32.gmra.mxu2 %vm176_vm1, %v3147_v49  ;;  %v2534_v20 = vadd.f32 %v9191_v18, %v11608_v35  ;;  %v2625_v18 = vld [vmem:[%s11533_s0 + $0x13a] sm:$0xff] }
 0x30e   :  { %7056 = vmatmul.msk.f32.gmra.mxu3 %vm176_vm1, %v9219_v7  ;;  %v3148_v7 = vld [vmem:[%s11533_s0 + $0xf0] sm:$0xff]  ;;  %v3068_v49 = vadd.f32 %v9508_v26, %v2534_v20  ;;  %v3149_v26 = vld [vmem:[%s11533_s0 + $0xf8] sm:$0xff] }
 0x30f   :  { %v3427_v53 = vpop.f32.mrf.mxu2 }
 0x310   :  { %v3601_v32 = vadd.f32 %v3427_v53, %v3067_v22  ;;  %v9719_v34 = vpop.f32.mrf.mxu0  ;;  %v9748_v53 = vld [vmem:[%s11533_s0 + $0x199] sm:$0xff] }
 0x311   :  { %v3961_v31 = vpop.f32.mrf.mxu3 }
 0x312   :  { %v9732_v38 = vadd.f32 %v3961_v31, %v3601_v32  ;;  %v9756_v31 = vpop.f32.mrf.mxu1 }
 0x313   :  { %6881 = vmatmul.msk.f32.gmra.mxu0 %vm176_vm1, %v9724_v27 }
 0x314   :  { %6935 = vmatmul.msk.f32.gmra.mxu1 %vm176_vm1, %v2624_v1  ;;  %6991 = vmatmul.msk.f32.gmra.mxu2 %vm176_vm1, %v3148_v7  ;;  %v11609_v1 = vld [vmem:[#allocation13_spill] sm:$0xff] }
 0x315   :  { %v2535_v7 = vadd.f32 %v9214_v11, %v11609_v1  ;;  %v2626_v11 = vld [vmem:[%s11533_s0 + $0x142] sm:$0xff] }
 0x316   :  { %7057 = vmatmul.msk.f32.gmra.mxu3 %vm176_vm1, %v9242_v52 }
 0x317   :  { %v3430_v36 = vpop.f32.mrf.mxu2  ;;  %v3069_v35 = vadd.f32 %v9540_v63, %v2535_v7  ;;  %v3150_v63 = vld [vmem:[%s11533_s0 + $0x100] sm:$0xff] }
 0x318   :  { %v3602_v42 = vadd.f32 %v3430_v36, %v3068_v49  ;;  %v9743_v22 = vpop.f32.mrf.mxu0 }
 0x319   :  { %v3964_v32 = vpop.f32.mrf.mxu3 }
 0x31a   :  { %v9758_v52 = vadd.f32 %v3964_v32, %v3602_v42  ;;  %v9774_v42 = vld [vmem:[%s11533_s0 + $0x1a1] sm:$0xff]  ;;  %v9788_v1 = vpop.f32.mrf.mxu1 }
 0x31b   :  { %6882 = vmatmul.msk.f32.gmra.mxu0 %vm176_vm1, %v9748_v53 }
 0x31c   :  { %6936 = vmatmul.msk.f32.gmra.mxu1 %vm176_vm1, %v2625_v18  ;;  %6992 = vmatmul.msk.f32.gmra.mxu2 %vm176_vm1, %v3149_v26 }
 0x31e   :  { %7058 = vmatmul.msk.f32.gmra.mxu3 %vm176_vm1, %v9267_v62  ;;  %v11611_v62 = vld [vmem:[#allocation14_spill] sm:$0xff] }
 0x31f   :  { %v3433_v20 = vpop.f32.mrf.mxu2  ;;  %v2536_v26 = vadd.f32 %v9237_v2, %v11611_v62 }
 0x320   :  { %v3603_v49 = vadd.f32 %v3433_v20, %v3069_v35  ;;  %v9769_v36 = vpop.f32.mrf.mxu0 }
 0x321   :  { %v3967_v32 = vpop.f32.mrf.mxu3  ;;  %v3070_v7 = vadd.f32 %v9569_v48, %v2536_v26  ;;  %v3151_v48 = vld [vmem:[%s11533_s0 + $0x108] sm:$0xff] }
 0x322   :  { %v9782_v18 = vadd.f32 %v3967_v32, %v3603_v49  ;;  %v9800_v32 = vld [vmem:[%s11533_s0 + $0x1a9] sm:$0xff] }
 0x323   :  { %6883 = vmatmul.msk.f32.gmra.mxu0 %vm176_vm1, %v9774_v42 }
 0x324   :  { %11610 = vst [vmem:[#allocation8_spill] sm:$0xff] %v9782_v18  ;;  %6937 = vmatmul.msk.f32.gmra.mxu1 %vm176_vm1, %v2626_v11  ;;  %6993 = vmatmul.msk.f32.gmra.mxu2 %vm176_vm1, %v3150_v63  ;;  %v2627_v11 = vld [vmem:[%s11533_s0 + $0x14a] sm:$0xff] }
 0x326   :  { %7059 = vmatmul.msk.f32.gmra.mxu3 %vm176_vm1, %v9292_v61  ;;  %v11613_v61 = vld [vmem:[#allocation15_spill] sm:$0xff] }
 0x327   :  { %v3436_v35 = vpop.f32.mrf.mxu2  ;;  %v2537_v62 = vadd.f32 %v9262_v9, %v11613_v61 }
 0x328   :  { %v3604_v20 = vadd.f32 %v3436_v35, %v3070_v7  ;;  %v9795_v49 = vpop.f32.mrf.mxu0  ;;  %v9817_v7 = vpop.f32.mrf.mxu1 }
 0x329   :  { %v3970_v2 = vpop.f32.mrf.mxu3  ;;  %v3071_v26 = vadd.f32 %v9597_v57, %v2537_v62  ;;  %v3152_v57 = vld [vmem:[%s11533_s0 + $0x110] sm:$0xff] }
 0x32a   :  { %v9808_v63 = vadd.f32 %v3970_v2, %v3604_v20 }
 0x32b   :  { %6884 = vmatmul.msk.f32.gmra.mxu0 %vm176_vm1, %v9800_v32 }
 0x32c   :  { %11612 = vst [vmem:[#allocation9_spill] sm:$0xff] %v9808_v63  ;;  %6938 = vmatmul.msk.f32.gmra.mxu1 %vm176_vm1, %v2627_v11  ;;  %6994 = vmatmul.msk.f32.gmra.mxu2 %vm176_vm1, %v3151_v48  ;;  %v9826_v63 = vld [vmem:[%s11533_s0 + $0x1b1] sm:$0xff] }
 0x32d   :  { %v2628_v11 = vld [vmem:[%s11533_s0 + $0x152] sm:$0xff] }
 0x32e   :  { %7060 = vmatmul.msk.f32.gmra.mxu3 %vm176_vm1, %v9317_v33  ;;  %v11615_v33 = vld [vmem:[#allocation16_spill] sm:$0xff] }
 0x32f   :  { %v3439_v35 = vpop.f32.mrf.mxu2  ;;  %v2538_v61 = vadd.f32 %v9287_v16, %v11615_v33 }
 0x330   :  { %v3605_v20 = vadd.f32 %v3439_v35, %v3071_v26  ;;  %v9821_v2 = vpop.f32.mrf.mxu0  ;;  %v9845_v35 = vpop.f32.mrf.mxu1 }
 0x331   :  { %v3973_v9 = vpop.f32.mrf.mxu3  ;;  %v3072_v62 = vadd.f32 %v9634_v0, %v2538_v61 }
 0x332   :  { %v9834_v48 = vadd.f32 %v3973_v9, %v3605_v20 }
 0x333   :  { %6885 = vmatmul.msk.f32.gmra.mxu0 %vm176_vm1, %v9826_v63 }
 0x334   :  { %11614 = vst [vmem:[#allocation10_spill] sm:$0xff] %v9834_v48  ;;  %6939 = vmatmul.msk.f32.gmra.mxu1 %vm176_vm1, %v2628_v11  ;;  %6995 = vmatmul.msk.f32.gmra.mxu2 %vm176_vm1, %v3152_v57  ;;  %v9852_v48 = vld [vmem:[%s11533_s0 + $0x1b9] sm:$0xff]  ;;  %v11617_v57 = vld [vmem:[#allocation17_spill] sm:$0xff] }
 0x335   :  { %v2629_v11 = vld [vmem:[%s11533_s0 + $0x15a] sm:$0xff]  ;;  %v2539_v33 = vadd.f32 %v9312_v23, %v11617_v57  ;;  %v2630_v23 = vld [vmem:[%s11533_s0 + $0x162] sm:$0xff] }
 0x336   :  { %7061 = vmatmul.msk.f32.gmra.mxu3 %vm176_vm1, %v9342_v40  ;;  %v3153_v40 = vld [vmem:[%s11533_s0 + $0x118] sm:$0xff] }
 0x337   :  { %v3442_v26 = vpop.f32.mrf.mxu2  ;;  %v3073_v61 = vadd.f32 %v9664_v54, %v2539_v33  ;;  %v3154_v54 = vld [vmem:[%s11533_s0 + $0x120] sm:$0xff] }
 0x338   :  { %v3606_v20 = vadd.f32 %v3442_v26, %v3072_v62  ;;  %v9847_v9 = vpop.f32.mrf.mxu0 }
 0x339   :  { %v3976_v16 = vpop.f32.mrf.mxu3 }
 0x33a   :  { %v9860_v0 = vadd.f32 %v3976_v16, %v3606_v20  ;;  %v9876_v20 = vld [vmem:[%s11533_s0 + $0x1c1] sm:$0xff] }
 0x33b   :  { %6886 = vmatmul.msk.f32.gmra.mxu0 %vm176_vm1, %v9852_v48 }
 0x33c   :  { %11616 = vst [vmem:[#allocation11_spill] sm:$0xff] %v9860_v0  ;;  %6940 = vmatmul.msk.f32.gmra.mxu1 %vm176_vm1, %v2629_v11  ;;  %6996 = vmatmul.msk.f32.gmra.mxu2 %vm176_vm1, %v3153_v40  ;;  %v9884_v11 = vpop.f32.mrf.mxu1  ;;  %v11618_v40 = vld [vmem:[#allocation18_spill] sm:$0xff] }
 0x33d   :  { %v2540_v57 = vadd.f32 %v9337_v30, %v11618_v40  ;;  %v2631_v30 = vld [vmem:[%s11533_s0 + $0x16a] sm:$0xff] }
 0x33e   :  { %7062 = vmatmul.msk.f32.gmra.mxu3 %vm176_vm1, %v9367_v25 }
 0x33f   :  { %v3445_v62 = vpop.f32.mrf.mxu2  ;;  %v3074_v33 = vadd.f32 %v9691_v4, %v2540_v57  ;;  %v3155_v4 = vld [vmem:[%s11533_s0 + $0x128] sm:$0xff] }
 0x340   :  { %v3607_v26 = vadd.f32 %v3445_v62, %v3073_v61  ;;  %v9871_v18 = vpop.f32.mrf.mxu0 }
 0x341   :  { %v3979_v16 = vpop.f32.mrf.mxu3 }
 0x342   :  { %v9886_v25 = vadd.f32 %v3979_v16, %v3607_v26  ;;  %v9902_v26 = vld [vmem:[%s11533_s0 + $0x1c9] sm:$0xff] }
 0x343   :  { %6887 = vmatmul.msk.f32.gmra.mxu0 %vm176_vm1, %v9876_v20 }
 0x344   :  { %6941 = vmatmul.msk.f32.gmra.mxu1 %vm176_vm1, %v2630_v23  ;;  %6997 = vmatmul.msk.f32.gmra.mxu2 %vm176_vm1, %v3154_v54  ;;  %v9916_v40 = vpop.f32.mrf.mxu1 }
 0x346   :  { %7063 = vmatmul.msk.f32.gmra.mxu3 %vm176_vm1, %v9392_v24  ;;  %v11620_v24 = vld [vmem:[#allocation19_spill] sm:$0xff] }
 0x347   :  { %v3448_v61 = vpop.f32.mrf.mxu2  ;;  %v2541_v54 = vadd.f32 %v9362_v37, %v11620_v24 }
 0x348   :  { %v3608_v62 = vadd.f32 %v3448_v61, %v3074_v33  ;;  %v9897_v0 = vpop.f32.mrf.mxu0 }
 0x349   :  { %v3982_v16 = vpop.f32.mrf.mxu3  ;;  %v3075_v57 = vadd.f32 %v9717_v47, %v2541_v54  ;;  %v3156_v47 = vld [vmem:[%s11533_s0 + $0x130] sm:$0xff] }
 0x34a   :  { %v9910_v23 = vadd.f32 %v3982_v16, %v3608_v62  ;;  %v9928_v16 = vld [vmem:[%s11533_s0 + $0x1d1] sm:$0xff] }
 0x34b   :  { %6888 = vmatmul.msk.f32.gmra.mxu0 %vm176_vm1, %v9902_v26 }
 0x34c   :  { %11619 = vst [vmem:[#allocation12_spill] sm:$0xff] %v9910_v23  ;;  %6942 = vmatmul.msk.f32.gmra.mxu1 %vm176_vm1, %v2631_v30  ;;  %6998 = vmatmul.msk.f32.gmra.mxu2 %vm176_vm1, %v3155_v4  ;;  %v2632_v30 = vld [vmem:[%s11533_s0 + $0x172] sm:$0xff] }
 0x34e   :  { %7064 = vmatmul.msk.f32.gmra.mxu3 %vm176_vm1, %v9415_v51  ;;  %v11623_v51 = vld [vmem:[#allocation20_spill] sm:$0xff] }
 0x34f   :  { %v3451_v33 = vpop.f32.mrf.mxu2  ;;  %v2542_v24 = vadd.f32 %v9387_v44, %v11623_v51 }
 0x350   :  { %v3609_v61 = vadd.f32 %v3451_v33, %v3075_v57  ;;  %v9923_v62 = vpop.f32.mrf.mxu0  ;;  %v9945_v57 = vpop.f32.mrf.mxu1 }
 0x351   :  { %11621 = vst [vmem:[#allocation13_spill] sm:$0xff] %v9923_v62  ;;  %v3985_v37 = vpop.f32.mrf.mxu3  ;;  %v3076_v54 = vadd.f32 %v9756_v31, %v2542_v24  ;;  %v9954_v62 = vld [vmem:[%s11533_s0 + $0x1d9] sm:$0xff] }
 0x352   :  { %v9936_v4 = vadd.f32 %v3985_v37, %v3609_v61  ;;  %v3157_v31 = vld [vmem:[%s11533_s0 + $0x138] sm:$0xff] }
 0x353   :  { %6889 = vmatmul.msk.f32.gmra.mxu0 %vm176_vm1, %v9928_v16 }
 0x354   :  { %11622 = vst [vmem:[#allocation14_spill] sm:$0xff] %v9936_v4  ;;  %6943 = vmatmul.msk.f32.gmra.mxu1 %vm176_vm1, %v2632_v30  ;;  %6999 = vmatmul.msk.f32.gmra.mxu2 %vm176_vm1, %v3156_v47  ;;  %v2633_v30 = vld [vmem:[%s11533_s0 + $0x17a] sm:$0xff] }
 0x356   :  { %7065 = vmatmul.msk.f32.gmra.mxu3 %vm176_vm1, %v9436_v60  ;;  %v11626_v60 = vld [vmem:[#allocation21_spill] sm:$0xff] }
 0x357   :  { %v3454_v33 = vpop.f32.mrf.mxu2  ;;  %v2543_v51 = vadd.f32 %v9410_v28, %v11626_v60  ;;  %v11630_v60 = vld [vmem:[#allocation22_spill] sm:$0xff] }
 0x358   :  { %v3610_v61 = vadd.f32 %v3454_v33, %v3076_v54  ;;  %v9949_v37 = vpop.f32.mrf.mxu0  ;;  %v11627_v54 = vld [vmem:[#allocation60_spill] sm:$0xff] }
 0x359   :  { %11624 = vst [vmem:[#allocation15_spill] sm:$0xff] %v9949_v37  ;;  %v3988_v44 = vpop.f32.mrf.mxu3  ;;  %v3077_v24 = vadd.f32 %v9788_v1, %v2543_v51  ;;  %v9973_v37 = vpop.f32.mrf.mxu1  ;;  %v3158_v1 = vld [vmem:[%s11533_s0 + $0x140] sm:$0xff]  ;;  %v11631_v51 = vld [vmem:[#allocation58_spill] sm:$0xff] }
 0x35a   :  { %v9962_v47 = vadd.f32 %v3988_v44, %v3610_v61 }
 0x35b   :  { %6890 = vmatmul.msk.f32.gmra.mxu0 %vm176_vm1, %v9954_v62 }
 0x35c   :  { %11625 = vst [vmem:[#allocation16_spill] sm:$0xff] %v9962_v47  ;;  %6944 = vmatmul.msk.f32.gmra.mxu1 %vm176_vm1, %v2633_v30  ;;  %7000 = vmatmul.msk.f32.gmra.mxu2 %vm176_vm1, %v3157_v31  ;;  %v9980_v47 = vld [vmem:[%s11533_s0 + $0x1e1] sm:$0xff] }
 0x35d   :  { %v2634_v30 = vld [vmem:[%s11533_s0 + $0x182] sm:$0xff] }
 0x35e   :  { %7066 = vmatmul.msk.f32.gmra.mxu3 %vm176_vm1, %v11627_v54 }
 0x35f   :  { %v3457_v33 = vpop.f32.mrf.mxu2 }
 0x360   :  { %v3611_v61 = vadd.f32 %v3457_v33, %v3077_v24  ;;  %v9975_v44 = vpop.f32.mrf.mxu0  ;;  %v2544_v24 = vadd.f32 %v11631_v51, %v11630_v60  ;;  %v11632_v33 = vld [vmem:[#allocation62_spill] sm:$0xff]  ;;  %v11635_v51 = vld [vmem:[#allocation59_spill] sm:$0xff] }
 0x361   :  { %11628 = vst [vmem:[#allocation17_spill] sm:$0xff] %v9975_v44  ;;  %v3991_v28 = vpop.f32.mrf.mxu3 }
 0x362   :  { %v9988_v31 = vadd.f32 %v3991_v28, %v3611_v61  ;;  %v3078_v54 = vadd.f32 %v9817_v7, %v2544_v24  ;;  %v10004_v61 = vld [vmem:[%s11533_s0 + $0x1e9] sm:$0xff] }
 0x363   :  { %6891 = vmatmul.msk.f32.gmra.mxu0 %vm176_vm1, %v9980_v47  ;;  %v3159_v7 = vld [vmem:[%s11533_s0 + $0x148] sm:$0xff] }
 0x364   :  { %11629 = vst [vmem:[#allocation18_spill] sm:$0xff] %v9988_v31  ;;  %6945 = vmatmul.msk.f32.gmra.mxu1 %vm176_vm1, %v2634_v30  ;;  %7001 = vmatmul.msk.f32.gmra.mxu2 %vm176_vm1, %v3158_v1  ;;  %v2635_v30 = vld [vmem:[%s11533_s0 + $0x18a] sm:$0xff]  ;;  %v10012_v1 = vpop.f32.mrf.mxu1 }
 0x366   :  { %7067 = vmatmul.msk.f32.gmra.mxu3 %vm176_vm1, %v11632_v33 }
 0x367   :  { %v3460_v44 = vpop.f32.mrf.mxu2 }
 0x368   :  { %v3612_v4 = vadd.f32 %v3460_v44, %v3078_v54  ;;  %v9999_v23 = vpop.f32.mrf.mxu0  ;;  %v11634_v44 = vld [vmem:[#allocation23_spill] sm:$0xff] }
 0x369   :  { %11633 = vst [vmem:[#allocation19_spill] sm:$0xff] %v9999_v23  ;;  %v3994_v28 = vpop.f32.mrf.mxu3  ;;  %v2545_v24 = vadd.f32 %v11635_v51, %v11634_v44  ;;  %v11638_v44 = vld [vmem:[#allocation61_spill] sm:$0xff] }
 0x36a   :  { %v10014_v60 = vadd.f32 %v3994_v28, %v3612_v4  ;;  %v10030_v4 = vld [vmem:[%s11533_s0 + $0x1f1] sm:$0xff] }
 0x36b   :  { %6892 = vmatmul.msk.f32.gmra.mxu0 %vm176_vm1, %v10004_v61  ;;  %v3079_v54 = vadd.f32 %v9845_v35, %v2545_v24  ;;  %v3160_v35 = vld [vmem:[%s11533_s0 + $0x150] sm:$0xff] }
 0x36c   :  { %6946 = vmatmul.msk.f32.gmra.mxu1 %vm176_vm1, %v2635_v30  ;;  %7002 = vmatmul.msk.f32.gmra.mxu2 %vm176_vm1, %v3159_v7  ;;  %v2636_v30 = vld [vmem:[%s11533_s0 + $0x192] sm:$0xff]  ;;  %v10044_v24 = vpop.f32.mrf.mxu1 }
 0x36e   :  { %7068 = vmatmul.msk.f32.gmra.mxu3 %vm176_vm1, %v9500_v50  ;;  %v11637_v50 = vld [vmem:[#allocation24_spill] sm:$0xff] }
 0x36f   :  { %v3463_v33 = vpop.f32.mrf.mxu2  ;;  %v2546_v51 = vadd.f32 %v11638_v44, %v11637_v50 }
 0x370   :  { %v3613_v23 = vadd.f32 %v3463_v33, %v3079_v54  ;;  %v10025_v31 = vpop.f32.mrf.mxu0 }
 0x371   :  { %11636 = vst [vmem:[#allocation20_spill] sm:$0xff] %v10025_v31  ;;  %v3997_v28 = vpop.f32.mrf.mxu3  ;;  %v3080_v54 = vadd.f32 %v9884_v11, %v2546_v51  ;;  %v10056_v31 = vld [vmem:[%s11533_s0 + $0x1f9] sm:$0xff] }
 0x372   :  { %v10038_v7 = vadd.f32 %v3997_v28, %v3613_v23  ;;  %v3161_v11 = vld [vmem:[%s11533_s0 + $0x158] sm:$0xff] }
 0x373   :  { %6893 = vmatmul.msk.f32.gmra.mxu0 %vm176_vm1, %v10030_v4 }
 0x374   :  { %6947 = vmatmul.msk.f32.gmra.mxu1 %vm176_vm1, %v2636_v30  ;;  %7003 = vmatmul.msk.f32.gmra.mxu2 %vm176_vm1, %v3160_v35  ;;  %v2637_v30 = vld [vmem:[%s11533_s0 + $0x19a] sm:$0xff] }
 0x376   :  { %7069 = vmatmul.msk.f32.gmra.mxu3 %vm176_vm1, %v9526_v12  ;;  %v11640_v12 = vld [vmem:[#allocation25_spill] sm:$0xff] }
 0x377   :  { %v3466_v33 = vpop.f32.mrf.mxu2  ;;  %v2547_v44 = vadd.f32 %v9495_v5, %v11640_v12 }
 0x378   :  { %v3614_v23 = vadd.f32 %v3466_v33, %v3080_v54  ;;  %v10051_v28 = vpop.f32.mrf.mxu0  ;;  %v2950_v54 = vpop.f32.mrf.mxu1 }
 0x379   :  { %11639 = vst [vmem:[#allocation21_spill] sm:$0xff] %v10051_v28  ;;  %v4000_v50 = vpop.f32.mrf.mxu3  ;;  %v3081_v51 = vadd.f32 %v9916_v40, %v2547_v44  ;;  %v3162_v40 = vld [vmem:[%s11533_s0 + $0x160] sm:$0xff] }
 0x37a   :  { %v10064_v35 = vadd.f32 %v4000_v50, %v3614_v23  ;;  %v10080_v50 = vld [vmem:[%s11533_s0 + $0x201] sm:$0xff] }
 0x37b   :  { %6894 = vmatmul.msk.f32.gmra.mxu0 %vm176_vm1, %v10056_v31 }
 0x37c   :  { %6948 = vmatmul.msk.f32.gmra.mxu1 %vm176_vm1, %v2637_v30  ;;  %7004 = vmatmul.msk.f32.gmra.mxu2 %vm176_vm1, %v3161_v11  ;;  %v2638_v30 = vld [vmem:[%s11533_s0 + $0x1a2] sm:$0xff] }
 0x37e   :  { %7070 = vmatmul.msk.f32.gmra.mxu3 %vm176_vm1, %v9552_v45  ;;  %v11641_v45 = vld [vmem:[#allocation26_spill] sm:$0xff] }
 0x37f   :  { %v3469_v33 = vpop.f32.mrf.mxu2  ;;  %v2548_v12 = vadd.f32 %v9521_v17, %v11641_v45 }
 0x380   :  { %v3615_v28 = vadd.f32 %v3469_v33, %v3081_v51  ;;  %v10075_v23 = vpop.f32.mrf.mxu0  ;;  %v2953_v54 = vpop.f32.mrf.mxu1 }
 0x381   :  { %v4003_v5 = vpop.f32.mrf.mxu3  ;;  %v3082_v44 = vadd.f32 %v9945_v57, %v2548_v12  ;;  %v3163_v57 = vld [vmem:[%s11533_s0 + $0x168] sm:$0xff]  ;;  %v5104_v12 = vld [vmem:[%s11536_s3] sm:$0xff] }
 0x382   :  { %v10088_v11 = vadd.f32 %v4003_v5, %v3615_v28  ;;  %v10104_v5 = vld [vmem:[%s11533_s0 + $0x209] sm:$0xff]  ;;  %5269 = vmatpush.msrb.mxu2 %v5104_v12 }
 0x383   :  { %6895 = vmatmul.msk.f32.gmra.mxu0 %vm176_vm1, %v10080_v50  ;;  %v11644_v12 = vld [vmem:[#allocation28_spill] sm:$0xff] }
 0x384   :  { %6949 = vmatmul.msk.f32.gmra.mxu1 %vm176_vm1, %v2638_v30  ;;  %7005 = vmatmul.msk.f32.gmra.mxu2 %vm176_vm1, %v3162_v40  ;;  %v2639_v30 = vld [vmem:[%s11533_s0 + $0x1aa] sm:$0xff]  ;;  %v11642_v40 = vld [vmem:[#allocation27_spill] sm:$0xff] }
 0x385   :  { %v2549_v45 = vadd.f32 %v9547_v8, %v11642_v40 }
 0x386   :  { %7071 = vmatmul.msk.f32.gmra.mxu3 %vm176_vm1, %v9578_v39 }
 0x387   :  { %v3472_v51 = vpop.f32.mrf.mxu2 }
 0x388   :  { %v3616_v33 = vadd.f32 %v3472_v51, %v3082_v44  ;;  %v10099_v28 = vpop.f32.mrf.mxu0  ;;  %v3083_v44 = vadd.f32 %v9973_v37, %v2549_v45  ;;  %v7188_v51 = vld [vmem:[%s11536_s3 + $0x10] sm:$0xff]  ;;  %v7161_v37 = vld [vmem:[%s11536_s3 + $0x8] sm:$0xff]  ;;  %v2956_v40 = vpop.f32.mrf.mxu1 }
 0x389   :  { %v4006_v17 = vpop.f32.mrf.mxu3  ;;  %5379 = vmatpush.msra.mxu3 %v7188_v51  ;;  %5174 = vmatpush.msra.mxu1 %v7161_v37 }
 0x38a   :  { %v10112_v39 = vadd.f32 %v4006_v17, %v3616_v33  ;;  %v4190_v17 = vld [vmem:[%s11533_s0 + $0x22] sm:$0xff] }
 0x38b   :  { %6896 = vmatmul.msk.f32.gmra.mxu0 %vm176_vm1, %v10104_v5 }
 0x38c   :  { %6950 = vmatmul.msk.f32.gmra.mxu1 %vm176_vm1, %v2639_v30  ;;  %7006 = vmatmul.msk.f32.gmra.mxu2 %vm176_vm1, %v3163_v57  ;;  %v3164_v57 = vld [vmem:[%s11533_s0 + $0x170] sm:$0xff] }
 0x38e   :  { %7072 = vmatmul.msk.f32.gmra.mxu3 %vm176_vm1, %v9604_v21  ;;  %v2640_v21 = vld [vmem:[%s11533_s0 + $0x1b2] sm:$0xff] }
 0x38f   :  { %v3475_v54 = vpop.f32.mrf.mxu2 }
 0x390   :  { %v3617_v8 = vadd.f32 %v3475_v54, %v3083_v44  ;;  %v10129_v33 = vpop.f32.mrf.mxu0  ;;  %v2550_v44 = vadd.f32 %v9573_v46, %v11644_v12  ;;  %v2641_v46 = vld [vmem:[%s11533_s0 + $0x1ba] sm:$0xff] }
 0x391   :  { %11643 = vst [vmem:[#allocation60_spill] sm:$0xff] %v10129_v33  ;;  %v4009_v30 = vpop.f32.mrf.mxu3 }
 0x392   :  { %v10143_v45 = vadd.f32 %v4009_v30, %v3617_v8  ;;  %v3084_v51 = vadd.f32 %v10012_v1, %v2550_v44  ;;  %v4191_v8 = vld [vmem:[%s11533_s0 + $0x2a] sm:$0xff]  ;;  %v3165_v1 = vld [vmem:[%s11533_s0 + $0x178] sm:$0xff] }
 0x393   :  { %7097 = vmatmul.msk.f32.vlgmr.msra.gmra.mxu0 %vm176_vm1, %v4190_v17 }
 0x394   :  { %6951 = vmatmul.msk.f32.gmra.mxu1 %vm176_vm1, %v2640_v21  ;;  %7007 = vmatmul.msk.f32.gmra.mxu2 %vm176_vm1, %v3164_v57  ;;  %v2959_v57 = vpop.f32.mrf.mxu1 }
 0x395   :  { %v3167_v57 = vld [vmem:[%s11533_s0 + $0x188] sm:$0xff] }
 0x396   :  { %7073 = vmatmul.msk.f32.gmra.mxu3 %vm176_vm1, %v9626_v58  ;;  %v11645_v58 = vld [vmem:[#allocation29_spill] sm:$0xff] }
 0x397   :  { %v3478_v54 = vpop.f32.mrf.mxu2  ;;  %v2551_v21 = vadd.f32 %v9599_v14, %v11645_v58  ;;  %v2642_v14 = vld [vmem:[%s11533_s0 + $0x1c2] sm:$0xff] }
 0x398   :  { %v3618_v33 = vadd.f32 %v3478_v54, %v3084_v51  ;;  %v10153_v37 = vpop.f32.mrf.mxu0 }
 0x399   :  { %v4012_v17 = vpop.f32.mrf.mxu3  ;;  %v3085_v40 = vadd.f32 %v10044_v24, %v2551_v21  ;;  %v3166_v24 = vld [vmem:[%s11533_s0 + $0x180] sm:$0xff]  ;;  %v2643_v21 = vld [vmem:[%s11533_s0 + $0x1ca] sm:$0xff] }
 0x39a   :  { %v10164_v30 = vadd.f32 %v4012_v17, %v3618_v33  ;;  %v4192_v33 = vld [vmem:[%s11533_s0 + $0x32] sm:$0xff] }
 0x39b   :  { %7098 = vmatmul.msk.f32.gmra.mxu0 %vm176_vm1, %v4191_v8 }
 0x39c   :  { %6952 = vmatmul.msk.f32.gmra.mxu1 %vm176_vm1, %v2641_v46  ;;  %7008 = vmatmul.msk.f32.gmra.mxu2 %vm176_vm1, %v3165_v1  ;;  %v4193_v1 = vld [vmem:[%s11533_s0 + $0x3a] sm:$0xff] }
 0x39e   :  { %7074 = vmatmul.msk.f32.gmra.mxu3 %vm176_vm1, %v9650_v55  ;;  %v2962_v55 = vpop.f32.mrf.mxu1 }
 0x39f   :  { %v3481_v12 = vpop.f32.mrf.mxu2 }
 0x3a0   :  { %v3619_v44 = vadd.f32 %v3481_v12, %v3085_v40  ;;  %v10174_v51 = vpop.f32.mrf.mxu0 }
 0x3a1   :  { %v4015_v54 = vpop.f32.mrf.mxu3 }
 0x3a2   :  { %v10185_v8 = vadd.f32 %v4015_v54, %v3619_v44  ;;  %v4194_v44 = vld [vmem:[%s11533_s0 + $0x42] sm:$0xff]  ;;  %v2644_v54 = vld [vmem:[%s11533_s0 + $0x1d2] sm:$0xff] }
 0x3a3   :  { %7099 = vmatmul.msk.f32.gmra.mxu0 %vm176_vm1, %v4192_v33 }
 0x3a4   :  { %6953 = vmatmul.msk.f32.gmra.mxu1 %vm176_vm1, %v2642_v14  ;;  %7009 = vmatmul.msk.f32.gmra.mxu2 %vm176_vm1, %v3166_v24  ;;  %v3168_v14 = vld [vmem:[%s11533_s0 + $0x190] sm:$0xff] }
 0x3a6   :  { %7075 = vmatmul.msk.f32.gmra.mxu3 %vm176_vm1, %v9674_v43  ;;  %v2965_v40 = vpop.f32.mrf.mxu1 }
 0x3a7   :  { %v3484_v17 = vpop.f32.mrf.mxu2 }
 0x3a8   :  { %v10192_v46 = vpop.f32.mrf.mxu0  ;;  %v4195_v17 = vld [vmem:[%s11533_s0 + $0x4a] sm:$0xff] }
 0x3a9   :  { %v4018_v58 = vpop.f32.mrf.mxu3 }
 0x3aa   :  { %v2645_v58 = vld [vmem:[%s11533_s0 + $0x1da] sm:$0xff] }
 0x3ab   :  { %7100 = vmatmul.msk.f32.gmra.mxu0 %vm176_vm1, %v4193_v1 }
 0x3ac   :  { %6954 = vmatmul.msk.f32.gmra.mxu1 %vm176_vm1, %v2643_v21  ;;  %7010 = vmatmul.msk.f32.gmra.mxu2 %vm176_vm1, %v3167_v57  ;;  %v3169_v21 = vld [vmem:[%s11533_s0 + $0x198] sm:$0xff] }
 0x3ae   :  { %7076 = vmatmul.msk.f32.gmra.mxu3 %vm176_vm1, %v9698_v56  ;;  %v2968_v57 = vpop.f32.mrf.mxu1 }
 0x3af   :  { %v3487_v43 = vpop.f32.mrf.mxu2 }
 0x3b0   :  { %v10208_v12 = vpop.f32.mrf.mxu0 }
 0x3b1   :  { %v4021_v33 = vpop.f32.mrf.mxu3 }
 0x3b3   :  { %7101 = vmatmul.msk.f32.gmra.mxu0 %vm176_vm1, %v4194_v44  ;;  %v4196_v44 = vld [vmem:[%s11533_s0 + $0x52] sm:$0xff] }
 0x3b4   :  { %6955 = vmatmul.msk.f32.gmra.mxu1 %vm176_vm1, %v2644_v54  ;;  %7011 = vmatmul.msk.f32.gmra.mxu2 %vm176_vm1, %v3168_v14  ;;  %v2646_v54 = vld [vmem:[%s11533_s0 + $0x1e2] sm:$0xff] }
 0x3b5   :  { %v3170_v14 = vld [vmem:[%s11533_s0 + $0x1a0] sm:$0xff] }
 0x3b6   :  { %7077 = vmatmul.msk.f32.gmra.mxu3 %vm176_vm1, %v9724_v27 }
 0x3b7   :  { %v3490_v56 = vpop.f32.mrf.mxu2 }
 0x3b8   :  { %v10224_v24 = vpop.f32.mrf.mxu0  ;;  %v11646_v56 = vld [vmem:[#allocation30_spill] sm:$0xff] }
 0x3b9   :  { %v4024_v1 = vpop.f32.mrf.mxu3 }
 0x3bb   :  { %7102 = vmatmul.msk.f32.gmra.mxu0 %vm176_vm1, %v4195_v17  ;;  %v2971_v17 = vpop.f32.mrf.mxu1 }
 0x3bc   :  { %6956 = vmatmul.msk.f32.gmra.mxu1 %vm176_vm1, %v2645_v58  ;;  %7012 = vmatmul.msk.f32.gmra.mxu2 %vm176_vm1, %v3169_v21 }
 0x3be   :  { %7078 = vmatmul.msk.f32.gmra.mxu3 %vm176_vm1, %v9748_v53  ;;  %v2556_v53 = vadd.f32 %v9719_v34, %v11646_v56  ;;  %v2647_v34 = vld [vmem:[%s11533_s0 + $0x1ea] sm:$0xff] }
 0x3bf   :  { %v3493_v27 = vpop.f32.mrf.mxu2 }
 0x3c0   :  { %v10240_v43 = vpop.f32.mrf.mxu0  ;;  %v3090_v1 = vadd.f32 %v2962_v55, %v2556_v53  ;;  %v3171_v55 = vld [vmem:[%s11533_s0 + $0x1a8] sm:$0xff] }
 0x3c1   :  { %v4027_v33 = vpop.f32.mrf.mxu3 }
 0x3c3   :  { %7103 = vmatmul.msk.f32.gmra.mxu0 %vm176_vm1, %v4196_v44  ;;  %v4197_v44 = vld [vmem:[%s11533_s0 + $0x5a] sm:$0xff]  ;;  %v2974_v53 = vpop.f32.mrf.mxu1 }
 0x3c4   :  { %6957 = vmatmul.msk.f32.gmra.mxu1 %vm176_vm1, %v2646_v54  ;;  %7013 = vmatmul.msk.f32.gmra.mxu2 %vm176_vm1, %v3170_v14 }
 0x3c6   :  { %7079 = vmatmul.msk.f32.gmra.mxu3 %vm176_vm1, %v9774_v42  ;;  %v11648_v42 = vld [vmem:[#allocation31_spill] sm:$0xff] }
 0x3c7   :  { %v3496_v58 = vpop.f32.mrf.mxu2  ;;  %v2557_v14 = vadd.f32 %v9743_v22, %v11648_v42  ;;  %v2648_v22 = vld [vmem:[%s11533_s0 + $0x1f2] sm:$0xff] }
 0x3c8   :  { %v3624_v21 = vadd.f32 %v3496_v58, %v3090_v1  ;;  %v10258_v27 = vpop.f32.mrf.mxu0 }
 0x3c9   :  { %11647 = vst [vmem:[#allocation22_spill] sm:$0xff] %v10258_v27  ;;  %v4030_v33 = vpop.f32.mrf.mxu3  ;;  %v3091_v56 = vadd.f32 %v2965_v40, %v2557_v14  ;;  %v3172_v40 = vld [vmem:[%s11533_s0 + $0x1b0] sm:$0xff] }
 0x3ca   :  { %v10269_v54 = vadd.f32 %v4030_v33, %v3624_v21  ;;  %v4198_v21 = vld [vmem:[%s11533_s0 + $0x62] sm:$0xff] }
 0x3cb   :  { %7104 = vmatmul.msk.f32.gmra.mxu0 %vm176_vm1, %v4197_v44  ;;  %v2977_v14 = vpop.f32.mrf.mxu1 }
 0x3cc   :  { %6958 = vmatmul.msk.f32.gmra.mxu1 %vm176_vm1, %v2647_v34  ;;  %7014 = vmatmul.msk.f32.gmra.mxu2 %vm176_vm1, %v3171_v55 }
 0x3ce   :  { %7080 = vmatmul.msk.f32.gmra.mxu3 %vm176_vm1, %v9800_v32  ;;  %v11649_v32 = vld [vmem:[#allocation32_spill] sm:$0xff] }
 0x3cf   :  { %v3499_v1 = vpop.f32.mrf.mxu2  ;;  %v2558_v34 = vadd.f32 %v9769_v36, %v11649_v32  ;;  %v2649_v36 = vld [vmem:[%s11533_s0 + $0x1fa] sm:$0xff] }
 0x3d0   :  { %v3625_v58 = vadd.f32 %v3499_v1, %v3091_v56  ;;  %v10278_v27 = vpop.f32.mrf.mxu0 }
 0x3d1   :  { %v4033_v44 = vpop.f32.mrf.mxu3  ;;  %v3092_v55 = vadd.f32 %v2968_v57, %v2558_v34  ;;  %v3173_v57 = vld [vmem:[%s11533_s0 + $0x1b8] sm:$0xff] }
 0x3d2   :  { %v10289_v33 = vadd.f32 %v4033_v44, %v3625_v58  ;;  %v4199_v58 = vld [vmem:[%s11533_s0 + $0x6a] sm:$0xff] }
 0x3d3   :  { %7105 = vmatmul.msk.f32.gmra.mxu0 %vm176_vm1, %v4198_v21 }
 0x3d4   :  { %6959 = vmatmul.msk.f32.gmra.mxu1 %vm176_vm1, %v2648_v22  ;;  %7015 = vmatmul.msk.f32.gmra.mxu2 %vm176_vm1, %v3172_v40 }
 0x3d6   :  { %7081 = vmatmul.msk.f32.gmra.mxu3 %vm176_vm1, %v9826_v63  ;;  %v11650_v63 = vld [vmem:[#allocation33_spill] sm:$0xff] }
 0x3d7   :  { %v3502_v42 = vpop.f32.mrf.mxu2  ;;  %v2559_v22 = vadd.f32 %v9795_v49, %v11650_v63  ;;  %v2650_v49 = vld [vmem:[%s11533_s0 + $0x202] sm:$0xff] }
 0x3d8   :  { %v3626_v56 = vadd.f32 %v3502_v42, %v3092_v55  ;;  %v10298_v1 = vpop.f32.mrf.mxu0  ;;  %v4200_v42 = vld [vmem:[%s11533_s0 + $0x72] sm:$0xff] }
 0x3d9   :  { %v4036_v21 = vpop.f32.mrf.mxu3  ;;  %v3093_v40 = vadd.f32 %v2971_v17, %v2559_v22  ;;  %v3174_v17 = vld [vmem:[%s11533_s0 + $0x1c0] sm:$0xff] }
 0x3da   :  { %v10309_v44 = vadd.f32 %v4036_v21, %v3626_v56 }
 0x3db   :  { %7106 = vmatmul.msk.f32.gmra.mxu0 %vm176_vm1, %v4199_v58  ;;  %v2980_v58 = vpop.f32.mrf.mxu1 }
 0x3dc   :  { %6960 = vmatmul.msk.f32.gmra.mxu1 %vm176_vm1, %v2649_v36  ;;  %7016 = vmatmul.msk.f32.gmra.mxu2 %vm176_vm1, %v3173_v57 }
 0x3de   :  { %7082 = vmatmul.msk.f32.gmra.mxu3 %vm176_vm1, %v9852_v48  ;;  %v11651_v48 = vld [vmem:[#allocation34_spill] sm:$0xff] }
 0x3df   :  { %v3505_v32 = vpop.f32.mrf.mxu2  ;;  %v2560_v36 = vadd.f32 %v9821_v2, %v11651_v48  ;;  %v2651_v2 = vld [vmem:[%s11533_s0 + $0x20a] sm:$0xff] }
 0x3e0   :  { %v3627_v34 = vadd.f32 %v3505_v32, %v3093_v40  ;;  %v10318_v55 = vpop.f32.mrf.mxu0  ;;  %v4201_v32 = vld [vmem:[%s11533_s0 + $0x7a] sm:$0xff] }
 0x3e1   :  { %v4039_v56 = vpop.f32.mrf.mxu3  ;;  %v3094_v57 = vadd.f32 %v2974_v53, %v2560_v36  ;;  %v3175_v53 = vld [vmem:[%s11533_s0 + $0x1c8] sm:$0xff] }
 0x3e2   :  { %v10329_v21 = vadd.f32 %v4039_v56, %v3627_v34 }
 0x3e3   :  { %7107 = vmatmul.msk.f32.gmra.mxu0 %vm176_vm1, %v4200_v42 }
 0x3e4   :  { %6961 = vmatmul.msk.f32.gmra.mxu1 %vm176_vm1, %v2650_v49  ;;  %7017 = vmatmul.msk.f32.gmra.mxu2 %vm176_vm1, %v3174_v17  ;;  %v2983_v49 = vpop.f32.mrf.mxu1 }
 0x3e6   :  { %7083 = vmatmul.msk.f32.gmra.mxu3 %vm176_vm1, %v9876_v20  ;;  %v11652_v20 = vld [vmem:[#allocation35_spill] sm:$0xff] }
 0x3e7   :  { %v3508_v63 = vpop.f32.mrf.mxu2  ;;  %v2561_v56 = vadd.f32 %v9847_v9, %v11652_v20  ;;  %v3176_v9 = vld [vmem:[%s11533_s0 + $0x1d0] sm:$0xff] }
 0x3e8   :  { %v3628_v22 = vadd.f32 %v3508_v63, %v3094_v57  ;;  %v10338_v40 = vpop.f32.mrf.mxu0  ;;  %v4202_v63 = vld [vmem:[%s11533_s0 + $0x82] sm:$0xff] }
 0x3e9   :  { %v4042_v34 = vpop.f32.mrf.mxu3  ;;  %v3095_v17 = vadd.f32 %v2977_v14, %v2561_v56  ;;  %v11653_v14 = vld [vmem:[#allocation36_spill] sm:$0xff]  ;;  %v4203_v56 = vld [vmem:[%s11533_s0 + $0x8a] sm:$0xff] }
 0x3ea   :  { %v10349_v42 = vadd.f32 %v4042_v34, %v3628_v22  ;;  %v2562_v34 = vadd.f32 %v9871_v18, %v11653_v14  ;;  %v11654_v18 = vld [vmem:[#allocation37_spill] sm:$0xff] }
 0x3eb   :  { %7108 = vmatmul.msk.f32.gmra.mxu0 %vm176_vm1, %v4201_v32 }
 0x3ec   :  { %6962 = vmatmul.msk.f32.gmra.mxu1 %vm176_vm1, %v2651_v2  ;;  %7018 = vmatmul.msk.f32.gmra.mxu2 %vm176_vm1, %v3175_v53 }
 0x3ee   :  { %7084 = vmatmul.msk.f32.gmra.mxu3 %vm176_vm1, %v9902_v26  ;;  %v3096_v26 = vadd.f32 %v2980_v58, %v2562_v34  ;;  %v2563_v58 = vadd.f32 %v9897_v0, %v11654_v18  ;;  %v3178_v34 = vld [vmem:[%s11533_s0 + $0x1e0] sm:$0xff] }
 0x3ef   :  { %v3511_v48 = vpop.f32.mrf.mxu2 }
 0x3f0   :  { %v3629_v36 = vadd.f32 %v3511_v48, %v3095_v17  ;;  %v2512_v57 = vpop.f32.mrf.mxu0  ;;  %v3177_v48 = vld [vmem:[%s11533_s0 + $0x1d8] sm:$0xff] }
 0x3f1   :  { %v4045_v22 = vpop.f32.mrf.mxu3 }
 0x3f2   :  { %v10364_v32 = vadd.f32 %v4045_v22, %v3629_v36 }
 0x3f3   :  { %7109 = vmatmul.msk.f32.gmra.mxu0 %vm176_vm1, %v4202_v63 }
 0x3f4   :  { %7019 = vmatmul.msk.f32.gmra.mxu2 %vm176_vm1, %v3176_v9  ;;  %v4204_v9 = vld [vmem:[%s11533_s0 + $0x92] sm:$0xff] }
 0x3f6   :  { %7085 = vmatmul.msk.f32.gmra.mxu3 %vm176_vm1, %v9928_v16  ;;  %v3097_v16 = vadd.f32 %v2983_v49, %v2563_v58  ;;  %v3179_v49 = vld [vmem:[%s11533_s0 + $0x1e8] sm:$0xff]  ;;  %v3181_v58 = vld [vmem:[%s11533_s0 + $0x1f8] sm:$0xff] }
 0x3f7   :  { %v3514_v2 = vpop.f32.mrf.mxu2 }
 0x3f8   :  { %v3630_v53 = vadd.f32 %v3514_v2, %v3096_v26  ;;  %v2515_v20 = vpop.f32.mrf.mxu0 }
 0x3f9   :  { %v4048_v17 = vpop.f32.mrf.mxu3 }
 0x3fa   :  { %v10378_v36 = vadd.f32 %v4048_v17, %v3630_v53  ;;  %v4206_v53 = vld [vmem:[%s11533_s0 + $0xa2] sm:$0xff] }
 0x3fb   :  { %7110 = vmatmul.msk.f32.gmra.mxu0 %vm176_vm1, %v4203_v56  ;;  %v3180_v56 = vld [vmem:[%s11533_s0 + $0x1f0] sm:$0xff] }
 0x3fc   :  { %7020 = vmatmul.msk.f32.gmra.mxu2 %vm176_vm1, %v3177_v48 }
 0x3fe   :  { %7086 = vmatmul.msk.f32.gmra.mxu3 %vm176_vm1, %v9954_v62  ;;  %v4205_v62 = vld [vmem:[%s11533_s0 + $0x9a] sm:$0xff] }
 0x3ff   :  { %v3517_v57 = vpop.f32.mrf.mxu2 }
 0x400   :  { %v3631_v63 = vadd.f32 %v3517_v57, %v3097_v16  ;;  %v2518_v22 = vpop.f32.mrf.mxu0 }
 0x401   :  { %v4051_v14 = vpop.f32.mrf.mxu3  ;;  %v3182_v22 = vld [vmem:[%s11533_s0 + $0x200] sm:$0xff] }
 0x402   :  { %v10392_v26 = vadd.f32 %v4051_v14, %v3631_v63 }
 0x403   :  { %7111 = vmatmul.msk.f32.gmra.mxu0 %vm176_vm1, %v4204_v9 }
 0x404   :  { %7021 = vmatmul.msk.f32.gmra.mxu2 %vm176_vm1, %v3178_v34 }
 0x406   :  { %7087 = vmatmul.msk.f32.gmra.mxu3 %vm176_vm1, %v9980_v47  ;;  %v10411_v47 = vld [vmem:[%s11535_s2] ss:$0 sm:$0xff] }
 0x408   :  { %v2521_v0 = vpop.f32.mrf.mxu0 }
 0x409   :  { %v3183_v0 = vld [vmem:[%s11533_s0 + $0x208] sm:$0xff] }
 0x40b   :  { %7112 = vmatmul.msk.f32.gmra.mxu0 %vm176_vm1, %v4205_v62 }
 0x40c   :  { %7022 = vmatmul.msk.f32.gmra.mxu2 %vm176_vm1, %v3179_v49 }
 0x40e   :  { %7088 = vmatmul.msk.f32.gmra.mxu3 %vm176_vm1, %v10004_v61 }
 0x410   :  { %v4468_v2 = vpop.f32.mrf.mxu0 }
 0x411   :  { %v4660_v20 = vadd.f32 %v4468_v2, %v9510_v29  ;;  %v4207_v29 = vld [vmem:[%s11533_s0 + $0xaa] sm:$0xff] }
 0x413   :  { %v4728_v17 = vadd.f32 %v10411_v47, %v4660_v20  ;;  %7113 = vmatmul.msk.f32.gmra.mxu0 %vm176_vm1, %v4206_v53  ;;  %v3184_v53 = vld [vmem:[%s11533_s0 + $0x210] sm:$0xff] }
 0x414   :  { %7023 = vmatmul.msk.f32.gmra.mxu2 %vm176_vm1, %v3180_v56 }
 0x415   :  { %v4792_v61 = vmax.f32 %v4728_v17, 0.0 }
 0x416   :  { %7089 = vmatmul.msk.f32.gmra.mxu3 %vm176_vm1, %v10030_v4 }
 0x417   :  { %4857 = vst.msk [vmem:[#allocation2] sm:$0xff] %vm4856_vm2, %v4792_v61 }
 0x418   :  { %v4471_v48 = vpop.f32.mrf.mxu0 }
 0x419   :  { %v4661_v18 = vadd.f32 %v4471_v48, %v9534_v10  ;;  %v4208_v10 = vld [vmem:[%s11533_s0 + $0xb2] sm:$0xff] }
 0x41b   :  { %v4729_v16 = vadd.f32 %v10411_v47, %v4661_v18  ;;  %7114 = vmatmul.msk.f32.gmra.mxu0 %vm176_vm1, %v4207_v29 }
 0x41c   :  { %7024 = vmatmul.msk.f32.gmra.mxu2 %vm176_vm1, %v3181_v58 }
 0x41d   :  { %v4793_v4 = vmax.f32 %v4729_v16, 0.0  ;;  %v4211_v16 = vld [vmem:[%s11533_s0 + $0xca] sm:$0xff] }
 0x41e   :  { %7090 = vmatmul.msk.f32.gmra.mxu3 %vm176_vm1, %v10056_v31 }
 0x41f   :  { %4858 = vst.msk [vmem:[#allocation2 + $0x8] sm:$0xff] %vm4856_vm2, %v4793_v4 }
 0x420   :  { %v4474_v57 = vpop.f32.mrf.mxu0 }
 0x421   :  { %v4662_v63 = vadd.f32 %v4474_v57, %v9560_v19  ;;  %v4209_v19 = vld [vmem:[%s11533_s0 + $0xba] sm:$0xff] }
 0x422   :  { %v3185_v57 = vld [vmem:[%s11533_s0 + $0x218] sm:$0xff] }
 0x423   :  { %v4730_v9 = vadd.f32 %v10411_v47, %v4662_v63  ;;  %7115 = vmatmul.msk.f32.gmra.mxu0 %vm176_vm1, %v4208_v10 }
 0x424   :  { %7025 = vmatmul.msk.f32.gmra.mxu2 %vm176_vm1, %v3182_v22  ;;  %v3719_v22 = vld [vmem:[%s11533_s0 + $0x219] sm:$0xff] }
 0x425   :  { %v4794_v31 = vmax.f32 %v4730_v9, 0.0 }
 0x426   :  { %7091 = vmatmul.msk.f32.gmra.mxu3 %vm176_vm1, %v10080_v50  ;;  %v4921_v56 = vld [vmem:[#allocation2] ss:$2 sm:$0x7f]  ;;  %v4923_v17 = vld [vmem:[#allocation2 + $0x1] ss:$2 sm:$0x7f] }
 0x427   :  { %4859 = vst.msk [vmem:[#allocation2 + $0x10] sm:$0xff] %vm4856_vm2, %v4794_v31  ;;  %v4212_v31 = vld [vmem:[%s11533_s0 + $0xd2] sm:$0xff] }
 0x428   :  { %v4477_v14 = vpop.f32.mrf.mxu0 }
 0x429   :  { %v4663_v34 = vadd.f32 %v4477_v14, %v9586_v13  ;;  %v4210_v13 = vld [vmem:[%s11533_s0 + $0xc2] sm:$0xff] }
 0x42b   :  { %v4731_v62 = vadd.f32 %v10411_v47, %v4663_v34  ;;  %7116 = vmatmul.msk.f32.gmra.mxu0 %vm176_vm1, %v4209_v19 }
 0x42c   :  { %7026 = vmatmul.msk.f32.gmra.mxu2 %vm176_vm1, %v3183_v0 }
 0x42d   :  { %v4795_v50 = vmax.f32 %v4731_v62, 0.0  ;;  %v4213_v62 = vld [vmem:[%s11533_s0 + $0xda] sm:$0xff] }
 0x42e   :  { %7092 = vmatmul.msk.f32.gmra.mxu3 %vm176_vm1, %v10104_v5  ;;  %v3718_v5 = vld [vmem:[%s11533_s0 + $0x211] sm:$0xff] }
 0x42f   :  { %4860 = vst.msk [vmem:[#allocation2 + $0x18] sm:$0xff] %vm4856_vm2, %v4795_v50 }
 0x430   :  { %v4480_v49 = vpop.f32.mrf.mxu0 }
 0x431   :  { %v4664_v2 = vadd.f32 %v4480_v49, %v9612_v15  ;;  %v4928_v15 = vmax.f32 %v4921_v56, %v4923_v17 }
 0x433   :  { %v4732_v20 = vadd.f32 %v10411_v47, %v4664_v2  ;;  %7117 = vmatmul.msk.f32.gmra.mxu0 %vm176_vm1, %v4210_v13  ;;  %v4214_v2 = vld [vmem:[%s11533_s0 + $0xe2] sm:$0xff] }
 0x434   :  { %7027 = vmatmul.msk.f32.gmra.mxu2 %vm176_vm1, %v3184_v53 }
 0x435   :  { %v4796_v61 = vmax.f32 %v4732_v20, 0.0 }
 0x436   :  { %v4925_v48 = vld [vmem:[#allocation2 + $0x10] ss:$2 sm:$0x7f]  ;;  %v4927_v29 = vld [vmem:[#allocation2 + $0x11] ss:$2 sm:$0x7f]  ;;  %7093 = vmatmul.msk.f32.gmra.mxu3 %vm176_vm1, %v3718_v5 }
 0x437   :  { %v4929_v18 = vmax.f32 %v4925_v48, %v4927_v29  ;;  %4861 = vst.msk [vmem:[#allocation2 + $0x20] sm:$0xff] %vm4856_vm2, %v4796_v61 }
 0x438   :  { %v4483_v58 = vpop.f32.mrf.mxu0 }
 0x439   :  { %v4665_v4 = vadd.f32 %v4483_v58, %v9636_v41  ;;  %v4930_v10 = vmax.f32 %v4928_v15, %v4929_v18  ;;  %v4215_v18 = vld [vmem:[%s11533_s0 + $0xea] sm:$0xff] }
 0x43b   :  { %v4733_v63 = vadd.f32 %v10411_v47, %v4665_v4  ;;  %7118 = vmatmul.msk.f32.gmra.mxu0 %vm176_vm1, %v4211_v16  ;;  %4932 = vst.msk [vmem:[#allocation3] sm:$0x7f] %vm4931_vm3, %v4930_v10  ;;  %v4216_v10 = vld [vmem:[%s11533_s0 + $0xf2] sm:$0xff] }
 0x43c   :  { %7028 = vmatmul.msk.f32.gmra.mxu2 %vm176_vm1, %v3185_v57 }
 0x43d   :  { %v4797_v9 = vmax.f32 %v4733_v63, 0.0 }
 0x43e   :  { %7094 = vmatmul.msk.f32.gmra.mxu3 %vm176_vm1, %v3719_v22 }
 0x43f   :  { %4862 = vst.msk [vmem:[#allocation2 + $0x28] sm:$0xff] %vm4856_vm2, %v4797_v9 }
 0x440   :  { %v4486_v41 = vpop.f32.mrf.mxu0 }
 0x441   :  { %v4666_v14 = vadd.f32 %v4486_v41, %v9658_v6  ;;  %v10529_v41 = vpop.f32.mrf.mxu1 }
 0x443   :  { %v4734_v19 = vadd.f32 %v10411_v47, %v4666_v14  ;;  %7119 = vmatmul.msk.f32.gmra.mxu0 %vm176_vm1, %v4212_v31  ;;  %v10534_v14 = vpop.f32.mrf.mxu2 }
 0x445   :  { %v4798_v34 = vmax.f32 %v4734_v19, 0.0  ;;  %v10536_v19 = vpop.f32.mrf.mxu3 }
 0x446   :  { %v4934_v5 = vld [vmem:[#allocation2 + $0x20] ss:$2 sm:$0x7f] }
 0x447   :  { %4863 = vst.msk [vmem:[#allocation2 + $0x30] sm:$0xff] %vm4856_vm2, %v4798_v34 }
 0x448   :  { %v4489_v0 = vpop.f32.mrf.mxu0 }
 0x449   :  { %v4667_v50 = vadd.f32 %v4489_v0, %v9682_v59  ;;  %v4936_v59 = vld [vmem:[#allocation2 + $0x21] ss:$2 sm:$0x7f] }
 0x44a   :  { %v4941_v48 = vmax.f32 %v4934_v5, %v4936_v59  ;;  %v4217_v0 = vld [vmem:[%s11533_s0 + $0xfa] sm:$0xff] }
 0x44b   :  { %v4735_v49 = vadd.f32 %v10411_v47, %v4667_v50  ;;  %7120 = vmatmul.msk.f32.gmra.mxu0 %vm176_vm1, %v4213_v62  ;;  %v11655_v62 = vld [vmem:[#allocation8_spill] sm:$0xff] }
 0x44d   :  { %v4799_v13 = vmax.f32 %v4735_v49, 0.0 }
 0x44f   :  { %4864 = vst.msk [vmem:[#allocation2 + $0x38] sm:$0xff] %vm4856_vm2, %v4799_v13 }
 0x450   :  { %v4492_v6 = vpop.f32.mrf.mxu0 }
 0x451   :  { %v4668_v53 = vadd.f32 %v4492_v6, %v9706_v3 }
 0x453   :  { %v4736_v20 = vadd.f32 %v10411_v47, %v4668_v53  ;;  %7121 = vmatmul.msk.f32.gmra.mxu0 %vm176_vm1, %v4214_v2  ;;  %v4218_v2 = vld [vmem:[%s11533_s0 + $0x102] sm:$0xff]  ;;  %v11656_v53 = vld [vmem:[#allocation9_spill] sm:$0xff] }
 0x455   :  { %v4800_v56 = vmax.f32 %v4736_v20, 0.0 }
 0x456   :  { %v4938_v17 = vld [vmem:[#allocation2 + $0x30] ss:$2 sm:$0x7f]  ;;  %v4940_v61 = vld [vmem:[#allocation2 + $0x31] ss:$2 sm:$0x7f] }
 0x457   :  { %v4942_v29 = vmax.f32 %v4938_v17, %v4940_v61  ;;  %4865 = vst.msk [vmem:[#allocation2 + $0x40] sm:$0xff] %vm4856_vm2, %v4800_v56 }
 0x458   :  { %v4495_v15 = vpop.f32.mrf.mxu0 }
 0x459   :  { %v4669_v3 = vadd.f32 %v4495_v15, %v9732_v38  ;;  %v4943_v58 = vmax.f32 %v4941_v48, %v4942_v29 }
 0x45b   :  { %v4737_v16 = vadd.f32 %v10411_v47, %v4669_v3  ;;  %7122 = vmatmul.msk.f32.gmra.mxu0 %vm176_vm1, %v4215_v18  ;;  %4944 = vst.msk [vmem:[#allocation3 + $0x7] sm:$0x7f] %vm4931_vm3, %v4943_v58  ;;  %v4219_v3 = vld [vmem:[%s11533_s0 + $0x10a] sm:$0xff]  ;;  %v11657_v58 = vld [vmem:[#allocation10_spill] sm:$0xff] }
 0x45d   :  { %v4801_v4 = vmax.f32 %v4737_v16, 0.0 }
 0x45f   :  { %4866 = vst.msk [vmem:[#allocation2 + $0x48] sm:$0xff] %vm4856_vm2, %v4801_v4 }
 0x460   :  { %v4498_v57 = vpop.f32.mrf.mxu0 }
 0x461   :  { %v4670_v63 = vadd.f32 %v4498_v57, %v9758_v52 }
 0x462   :  { %v5105_v22 = vld [vmem:[#allocation3 + $0x1] sm:$0xff] }
 0x463   :  { %v5091_v9 = vld [vmem:[#allocation3] sm:$0xff]  ;;  %v4738_v31 = vadd.f32 %v10411_v47, %v4670_v63  ;;  %7123 = vmatmul.msk.f32.gmra.mxu0 %vm176_vm1, %v4216_v10  ;;  %7162 = vmatmul.msk.f32.vlgmr.msra.gmra.mxu1 %vm4856_vm2, %v5105_v22  ;;  %v4220_v22 = vld [vmem:[%s11533_s0 + $0x112] sm:$0xff] }
 0x464   :  { %v5310_v38 = vld [vmem:[#allocation3 + $0x2] sm:$0xff]  ;;  %7175 = vmatmul.msk.f32.vlgmr.msrb.gmra.mxu2 %vm4856_vm2, %v5091_v9  ;;  %v11658_v9 = vld [vmem:[#allocation11_spill] sm:$0xff] }
 0x465   :  { %7189 = vmatmul.msk.f32.vlgmr.msra.gmra.mxu3 %vm4856_vm2, %v5310_v38  ;;  %v4802_v52 = vmax.f32 %v4738_v31, 0.0 }
 0x466   :  { %v4946_v59 = vld [vmem:[#allocation2 + $0x40] ss:$2 sm:$0x7f]  ;;  %v4948_v56 = vld [vmem:[#allocation2 + $0x41] ss:$2 sm:$0x7f] }
 0x467   :  { %4867 = vst.msk [vmem:[#allocation2 + $0x50] sm:$0xff] %vm4856_vm2, %v4802_v52  ;;  %v4953_v29 = vmax.f32 %v4946_v59, %v4948_v56  ;;  %v4222_v56 = vld [vmem:[%s11533_s0 + $0x122] sm:$0xff] }
 0x468   :  { %v4501_v34 = vpop.f32.mrf.mxu0 }
 0x469   :  { %v4671_v50 = vadd.f32 %v4501_v34, %v11655_v62 }
 0x46b   :  { %v4739_v49 = vadd.f32 %v10411_v47, %v4671_v50  ;;  %7124 = vmatmul.msk.f32.gmra.mxu0 %vm176_vm1, %v4217_v0  ;;  %v10567_v0 = vpop.f32.mrf.mxu1  ;;  %v10572_v50 = vpop.f32.mrf.mxu2 }
 0x46d   :  { %v4803_v13 = vmax.f32 %v4739_v49, 0.0  ;;  %v10574_v49 = vpop.f32.mrf.mxu3 }
 0x46f   :  { %4868 = vst.msk [vmem:[#allocation2 + $0x58] sm:$0xff] %vm4856_vm2, %v4803_v13 }
 0x470   :  { %v4504_v6 = vpop.f32.mrf.mxu0 }
 0x471   :  { %v4672_v20 = vadd.f32 %v4504_v6, %v11656_v53 }
 0x473   :  { %v4740_v5 = vadd.f32 %v10411_v47, %v4672_v20  ;;  %7125 = vmatmul.msk.f32.gmra.mxu0 %vm176_vm1, %v4218_v2  ;;  %v4221_v2 = vld [vmem:[%s11533_s0 + $0x11a] sm:$0xff] }
 0x475   :  { %v4804_v17 = vmax.f32 %v4740_v5, 0.0 }
 0x476   :  { %v4950_v61 = vld [vmem:[#allocation2 + $0x50] ss:$2 sm:$0x7f]  ;;  %v4952_v48 = vld [vmem:[#allocation2 + $0x51] ss:$2 sm:$0x7f] }
 0x477   :  { %4869 = vst.msk [vmem:[#allocation2 + $0x60] sm:$0xff] %vm4856_vm2, %v4804_v17  ;;  %v4954_v15 = vmax.f32 %v4950_v61, %v4952_v48  ;;  %v11659_v17 = vld [vmem:[#allocation12_spill] sm:$0xff] }
 0x478   :  { %v4507_v18 = vpop.f32.mrf.mxu0 }
 0x479   :  { %v4673_v16 = vadd.f32 %v4507_v18, %v11657_v58  ;;  %v4955_v4 = vmax.f32 %v4953_v29, %v4954_v15 }
 0x47b   :  { %v4741_v57 = vadd.f32 %v10411_v47, %v4673_v16  ;;  %7126 = vmatmul.msk.f32.gmra.mxu0 %vm176_vm1, %v4219_v3  ;;  %4956 = vst.msk [vmem:[#allocation3 + $0xe] sm:$0x7f] %vm4931_vm3, %v4955_v4 }
 0x47d   :  { %v4805_v10 = vmax.f32 %v4741_v57, 0.0  ;;  %v4223_v57 = vld [vmem:[%s11533_s0 + $0x12a] sm:$0xff] }
 0x47f   :  { %4870 = vst.msk [vmem:[#allocation2 + $0x68] sm:$0xff] %vm4856_vm2, %v4805_v10  ;;  %v11660_v10 = vld [vmem:[#allocation14_spill] sm:$0xff] }
 0x480   :  { %v4510_v63 = vpop.f32.mrf.mxu0 }
 0x481   :  { %v4674_v38 = vadd.f32 %v4510_v63, %v11658_v9 }
 0x482   :  { %v5106_v31 = vld [vmem:[#allocation3 + $0x9] sm:$0xff] }
 0x483   :  { %v5092_v52 = vld [vmem:[#allocation3 + $0x8] sm:$0xff]  ;;  %v4742_v62 = vadd.f32 %v10411_v47, %v4674_v38  ;;  %7127 = vmatmul.msk.f32.gmra.mxu0 %vm176_vm1, %v4220_v22  ;;  %7163 = vmatmul.msk.f32.gmra.mxu1 %vm4856_vm2, %v5106_v31 }
 0x484   :  { %v5311_v34 = vld [vmem:[#allocation3 + $0xa] sm:$0xff]  ;;  %7176 = vmatmul.msk.f32.gmra.mxu2 %vm4856_vm2, %v5092_v52  ;;  %v4224_v52 = vld [vmem:[%s11533_s0 + $0x132] sm:$0xff] }
 0x485   :  { %7190 = vmatmul.msk.f32.gmra.mxu3 %vm4856_vm2, %v5311_v34  ;;  %v4806_v13 = vmax.f32 %v4742_v62, 0.0  ;;  %v11661_v34 = vld [vmem:[#allocation16_spill] sm:$0xff] }
 0x486   :  { %v4958_v29 = vld [vmem:[#allocation2 + $0x60] ss:$2 sm:$0x7f] }
 0x487   :  { %4871 = vst.msk [vmem:[#allocation2 + $0x70] sm:$0xff] %vm4856_vm2, %v4806_v13 }
 0x488   :  { %v4513_v6 = vpop.f32.mrf.mxu0 }
 0x489   :  { %v4675_v53 = vadd.f32 %v4513_v6, %v9886_v25  ;;  %v4960_v25 = vld [vmem:[#allocation2 + $0x61] ss:$2 sm:$0x7f] }
 0x48a   :  { %v4965_v58 = vmax.f32 %v4958_v29, %v4960_v25 }
 0x48b   :  { %v4743_v20 = vadd.f32 %v10411_v47, %v4675_v53  ;;  %7128 = vmatmul.msk.f32.gmra.mxu0 %vm176_vm1, %v4221_v2  ;;  %v10605_v53 = vpop.f32.mrf.mxu1 }
 0x48d   :  { %v4807_v5 = vmax.f32 %v4743_v20, 0.0 }
 0x48f   :  { %4872 = vst.msk [vmem:[#allocation2 + $0x78] sm:$0xff] %vm4856_vm2, %v4807_v5  ;;  %v10610_v5 = vpop.f32.mrf.mxu2 }
 0x490   :  { %v4516_v59 = vpop.f32.mrf.mxu0 }
 0x491   :  { %v4676_v61 = vadd.f32 %v4516_v59, %v11659_v17  ;;  %v10612_v59 = vpop.f32.mrf.mxu3 }
 0x493   :  { %v4744_v48 = vadd.f32 %v10411_v47, %v4676_v61  ;;  %7129 = vmatmul.msk.f32.gmra.mxu0 %vm176_vm1, %v4222_v56  ;;  %v4225_v61 = vld [vmem:[%s11533_s0 + $0x13a] sm:$0xff] }
 0x495   :  { %v4808_v15 = vmax.f32 %v4744_v48, 0.0  ;;  %v11662_v48 = vld [vmem:[#allocation18_spill] sm:$0xff] }
 0x496   :  { %v4962_v18 = vld [vmem:[#allocation2 + $0x70] ss:$2 sm:$0x7f]  ;;  %v4964_v3 = vld [vmem:[#allocation2 + $0x71] ss:$2 sm:$0x7f] }
 0x497   :  { %v4966_v16 = vmax.f32 %v4962_v18, %v4964_v3  ;;  %4873 = vst.msk [vmem:[#allocation2 + $0x80] sm:$0xff] %vm4856_vm2, %v4808_v15  ;;  %v4226_v3 = vld [vmem:[%s11533_s0 + $0x142] sm:$0xff] }
 0x498   :  { %v4519_v4 = vpop.f32.mrf.mxu0 }
 0x499   :  { %v4677_v63 = vadd.f32 %v4519_v4, %v11660_v10  ;;  %v4967_v22 = vmax.f32 %v4965_v58, %v4966_v16 }
 0x49b   :  { %v4745_v9 = vadd.f32 %v10411_v47, %v4677_v63  ;;  %7130 = vmatmul.msk.f32.gmra.mxu0 %vm176_vm1, %v4223_v57  ;;  %4968 = vst.msk [vmem:[#allocation3 + $0x15] sm:$0x7f] %vm4931_vm3, %v4967_v22 }
 0x49d   :  { %v4809_v38 = vmax.f32 %v4745_v9, 0.0 }
 0x49f   :  { %4874 = vst.msk [vmem:[#allocation2 + $0x88] sm:$0xff] %vm4856_vm2, %v4809_v38 }
 0x4a0   :  { %v4522_v31 = vpop.f32.mrf.mxu0 }
 0x4a1   :  { %v4678_v62 = vadd.f32 %v4522_v31, %v11661_v34 }
 0x4a2   :  { %v5107_v13 = vld [vmem:[#allocation3 + $0x11] sm:$0xff] }
 0x4a3   :  { %v5093_v6 = vld [vmem:[#allocation3 + $0x10] sm:$0xff]  ;;  %v4746_v20 = vadd.f32 %v10411_v47, %v4678_v62  ;;  %7131 = vmatmul.msk.f32.gmra.mxu0 %vm176_vm1, %v4224_v52  ;;  %7164 = vmatmul.msk.f32.gmra.mxu1 %vm4856_vm2, %v5107_v13 }
 0x4a4   :  { %v5312_v2 = vld [vmem:[#allocation3 + $0x12] sm:$0xff]  ;;  %7177 = vmatmul.msk.f32.gmra.mxu2 %vm4856_vm2, %v5093_v6  ;;  %v4227_v52 = vld [vmem:[%s11533_s0 + $0x14a] sm:$0xff] }
 0x4a5   :  { %7191 = vmatmul.msk.f32.gmra.mxu3 %vm4856_vm2, %v5312_v2  ;;  %v4810_v56 = vmax.f32 %v4746_v20, 0.0  ;;  %v4228_v2 = vld [vmem:[%s11533_s0 + $0x152] sm:$0xff] }
 0x4a6   :  { %v4970_v4 = vld [vmem:[#allocation2 + $0x80] ss:$2 sm:$0x7f]  ;;  %v4972_v57 = vld [vmem:[#allocation2 + $0x81] ss:$2 sm:$0x7f] }
 0x4a7   :  { %4875 = vst.msk [vmem:[#allocation2 + $0x90] sm:$0xff] %vm4856_vm2, %v4810_v56  ;;  %v4977_v9 = vmax.f32 %v4970_v4, %v4972_v57  ;;  %v4230_v57 = vld [vmem:[%s11533_s0 + $0x162] sm:$0xff] }
 0x4a8   :  { %v4525_v17 = vpop.f32.mrf.mxu0 }
 0x4a9   :  { %v4679_v29 = vadd.f32 %v4525_v17, %v11662_v48 }
 0x4ab   :  { %v4747_v25 = vadd.f32 %v10411_v47, %v4679_v29  ;;  %7132 = vmatmul.msk.f32.gmra.mxu0 %vm176_vm1, %v4225_v61  ;;  %v10643_v61 = vpop.f32.mrf.mxu1  ;;  %v10648_v29 = vpop.f32.mrf.mxu2 }
 0x4ad   :  { %v4811_v15 = vmax.f32 %v4747_v25, 0.0  ;;  %v10650_v25 = vpop.f32.mrf.mxu3 }
 0x4af   :  { %4876 = vst.msk [vmem:[#allocation2 + $0x98] sm:$0xff] %vm4856_vm2, %v4811_v15 }
 0x4b0   :  { %v4528_v18 = vpop.f32.mrf.mxu0 }
 0x4b1   :  { %v4680_v58 = vadd.f32 %v4528_v18, %v10014_v60  ;;  %v4229_v18 = vld [vmem:[%s11533_s0 + $0x15a] sm:$0xff] }
 0x4b3   :  { %v4748_v16 = vadd.f32 %v10411_v47, %v4680_v58  ;;  %7133 = vmatmul.msk.f32.gmra.mxu0 %vm176_vm1, %v4226_v3 }
 0x4b5   :  { %v4812_v10 = vmax.f32 %v4748_v16, 0.0 }
 0x4b6   :  { %v4974_v63 = vld [vmem:[#allocation2 + $0x90] ss:$2 sm:$0x7f]  ;;  %v4976_v22 = vld [vmem:[#allocation2 + $0x91] ss:$2 sm:$0x7f] }
 0x4b7   :  { %v4978_v38 = vmax.f32 %v4974_v63, %v4976_v22  ;;  %4877 = vst.msk [vmem:[#allocation2 + $0xa0] sm:$0xff] %vm4856_vm2, %v4812_v10 }
 0x4b8   :  { %v4531_v31 = vpop.f32.mrf.mxu0 }
 0x4b9   :  { %v4681_v60 = vadd.f32 %v4531_v31, %v10038_v7  ;;  %v4979_v34 = vmax.f32 %v4977_v9, %v4978_v38 }
 0x4bb   :  { %v4749_v62 = vadd.f32 %v10411_v47, %v4681_v60  ;;  %7134 = vmatmul.msk.f32.gmra.mxu0 %vm176_vm1, %v4227_v52  ;;  %4980 = vst.msk [vmem:[#allocation3 + $0x1c] sm:$0x7f] %vm4931_vm3, %v4979_v34 }
 0x4bd   :  { %v4813_v13 = vmax.f32 %v4749_v62, 0.0  ;;  %v4231_v62 = vld [vmem:[%s11533_s0 + $0x16a] sm:$0xff] }
 0x4bf   :  { %4878 = vst.msk [vmem:[#allocation2 + $0xa8] sm:$0xff] %vm4856_vm2, %v4813_v13 }
 0x4c0   :  { %v4534_v6 = vpop.f32.mrf.mxu0 }
 0x4c1   :  { %v4682_v20 = vadd.f32 %v4534_v6, %v10064_v35 }
 0x4c2   :  { %v5108_v56 = vld [vmem:[#allocation3 + $0x19] sm:$0xff] }
 0x4c3   :  { %v5094_v17 = vld [vmem:[#allocation3 + $0x18] sm:$0xff]  ;;  %v4750_v48 = vadd.f32 %v10411_v47, %v4682_v20  ;;  %7135 = vmatmul.msk.f32.gmra.mxu0 %vm176_vm1, %v4228_v2  ;;  %7165 = vmatmul.msk.f32.gmra.mxu1 %vm4856_vm2, %v5108_v56 }
 0x4c4   :  { %v5313_v7 = vld [vmem:[#allocation3 + $0x1a] sm:$0xff]  ;;  %7178 = vmatmul.msk.f32.gmra.mxu2 %vm4856_vm2, %v5094_v17  ;;  %v4232_v56 = vld [vmem:[%s11533_s0 + $0x172] sm:$0xff] }
 0x4c5   :  { %7192 = vmatmul.msk.f32.gmra.mxu3 %vm4856_vm2, %v5313_v7  ;;  %v4814_v35 = vmax.f32 %v4750_v48, 0.0 }
 0x4c6   :  { %v4982_v22 = vld [vmem:[#allocation2 + $0xa0] ss:$2 sm:$0x7f] }
 0x4c7   :  { %4879 = vst.msk [vmem:[#allocation2 + $0xb0] sm:$0xff] %vm4856_vm2, %v4814_v35  ;;  %v10681_v35 = vpop.f32.mrf.mxu1 }
 0x4c8   :  { %v4537_v15 = vpop.f32.mrf.mxu0 }
 0x4c9   :  { %v4683_v3 = vadd.f32 %v4537_v15, %v10088_v11  ;;  %v4984_v11 = vld [vmem:[#allocation2 + $0xa1] ss:$2 sm:$0x7f] }
 0x4ca   :  { %v4989_v52 = vmax.f32 %v4982_v22, %v4984_v11  ;;  %v4234_v22 = vld [vmem:[%s11533_s0 + $0x182] sm:$0xff] }
 0x4cb   :  { %v4751_v58 = vadd.f32 %v10411_v47, %v4683_v3  ;;  %7136 = vmatmul.msk.f32.gmra.mxu0 %vm176_vm1, %v4229_v18  ;;  %v10686_v18 = vpop.f32.mrf.mxu2  ;;  %v10688_v3 = vpop.f32.mrf.mxu3 }
 0x4cd   :  { %v4815_v16 = vmax.f32 %v4751_v58, 0.0 }
 0x4cf   :  { %4880 = vst.msk [vmem:[#allocation2 + $0xb8] sm:$0xff] %vm4856_vm2, %v4815_v16  ;;  %v4233_v16 = vld [vmem:[%s11533_s0 + $0x17a] sm:$0xff] }
 0x4d0   :  { %v4540_v4 = vpop.f32.mrf.mxu0 }
 0x4d1   :  { %v4684_v10 = vadd.f32 %v4540_v4, %v10112_v39 }
 0x4d3   :  { %v4752_v63 = vadd.f32 %v10411_v47, %v4684_v10  ;;  %7137 = vmatmul.msk.f32.gmra.mxu0 %vm176_vm1, %v4230_v57 }
 0x4d5   :  { %v4816_v9 = vmax.f32 %v4752_v63, 0.0 }
 0x4d6   :  { %v4986_v38 = vld [vmem:[#allocation2 + $0xb0] ss:$2 sm:$0x7f]  ;;  %v4988_v31 = vld [vmem:[#allocation2 + $0xb1] ss:$2 sm:$0x7f] }
 0x4d7   :  { %v4990_v60 = vmax.f32 %v4986_v38, %v4988_v31  ;;  %4881 = vst.msk [vmem:[#allocation2 + $0xc0] sm:$0xff] %vm4856_vm2, %v4816_v9 }
 0x4d8   :  { %v4543_v34 = vpop.f32.mrf.mxu0 }
 0x4d9   :  { %v4685_v39 = vadd.f32 %v4543_v34, %v10143_v45  ;;  %v4991_v13 = vmax.f32 %v4989_v52, %v4990_v60  ;;  %v4235_v34 = vld [vmem:[%s11533_s0 + $0x18a] sm:$0xff] }
 0x4db   :  { %v4753_v6 = vadd.f32 %v10411_v47, %v4685_v39  ;;  %7138 = vmatmul.msk.f32.gmra.mxu0 %vm176_vm1, %v4231_v62  ;;  %4992 = vst.msk [vmem:[#allocation3 + $0x23] sm:$0x7f] %vm4931_vm3, %v4991_v13  ;;  %v4236_v13 = vld [vmem:[%s11533_s0 + $0x192] sm:$0xff] }
 0x4dd   :  { %v4817_v2 = vmax.f32 %v4753_v6, 0.0 }
 0x4df   :  { %4882 = vst.msk [vmem:[#allocation2 + $0xc8] sm:$0xff] %vm4856_vm2, %v4817_v2 }
 0x4e0   :  { %v4546_v20 = vpop.f32.mrf.mxu0 }
 0x4e1   :  { %v4686_v17 = vadd.f32 %v4546_v20, %v10164_v30  ;;  %v10716_v20 = vpop.f32.mrf.mxu1 }
 0x4e2   :  { %v5109_v7 = vld [vmem:[#allocation3 + $0x21] sm:$0xff] }
 0x4e3   :  { %v5095_v48 = vld [vmem:[#allocation3 + $0x20] sm:$0xff]  ;;  %v4754_v15 = vadd.f32 %v10411_v47, %v4686_v17  ;;  %7139 = vmatmul.msk.f32.gmra.mxu0 %vm176_vm1, %v4232_v56  ;;  %7166 = vmatmul.msk.f32.gmra.mxu1 %vm4856_vm2, %v5109_v7  ;;  %v10721_v56 = vpop.f32.mrf.mxu2 }
 0x4e4   :  { %v5314_v45 = vld [vmem:[#allocation3 + $0x22] sm:$0xff]  ;;  %7179 = vmatmul.msk.f32.gmra.mxu2 %vm4856_vm2, %v5095_v48  ;;  %v4237_v7 = vld [vmem:[%s11533_s0 + $0x19a] sm:$0xff] }
 0x4e5   :  { %7193 = vmatmul.msk.f32.gmra.mxu3 %vm4856_vm2, %v5314_v45  ;;  %v4818_v30 = vmax.f32 %v4754_v15, 0.0  ;;  %v4238_v45 = vld [vmem:[%s11533_s0 + $0x1a2] sm:$0xff] }
 0x4e6   :  { %v4994_v11 = vld [vmem:[#allocation2 + $0xc0] ss:$2 sm:$0x7f]  ;;  %v4996_v9 = vld [vmem:[#allocation2 + $0xc1] ss:$2 sm:$0x7f] }
 0x4e7   :  { %4883 = vst.msk [vmem:[#allocation2 + $0xd0] sm:$0xff] %vm4856_vm2, %v4818_v30  ;;  %v5001_v52 = vmax.f32 %v4994_v11, %v4996_v9 }
 0x4e8   :  { %v4549_v58 = vpop.f32.mrf.mxu0 }
 0x4e9   :  { %v4687_v4 = vadd.f32 %v4549_v58, %v10185_v8 }
 0x4eb   :  { %v4755_v57 = vadd.f32 %v10411_v47, %v4687_v4  ;;  %7140 = vmatmul.msk.f32.gmra.mxu0 %vm176_vm1, %v4233_v16  ;;  %v4239_v4 = vld [vmem:[%s11533_s0 + $0x1aa] sm:$0xff] }
 0x4ed   :  { %v4819_v10 = vmax.f32 %v4755_v57, 0.0 }
 0x4ef   :  { %4884 = vst.msk [vmem:[#allocation2 + $0xd8] sm:$0xff] %vm4856_vm2, %v4819_v10 }
 0x4f0   :  { %v4552_v63 = vpop.f32.mrf.mxu0 }
 0x4f3   :  { %7141 = vmatmul.msk.f32.gmra.mxu0 %vm176_vm1, %v4234_v22  ;;  %v4240_v22 = vld [vmem:[%s11533_s0 + $0x1b2] sm:$0xff] }
 0x4f6   :  { %v4998_v38 = vld [vmem:[#allocation2 + $0xd0] ss:$2 sm:$0x7f]  ;;  %v5000_v31 = vld [vmem:[#allocation2 + $0xd1] ss:$2 sm:$0x7f] }
 0x4f7   :  { %v5002_v8 = vmax.f32 %v4998_v38, %v5000_v31  ;;  %v4241_v31 = vld [vmem:[%s11533_s0 + $0x1ba] sm:$0xff] }
 0x4f8   :  { %v4555_v60 = vpop.f32.mrf.mxu0 }
 0x4f9   :  { %v5003_v62 = vmax.f32 %v5001_v52, %v5002_v8 }
 0x4fb   :  { %7142 = vmatmul.msk.f32.gmra.mxu0 %vm176_vm1, %v4235_v34  ;;  %5004 = vst.msk [vmem:[#allocation3 + $0x2a] sm:$0x7f] %vm4931_vm3, %v5003_v62  ;;  %v4242_v34 = vld [vmem:[%s11533_s0 + $0x1c2] sm:$0xff] }
 0x500   :  { %v4558_v39 = vpop.f32.mrf.mxu0 }
 0x502   :  { %v10712_v6 = vld [vmem:[#allocation3 + $0x29] sm:$0xff] }
 0x503   :  { %v10714_v2 = vld [vmem:[#allocation3 + $0x28] sm:$0xff]  ;;  %7143 = vmatmul.msk.f32.gmra.mxu0 %vm176_vm1, %v4236_v13  ;;  %7167 = vmatmul.msk.f32.gmra.mxu1 %vm4856_vm2, %v10712_v6 }
 0x504   :  { %7180 = vmatmul.msk.f32.gmra.mxu2 %vm4856_vm2, %v10714_v2 }
 0x508   :  { %v4561_v17 = vpop.f32.mrf.mxu0 }
 0x50b   :  { %7144 = vmatmul.msk.f32.gmra.mxu0 %vm176_vm1, %v4237_v7 }
 0x510   :  { %v4564_v48 = vpop.f32.mrf.mxu0 }
 0x511   :  { %v4692_v15 = vadd.f32 %v4564_v48, %v10269_v54 }
 0x513   :  { %v4760_v30 = vadd.f32 %v10411_v47, %v4692_v15  ;;  %7145 = vmatmul.msk.f32.gmra.mxu0 %vm176_vm1, %v4238_v45 }
 0x515   :  { %v4824_v58 = vmax.f32 %v4760_v30, 0.0 }
 0x517   :  { %4889 = vst.msk [vmem:[#allocation2 + $0x100] sm:$0xff] %vm4856_vm2, %v4824_v58  ;;  %v4243_v58 = vld [vmem:[%s11533_s0 + $0x1ca] sm:$0xff] }
 0x518   :  { %v4567_v16 = vpop.f32.mrf.mxu0 }
 0x519   :  { %v4693_v57 = vadd.f32 %v4567_v16, %v10289_v33 }
 0x51b   :  { %v4761_v10 = vadd.f32 %v10411_v47, %v4693_v57  ;;  %7146 = vmatmul.msk.f32.gmra.mxu0 %vm176_vm1, %v4239_v4 }
 0x51d   :  { %v4825_v63 = vmax.f32 %v4761_v10, 0.0 }
 0x51f   :  { %4890 = vst.msk [vmem:[#allocation2 + $0x108] sm:$0xff] %vm4856_vm2, %v4825_v63  ;;  %v4244_v63 = vld [vmem:[%s11533_s0 + $0x1d2] sm:$0xff] }
 0x520   :  { %v4570_v54 = vpop.f32.mrf.mxu0 }
 0x521   :  { %v4694_v11 = vadd.f32 %v4570_v54, %v10309_v44 }
 0x523   :  { %v4762_v9 = vadd.f32 %v10411_v47, %v4694_v11  ;;  %7147 = vmatmul.msk.f32.gmra.mxu0 %vm176_vm1, %v4240_v22  ;;  %v10778_v11 = vpop.f32.mrf.mxu2 }
 0x525   :  { %v4826_v38 = vmax.f32 %v4762_v9, 0.0 }
 0x526   :  { %v5006_v13 = vld [vmem:[#allocation2 + $0x100] ss:$2 sm:$0x7f] }
 0x527   :  { %4891 = vst.msk [vmem:[#allocation2 + $0x110] sm:$0xff] %vm4856_vm2, %v4826_v38  ;;  %v10784_v38 = vpop.f32.mrf.mxu3 }
 0x528   :  { %v4573_v33 = vpop.f32.mrf.mxu0 }
 0x529   :  { %v4695_v52 = vadd.f32 %v4573_v33, %v10329_v21  ;;  %v5008_v21 = vld [vmem:[#allocation2 + $0x101] ss:$2 sm:$0x7f] }
 0x52a   :  { %v5013_v45 = vmax.f32 %v5006_v13, %v5008_v21  ;;  %v11665_v21 = vld [vmem:[#allocation39_spill] sm:$0xff] }
 0x52b   :  { %v4763_v8 = vadd.f32 %v10411_v47, %v4695_v52  ;;  %7148 = vmatmul.msk.f32.gmra.mxu0 %vm176_vm1, %v4241_v31  ;;  %v11663_v31 = vld [vmem:[#allocation38_spill] sm:$0xff]  ;;  %v11664_v52 = vld [vmem:[#allocation13_spill] sm:$0xff] }
 0x52d   :  { %v4827_v60 = vmax.f32 %v4763_v8, 0.0 }
 0x52f   :  { %4892 = vst.msk [vmem:[#allocation2 + $0x118] sm:$0xff] %vm4856_vm2, %v4827_v60  ;;  %v4245_v60 = vld [vmem:[%s11533_s0 + $0x1da] sm:$0xff] }
 0x530   :  { %v4576_v44 = vpop.f32.mrf.mxu0 }
 0x531   :  { %v4696_v62 = vadd.f32 %v4576_v44, %v10349_v42 }
 0x533   :  { %v4764_v39 = vadd.f32 %v10411_v47, %v4696_v62  ;;  %7149 = vmatmul.msk.f32.gmra.mxu0 %vm176_vm1, %v4242_v34 }
 0x535   :  { %v4828_v17 = vmax.f32 %v4764_v39, 0.0 }
 0x536   :  { %v5010_v7 = vld [vmem:[#allocation2 + $0x110] ss:$2 sm:$0x7f]  ;;  %v5012_v48 = vld [vmem:[#allocation2 + $0x111] ss:$2 sm:$0x7f] }
 0x537   :  { %v5014_v15 = vmax.f32 %v5010_v7, %v5012_v48  ;;  %4893 = vst.msk [vmem:[#allocation2 + $0x120] sm:$0xff] %vm4856_vm2, %v4828_v17  ;;  %v11666_v17 = vld [vmem:[#allocation15_spill] sm:$0xff] }
 0x538   :  { %v4579_v30 = vpop.f32.mrf.mxu0  ;;  %v2565_v7 = vadd.f32 %v11666_v17, %v11665_v21  ;;  %v10831_v21 = vpop.f32.mrf.mxu2 }
 0x539   :  { %v4697_v42 = vadd.f32 %v4579_v30, %v10364_v32  ;;  %v5015_v16 = vmax.f32 %v5013_v45, %v5014_v15 }
 0x53b   :  { %v4765_v4 = vadd.f32 %v10411_v47, %v4697_v42  ;;  %7150 = vmatmul.msk.f32.gmra.mxu0 %vm176_vm1, %v4243_v58  ;;  %5016 = vst.msk [vmem:[#allocation3 + $0x31] sm:$0x7f] %vm4931_vm3, %v5015_v16  ;;  %v10809_v58 = vpop.f32.mrf.mxu1 }
 0x53d   :  { %v4829_v57 = vmax.f32 %v4765_v4, 0.0 }
 0x53f   :  { %4894 = vst.msk [vmem:[#allocation2 + $0x128] sm:$0xff] %vm4856_vm2, %v4829_v57 }
 0x540   :  { %v4582_v10 = vpop.f32.mrf.mxu0 }
 0x541   :  { %v4698_v54 = vadd.f32 %v4582_v10, %v10378_v36  ;;  %v2564_v36 = vadd.f32 %v11664_v52, %v11663_v31  ;;  %v11667_v10 = vld [vmem:[#allocation40_spill] sm:$0xff] }
 0x542   :  { %v10776_v22 = vld [vmem:[#allocation3 + $0x30] sm:$0xff] }
 0x543   :  { %v5315_v32 = vld [vmem:[#allocation3 + $0x2a] sm:$0xff]  ;;  %v4766_v9 = vadd.f32 %v10411_v47, %v4698_v54  ;;  %7151 = vmatmul.msk.f32.gmra.mxu0 %vm176_vm1, %v4244_v63  ;;  %7181 = vmatmul.msk.f32.gmra.mxu2 %vm4856_vm2, %v10776_v22  ;;  %v3098_v44 = vadd.f32 %v10529_v41, %v2564_v36  ;;  %v4246_v41 = vld [vmem:[%s11533_s0 + $0x1e2] sm:$0xff] }
 0x544   :  { %7194 = vmatmul.msk.f32.gmra.mxu3 %vm4856_vm2, %v5315_v32  ;;  %v11668_v63 = vld [vmem:[#allocation17_spill] sm:$0xff] }
 0x545   :  { %v4830_v33 = vmax.f32 %v4766_v9, 0.0  ;;  %v3632_v62 = vadd.f32 %v10534_v14, %v3098_v44  ;;  %v2566_v54 = vadd.f32 %v11668_v63, %v11667_v10  ;;  %v10857_v63 = vpop.f32.mrf.mxu2 }
 0x546   :  { %v5018_v42 = vld [vmem:[#allocation2 + $0x120] ss:$2 sm:$0x7f] }
 0x547   :  { %4895 = vst.msk [vmem:[#allocation2 + $0x130] sm:$0xff] %vm4856_vm2, %v4830_v33  ;;  %v4166_v48 = vadd.f32 %v10536_v19, %v3632_v62  ;;  %v5020_v19 = vld [vmem:[#allocation2 + $0x121] ss:$2 sm:$0x7f]  ;;  %v3100_v31 = vadd.f32 %v10605_v53, %v2566_v54 }
 0x548   :  { %v4585_v8 = vpop.f32.mrf.mxu0  ;;  %v4247_v33 = vld [vmem:[%s11533_s0 + $0x1ea] sm:$0xff] }
 0x549   :  { %v4699_v34 = vadd.f32 %v4585_v8, %v10392_v26  ;;  %v3099_v26 = vadd.f32 %v10567_v0, %v2565_v7  ;;  %v5025_v0 = vmax.f32 %v5018_v42, %v5020_v19  ;;  %v10819_v8 = vpop.f32.mrf.mxu3  ;;  %v11669_v62 = vld [vmem:[#allocation41_spill] sm:$0xff] }
 0x54b   :  { %v4767_v39 = vadd.f32 %v10411_v47, %v4699_v34  ;;  %7152 = vmatmul.msk.f32.gmra.mxu0 %vm176_vm1, %v4245_v60  ;;  %v3633_v15 = vadd.f32 %v10572_v50, %v3099_v26  ;;  %v3634_v60 = vadd.f32 %v10610_v5, %v3100_v31  ;;  %v10825_v34 = vpop.f32.mrf.mxu1  ;;  %v4248_v5 = vld [vmem:[%s11533_s0 + $0x1f2] sm:$0xff] }
 0x54d   :  { %v4831_v13 = vmax.f32 %v4767_v39, 0.0  ;;  %v4167_v32 = vadd.f32 %v10574_v49, %v3633_v15  ;;  %v11670_v39 = vld [vmem:[#allocation19_spill] sm:$0xff]  ;;  %v4168_v53 = vadd.f32 %v10612_v59, %v3634_v60 }
 0x54f   :  { %4896 = vst.msk [vmem:[#allocation2 + $0x138] sm:$0xff] %vm4856_vm2, %v4831_v13  ;;  %v2567_v13 = vadd.f32 %v11670_v39, %v11669_v62  ;;  %v10877_v62 = vpop.f32.mrf.mxu2 }
 0x550   :  { %v4588_v45 = vpop.f32.mrf.mxu0 }
 0x551   :  { %v4700_v14 = vadd.f32 %v4588_v45, %v4166_v48  ;;  %v3101_v7 = vadd.f32 %v10643_v61, %v2567_v13  ;;  %v10844_v59 = vpop.f32.mrf.mxu3  ;;  %v11672_v61 = vld [vmem:[#allocation20_spill] sm:$0xff] }
 0x553   :  { %v4768_v30 = vadd.f32 %v10411_v47, %v4700_v14  ;;  %7153 = vmatmul.msk.f32.gmra.mxu0 %vm176_vm1, %v4246_v41  ;;  %v3635_v26 = vadd.f32 %v10648_v29, %v3101_v7  ;;  %v10851_v29 = vpop.f32.mrf.mxu1 }
 0x555   :  { %v4832_v16 = vmax.f32 %v4768_v30, 0.0  ;;  %v11671_v30 = vld [vmem:[#allocation42_spill] sm:$0xff]  ;;  %v4169_v19 = vadd.f32 %v10650_v25, %v3635_v26  ;;  %v4251_v26 = vld [vmem:[%s11533_s0 + $0x20a] sm:$0xff] }
 0x556   :  { %v5022_v4 = vld [vmem:[#allocation2 + $0x130] ss:$2 sm:$0x7f]  ;;  %v5024_v57 = vld [vmem:[#allocation2 + $0x131] ss:$2 sm:$0x7f]  ;;  %v2568_v42 = vadd.f32 %v11672_v61, %v11671_v30 }
 0x557   :  { %v5026_v9 = vmax.f32 %v5022_v4, %v5024_v57  ;;  %4897 = vst.msk [vmem:[#allocation2 + $0x140] sm:$0xff] %vm4856_vm2, %v4832_v16  ;;  %v4249_v4 = vld [vmem:[%s11533_s0 + $0x1fa] sm:$0xff] }
 0x558   :  { %v4591_v50 = vpop.f32.mrf.mxu0  ;;  %v3102_v57 = vadd.f32 %v10681_v35, %v2568_v42 }
 0x559   :  { %v4701_v52 = vadd.f32 %v4591_v50, %v4167_v32  ;;  %v5027_v36 = vmax.f32 %v5025_v0, %v5026_v9  ;;  %v10862_v0 = vpop.f32.mrf.mxu3  ;;  %v11673_v9 = vld [vmem:[#allocation43_spill] sm:$0xff]  ;;  %v11674_v50 = vld [vmem:[#allocation21_spill] sm:$0xff] }
 0x55a   :  { %v3636_v54 = vadd.f32 %v10686_v18, %v3102_v57 }
 0x55b   :  { %v4769_v44 = vadd.f32 %v10411_v47, %v4701_v52  ;;  %7154 = vmatmul.msk.f32.gmra.mxu0 %vm176_vm1, %v4247_v33  ;;  %5028 = vst.msk [vmem:[#allocation3 + $0x38] sm:$0x7f] %vm4931_vm3, %v5027_v36  ;;  %v2569_v33 = vadd.f32 %v11674_v50, %v11673_v9  ;;  %v4250_v52 = vld [vmem:[%s11533_s0 + $0x202] sm:$0xff]  ;;  %v10872_v60 = vpop.f32.mrf.mxu1 }
 0x55c   :  { %v4170_v31 = vadd.f32 %v10688_v3, %v3636_v54 }
 0x55d   :  { %v4833_v49 = vmax.f32 %v4769_v44, 0.0  ;;  %v3103_v18 = vadd.f32 %v10716_v20, %v2569_v33 }
 0x55f   :  { %4898 = vst.msk [vmem:[#allocation2 + $0x148] sm:$0xff] %vm4856_vm2, %v4833_v49  ;;  %v3637_v44 = vadd.f32 %v10721_v56, %v3103_v18 }
 0x560   :  { %v4594_v17 = vpop.f32.mrf.mxu0 }
 0x561   :  { %v4702_v48 = vadd.f32 %v4594_v17, %v4168_v53  ;;  %v4171_v20 = vadd.f32 %v10784_v38, %v3637_v44  ;;  %v10883_v56 = vpop.f32.mrf.mxu3 }
 0x562   :  { %v10837_v45 = vld [vmem:[#allocation3 + $0x31] sm:$0xff] }
 0x563   :  { %v5316_v41 = vld [vmem:[#allocation3 + $0x32] sm:$0xff]  ;;  %v4770_v14 = vadd.f32 %v10411_v47, %v4702_v48  ;;  %7155 = vmatmul.msk.f32.gmra.mxu0 %vm176_vm1, %v4248_v5  ;;  %7168 = vmatmul.msk.f32.gmra.mxu1 %vm4856_vm2, %v10837_v45  ;;  %v11675_v5 = vld [vmem:[#allocation44_spill] sm:$0xff]  ;;  %v3016_v42 = vpop.f32.mrf.mxu1 }
 0x564   :  { %7195 = vmatmul.msk.f32.gmra.mxu3 %vm4856_vm2, %v5316_v41  ;;  %v2570_v7 = vadd.f32 %v10075_v23, %v11675_v5  ;;  %v10893_v23 = vld [vmem:[%s11535_s2] ss:$0 sm:$0xff] }
 0x565   :  { %v4834_v15 = vmax.f32 %v4770_v14, 0.0 }
 0x566   :  { %v5030_v3 = vld [vmem:[#allocation2 + $0x140] ss:$2 sm:$0x7f]  ;;  %v5032_v39 = vld [vmem:[#allocation2 + $0x141] ss:$2 sm:$0x7f]  ;;  %v3104_v14 = vadd.f32 %v10809_v58, %v2570_v7 }
 0x567   :  { %4899 = vst.msk [vmem:[#allocation2 + $0x150] sm:$0xff] %vm4856_vm2, %v4834_v15  ;;  %v5037_v48 = vmax.f32 %v5030_v3, %v5032_v39  ;;  %v11676_v58 = vld [vmem:[#allocation45_spill] sm:$0xff] }
 0x568   :  { %v4597_v16 = vpop.f32.mrf.mxu0  ;;  %v3638_v61 = vadd.f32 %v10778_v11, %v3104_v14 }
 0x569   :  { %v4703_v10 = vadd.f32 %v4597_v16, %v4169_v19  ;;  %v10898_v16 = vpop.f32.mrf.mxu2 }
 0x56a   :  { %v4172_v11 = vadd.f32 %v10819_v8, %v3638_v61 }
 0x56b   :  { %v4771_v32 = vadd.f32 %v10411_v47, %v4703_v10  ;;  %7156 = vmatmul.msk.f32.gmra.mxu0 %vm176_vm1, %v4249_v4  ;;  %v2571_v4 = vadd.f32 %v10099_v28, %v11676_v58  ;;  %v4252_v10 = vld [vmem:[%s11533_s0 + $0x212] sm:$0xff]  ;;  %v11680_v58 = vld [vmem:[#allocation48_spill] sm:$0xff] }
 0x56d   :  { %v4835_v25 = vmax.f32 %v4771_v32, 0.0  ;;  %v3105_v54 = vadd.f32 %v10825_v34, %v2571_v4 }
 0x56f   :  { %4900 = vst.msk [vmem:[#allocation2 + $0x158] sm:$0xff] %vm4856_vm2, %v4835_v25  ;;  %v10908_v25 = vpop.f32.mrf.mxu3  ;;  %v3639_v28 = vadd.f32 %v10831_v21, %v3105_v54 }
 0x570   :  { %v4600_v35 = vpop.f32.mrf.mxu0 }
 0x571   :  { %v4704_v36 = vadd.f32 %v4600_v35, %v4170_v31  ;;  %v3019_v31 = vpop.f32.mrf.mxu1  ;;  %v11677_v35 = vld [vmem:[#allocation46_spill] sm:$0xff]  ;;  %v3553_v21 = vpop.f32.mrf.mxu2 }
 0x573   :  { %v4772_v49 = vadd.f32 %v10411_v47, %v4704_v36  ;;  %7157 = vmatmul.msk.f32.gmra.mxu0 %vm176_vm1, %v4250_v52  ;;  %v11678_v52 = vld [vmem:[#allocation60_spill] sm:$0xff]  ;;  %v4173_v36 = vadd.f32 %v10844_v59, %v3639_v28  ;;  %v11679_v59 = vld [vmem:[#allocation47_spill] sm:$0xff] }
 0x574   :  { %v2572_v18 = vadd.f32 %v11678_v52, %v11677_v35  ;;  %v2573_v7 = vadd.f32 %v10153_v37, %v11679_v59  ;;  %v11681_v52 = vld [vmem:[#allocation49_spill] sm:$0xff]  ;;  %v11682_v59 = vld [vmem:[#allocation50_spill] sm:$0xff] }
 0x575   :  { %v4836_v13 = vmax.f32 %v4772_v49, 0.0  ;;  %v4253_v49 = vld [vmem:[%s11533_s0 + $0x21a] sm:$0xff] }
 0x576   :  { %v5034_v53 = vld [vmem:[#allocation2 + $0x150] ss:$2 sm:$0x7f]  ;;  %v5036_v17 = vld [vmem:[#allocation2 + $0x151] ss:$2 sm:$0x7f]  ;;  %v3106_v3 = vadd.f32 %v10851_v29, %v2572_v18  ;;  %v3107_v29 = vadd.f32 %v10872_v60, %v2573_v7  ;;  %v2575_v18 = vadd.f32 %v10192_v46, %v11681_v52  ;;  %v2576_v7 = vadd.f32 %v10208_v12, %v11682_v59 }
 0x577   :  { %v5038_v41 = vmax.f32 %v5034_v53, %v5036_v17  ;;  %4901 = vst.msk [vmem:[#allocation2 + $0x160] sm:$0xff] %vm4856_vm2, %v4836_v13  ;;  %v4087_v17 = vpop.f32.mrf.mxu3  ;;  %v7216_v60 = vld [vmem:[%s11536_s3 + $0x20] sm:$0xff] }
 0x578   :  { %v4603_v47 = vpop.f32.mrf.mxu0  ;;  %v3640_v13 = vadd.f32 %v10857_v63, %v3106_v3  ;;  %v3641_v63 = vadd.f32 %v10877_v62, %v3107_v29  ;;  %v7230_v62 = vld [vmem:[%s11536_s3 + $0x28] sm:$0xff]  ;;  %5625 = vmatpush.msra.mxu2 %v7216_v60 }
 0x579   :  { %v4705_v15 = vadd.f32 %v4603_v47, %v4171_v20  ;;  %v5039_v30 = vmax.f32 %v5037_v48, %v5038_v41  ;;  %v3022_v48 = vpop.f32.mrf.mxu1  ;;  %5748 = vmatpush.msrb.mxu3 %v7230_v62 }
 0x57a   :  { %v4174_v20 = vadd.f32 %v10862_v0, %v3640_v13  ;;  %v2574_v0 = vadd.f32 %v10174_v51, %v11680_v58  ;;  %v4175_v4 = vadd.f32 %v10883_v56, %v3641_v63 }
 0x57b   :  { %v4773_v38 = vadd.f32 %v10893_v23, %v4705_v15  ;;  %7158 = vmatmul.msk.f32.gmra.mxu0 %vm176_vm1, %v4251_v26  ;;  %5040 = vst.msk [vmem:[#allocation3 + $0x3f] sm:$0x7f] %vm4931_vm3, %v5039_v30  ;;  %v3556_v26 = vpop.f32.mrf.mxu2 }
 0x57c   :  { %v3108_v51 = vadd.f32 %v3016_v42, %v2574_v0 }
 0x57d   :  { %v4837_v19 = vmax.f32 %v4773_v38, 0.0 }
 0x57e   :  { %v3642_v28 = vadd.f32 %v10898_v16, %v3108_v51 }
 0x57f   :  { %4902 = vst.msk [vmem:[#allocation2 + $0x168] sm:$0xff] %vm4856_vm2, %v4837_v19  ;;  %v4090_v38 = vpop.f32.mrf.mxu3 }
 0x580   :  { %v4606_v57 = vpop.f32.mrf.mxu0 }
 0x581   :  { %v4706_v32 = vadd.f32 %v4606_v57, %v4172_v11 }
 0x582   :  { %v10910_v9 = vld [vmem:[#allocation3 + $0x39] sm:$0xff] }
 0x583   :  { %v10912_v50 = vld [vmem:[#allocation3 + $0x38] sm:$0xff]  ;;  %v4774_v8 = vadd.f32 %v10893_v23, %v4706_v32  ;;  %7159 = vmatmul.msk.f32.gmra.mxu0 %vm176_vm1, %v4252_v10  ;;  %7169 = vmatmul.msk.f32.gmra.mxu1 %vm4856_vm2, %v10910_v9 }
 0x584   :  { %v5317_v33 = vld [vmem:[#allocation3 + $0x3a] sm:$0xff]  ;;  %7182 = vmatmul.msk.f32.gmra.mxu2 %vm4856_vm2, %v10912_v50 }
 0x585   :  { %7196 = vmatmul.msk.f32.gmra.mxu3 %vm4856_vm2, %v5317_v33  ;;  %v4838_v34 = vmax.f32 %v4774_v8, 0.0  ;;  %v7202_v10 = vld [vmem:[%s11536_s3 + $0x18] sm:$0xff]  ;;  %v3025_v33 = vpop.f32.mrf.mxu1 }
 0x586   :  { %v5042_v15 = vld [vmem:[#allocation2 + $0x160] ss:$2 sm:$0x7f]  ;;  %v5044_v30 = vld [vmem:[#allocation2 + $0x161] ss:$2 sm:$0x7f]  ;;  %5502 = vmatpush.msrb.mxu1 %v7202_v10 }
 0x587   :  { %4903 = vst.msk [vmem:[#allocation2 + $0x170] sm:$0xff] %vm4856_vm2, %v4838_v34  ;;  %v5049_v11 = vmax.f32 %v5042_v15, %v5044_v30  ;;  %v3559_v34 = vpop.f32.mrf.mxu2  ;;  %v4093_v42 = vpop.f32.mrf.mxu3 }
 0x588   :  { %v4609_v44 = vpop.f32.mrf.mxu0 }
 0x589   :  { %v4707_v39 = vadd.f32 %v4609_v44, %v4173_v36  ;;  %v4176_v36 = vadd.f32 %v10908_v25, %v3642_v28 }
 0x58b   :  { %v4775_v53 = vadd.f32 %v10893_v23, %v4707_v39  ;;  %7160 = vmatmul.msk.f32.gmra.mxu0 %vm176_vm1, %v4253_v49  ;;  %v3109_v49 = vadd.f32 %v3019_v31, %v2575_v18 }
 0x58d   :  { %v4839_v5 = vmax.f32 %v4775_v53, 0.0  ;;  %v3643_v53 = vadd.f32 %v3553_v21, %v3109_v49  ;;  %v3028_v46 = vpop.f32.mrf.mxu1  ;;  %v11685_v49 = vld [vmem:[#allocation53_spill] sm:$0xff] }
 0x58f   :  { %4904 = vst.msk [vmem:[#allocation2 + $0x178] sm:$0xff] %vm4856_vm2, %v4839_v5  ;;  %v3562_v31 = vpop.f32.mrf.mxu2 }
 0x590   :  { %v4612_v41 = vpop.f32.mrf.mxu0 }
 0x591   :  { %v4708_v47 = vadd.f32 %v4612_v41, %v4174_v20  ;;  %v4177_v20 = vadd.f32 %v4087_v17, %v3643_v53  ;;  %v3110_v41 = vadd.f32 %v3022_v48, %v2576_v7 }
 0x593   :  { %v4776_v14 = vadd.f32 %v10893_v23, %v4708_v47  ;;  %v4096_v47 = vpop.f32.mrf.mxu3  ;;  %v3644_v63 = vadd.f32 %v3556_v26, %v3110_v41 }
 0x595   :  { %v4840_v61 = vmax.f32 %v4776_v14, 0.0  ;;  %v3031_v30 = vpop.f32.mrf.mxu1 }
 0x596   :  { %v5046_v19 = vld [vmem:[#allocation2 + $0x170] ss:$2 sm:$0x7f]  ;;  %v5048_v37 = vld [vmem:[#allocation2 + $0x171] ss:$2 sm:$0x7f] }
 0x597   :  { %v5050_v57 = vmax.f32 %v5046_v19, %v5048_v37  ;;  %4905 = vst.msk [vmem:[#allocation2 + $0x180] sm:$0xff] %vm4856_vm2, %v4840_v61  ;;  %v11683_v61 = vld [vmem:[#allocation51_spill] sm:$0xff]  ;;  %v4178_v37 = vadd.f32 %v4090_v38, %v3644_v63  ;;  %v3565_v58 = vpop.f32.mrf.mxu2 }
 0x598   :  { %v4615_v54 = vpop.f32.mrf.mxu0  ;;  %v2577_v19 = vadd.f32 %v10224_v24, %v11683_v61 }
 0x599   :  { %v4709_v56 = vadd.f32 %v4615_v54, %v4175_v4  ;;  %v5051_v32 = vmax.f32 %v5049_v11, %v5050_v57  ;;  %v11684_v54 = vld [vmem:[#allocation52_spill] sm:$0xff] }
 0x59a   :  { %v3111_v17 = vadd.f32 %v3025_v33, %v2577_v19  ;;  %v2578_v51 = vadd.f32 %v10240_v43, %v11684_v54  ;;  %v11686_v43 = vld [vmem:[#allocation22_spill] sm:$0xff] }
 0x59b   :  { %v4777_v8 = vadd.f32 %v10893_v23, %v4709_v56  ;;  %5052 = vst.msk [vmem:[#allocation3 + $0x46] sm:$0x7f] %vm4931_vm3, %v5051_v32  ;;  %v4099_v11 = vpop.f32.mrf.mxu3 }
 0x59c   :  { %v3645_v4 = vadd.f32 %v3559_v34, %v3111_v17  ;;  %v3112_v28 = vadd.f32 %v3028_v46, %v2578_v51 }
 0x59d   :  { %v4841_v35 = vmax.f32 %v4777_v8, 0.0  ;;  %v3034_v32 = vpop.f32.mrf.mxu1 }
 0x59e   :  { %v4179_v24 = vadd.f32 %v4093_v42, %v3645_v4  ;;  %v3646_v52 = vadd.f32 %v3562_v31, %v3112_v28  ;;  %v2579_v42 = vadd.f32 %v11686_v43, %v11685_v49 }
 0x59f   :  { %4906 = vst.msk [vmem:[#allocation2 + $0x188] sm:$0xff] %vm4856_vm2, %v4841_v35  ;;  %v3568_v35 = vpop.f32.mrf.mxu2 }
 0x5a0   :  { %v4618_v44 = vpop.f32.mrf.mxu0  ;;  %v3113_v53 = vadd.f32 %v3031_v30, %v2579_v42  ;;  %v7354_v42 = vmov 0.0  }
 0x5a1   :  { %v4710_v3 = vadd.f32 %v4618_v44, %v4176_v36  ;;  %5089 = vst.msk [vmem:[#allocation3 + $0x62] sm:$0xff] %vm4856_vm2, %v7354_v42 }
 0x5a2   :  { %v10960_v39 = vld [vmem:[#allocation3 + $0x41] sm:$0xff]  ;;  %v3647_v7 = vadd.f32 %v3565_v58, %v3113_v53  ;;  %5090 = vst.msk [vmem:[#allocation3 + $0x6a] sm:$0xff] %vm4856_vm2, %v7354_v42  ;;  %v11052_v42 = vld [vmem:[#allocation3 + $0xf] sm:$0xff] }
 0x5a3   :  { %v10962_v16 = vld [vmem:[#allocation3 + $0x40] sm:$0xff]  ;;  %v4778_v5 = vadd.f32 %v10893_v23, %v4710_v3  ;;  %7170 = vmatmul.msk.f32.gmra.mxu1 %vm4856_vm2, %v10960_v39  ;;  %v4102_v44 = vpop.f32.mrf.mxu3  ;;  %v4180_v3 = vadd.f32 %v4096_v47, %v3646_v52 }
 0x5a4   :  { %v5318_v13 = vld [vmem:[#allocation3 + $0x42] sm:$0xff]  ;;  %7183 = vmatmul.msk.f32.gmra.mxu2 %vm4856_vm2, %v10962_v16  ;;  %v4181_v63 = vadd.f32 %v4099_v11, %v3647_v7 }
 0x5a5   :  { %7197 = vmatmul.msk.f32.gmra.mxu3 %vm4856_vm2, %v5318_v13  ;;  %v4842_v25 = vmax.f32 %v4778_v5, 0.0  ;;  %v3037_v46 = vpop.f32.mrf.mxu1 }
 0x5a6   :  { %v5054_v57 = vld [vmem:[#allocation2 + $0x180] ss:$2 sm:$0x7f]  ;;  %v5056_v26 = vld [vmem:[#allocation2 + $0x181] ss:$2 sm:$0x7f] }
 0x5a7   :  { %4907 = vst.msk [vmem:[#allocation2 + $0x190] sm:$0xff] %vm4856_vm2, %v4842_v25  ;;  %v5061_v38 = vmax.f32 %v5054_v57, %v5056_v26 }
 0x5a8   :  { %v4621_v21 = vpop.f32.mrf.mxu0 }
 0x5a9   :  { %v4711_v29 = vadd.f32 %v4621_v21, %v4177_v20  ;;  %v3571_v21 = vpop.f32.mrf.mxu2 }
 0x5ab   :  { %v4779_v14 = vadd.f32 %v10893_v23, %v4711_v29  ;;  %v11687_v29 = vld [vmem:[#allocation54_spill] sm:$0xff] }
 0x5ac   :  { %v2580_v47 = vadd.f32 %v10278_v27, %v11687_v29 }
 0x5ad   :  { %v4843_v15 = vmax.f32 %v4779_v14, 0.0  ;;  %v4105_v14 = vpop.f32.mrf.mxu3  ;;  %v3040_v58 = vpop.f32.mrf.mxu1 }
 0x5ae   :  { %v3114_v30 = vadd.f32 %v3034_v32, %v2580_v47  ;;  %v11689_v32 = vld [vmem:[#allocation56_spill] sm:$0xff] }
 0x5af   :  { %4908 = vst.msk [vmem:[#allocation2 + $0x198] sm:$0xff] %vm4856_vm2, %v4843_v15 }
 0x5b0   :  { %v4624_v12 = vpop.f32.mrf.mxu0  ;;  %v3648_v19 = vadd.f32 %v3568_v35, %v3114_v30 }
 0x5b1   :  { %v4712_v0 = vadd.f32 %v4624_v12, %v4178_v37  ;;  %v3574_v17 = vpop.f32.mrf.mxu2 }
 0x5b3   :  { %v4780_v48 = vadd.f32 %v10893_v23, %v4712_v0  ;;  %v11688_v0 = vld [vmem:[#allocation55_spill] sm:$0xff] }
 0x5b4   :  { %v2581_v4 = vadd.f32 %v10298_v1, %v11688_v0 }
 0x5b5   :  { %v4844_v60 = vmax.f32 %v4780_v48, 0.0  ;;  %v4182_v48 = vadd.f32 %v4102_v44, %v3648_v19  ;;  %v4108_v26 = vpop.f32.mrf.mxu3 }
 0x5b6   :  { %v5058_v62 = vld [vmem:[#allocation2 + $0x190] ss:$2 sm:$0x7f]  ;;  %v5060_v10 = vld [vmem:[#allocation2 + $0x191] ss:$2 sm:$0x7f]  ;;  %v3115_v11 = vadd.f32 %v3037_v46, %v2581_v4 }
 0x5b7   :  { %v5062_v56 = vmax.f32 %v5058_v62, %v5060_v10  ;;  %4909 = vst.msk [vmem:[#allocation2 + $0x1a0] sm:$0xff] %vm4856_vm2, %v4844_v60 }
 0x5b8   :  { %v4627_v33 = vpop.f32.mrf.mxu0  ;;  %v3649_v60 = vadd.f32 %v3571_v21, %v3115_v11  ;;  %v7258_v11 = vld [vmem:[%s11536_s3 + $0x38] sm:$0xff] }
 0x5b9   :  { %v4713_v8 = vadd.f32 %v4627_v33, %v4179_v24  ;;  %v5063_v34 = vmax.f32 %v5061_v38, %v5062_v56  ;;  %v3043_v24 = vpop.f32.mrf.mxu1  ;;  %v2582_v33 = vadd.f32 %v10318_v55, %v11689_v32  ;;  %5994 = vmatpush.msrb.mxu2 %v7258_v11 }
 0x5ba   :  { %v4183_v1 = vadd.f32 %v4105_v14, %v3649_v60 }
 0x5bb   :  { %v4781_v18 = vadd.f32 %v10893_v23, %v4713_v8  ;;  %5064 = vst.msk [vmem:[#allocation3 + $0x4d] sm:$0x7f] %vm4931_vm3, %v5063_v34  ;;  %v3577_v34 = vpop.f32.mrf.mxu2  ;;  %v3116_v52 = vadd.f32 %v3040_v58, %v2582_v33 }
 0x5bd   :  { %v4845_v36 = vmax.f32 %v4781_v18, 0.0  ;;  %v3650_v44 = vadd.f32 %v3574_v17, %v3116_v52  ;;  %v4111_v43 = vpop.f32.mrf.mxu3  ;;  %v5322_v52 = vld [vmem:[#allocation3 + $0x62] sm:$0x3] }
 0x5bf   :  { %4910 = vst.msk [vmem:[#allocation2 + $0x1a8] sm:$0xff] %vm4856_vm2, %v4845_v36  ;;  %v4184_v53 = vadd.f32 %v4108_v26, %v3650_v44  ;;  %v5433_v44 = vld [vmem:[#allocation3 + $0x7] sm:$0xff] }
 0x5c0   :  { %v4630_v13 = vpop.f32.mrf.mxu0 }
 0x5c1   :  { %v4714_v5 = vadd.f32 %v4630_v13, %v4180_v3  ;;  %v11690_v3 = vld [vmem:[#allocation57_spill] sm:$0xff] }
 0x5c2   :  { %v10986_v25 = vld [vmem:[#allocation3 + $0x49] sm:$0xff]  ;;  %v2583_v13 = vadd.f32 %v10338_v40, %v11690_v3  ;;  %v7321_v3 = vld [vmem:[#allocation3 + $0x11] sm:$0xff] }
 0x5c3   :  { %v10988_v59 = vld [vmem:[#allocation3 + $0x48] sm:$0xff]  ;;  %v4782_v20 = vadd.f32 %v10893_v23, %v4714_v5  ;;  %7171 = vmatmul.msk.f32.gmra.mxu1 %vm4856_vm2, %v10986_v25  ;;  %v3046_v5 = vpop.f32.mrf.mxu1 }
 0x5c4   :  { %v5319_v31 = vld [vmem:[#allocation3 + $0x4a] sm:$0xff]  ;;  %7184 = vmatmul.msk.f32.gmra.mxu2 %vm4856_vm2, %v10988_v59  ;;  %v7323_v5 = vld [vmem:[#allocation3 + $0x19] sm:$0xff] }
 0x5c5   :  { %7198 = vmatmul.msk.f32.gmra.mxu3 %vm4856_vm2, %v5319_v31  ;;  %v4846_v41 = vmax.f32 %v4782_v20, 0.0  ;;  %v3117_v31 = vadd.f32 %v3043_v24, %v2583_v13  ;;  %v3580_v20 = vpop.f32.mrf.mxu2  ;;  %v4114_v14 = vpop.f32.mrf.mxu3  ;;  %v11058_v13 = vld [vmem:[#allocation3 + $0x17] sm:$0xff] }
 0x5c6   :  { %v5066_v10 = vld [vmem:[#allocation2 + $0x1a0] ss:$2 sm:$0x7f]  ;;  %v5068_v54 = vld [vmem:[#allocation2 + $0x1a1] ss:$2 sm:$0x7f] }
 0x5c7   :  { %4911 = vst.msk [vmem:[#allocation2 + $0x1b0] sm:$0xff] %vm4856_vm2, %v4846_v41  ;;  %v5073_v28 = vmax.f32 %v5066_v10, %v5068_v54  ;;  %v3651_v47 = vadd.f32 %v3577_v34, %v3117_v31  ;;  %v11066_v31 = vld [vmem:[#allocation3 + $0x1f] sm:$0xff] }
 0x5c8   :  { %v4633_v15 = vpop.f32.mrf.mxu0  ;;  %v7325_v20 = vld [vmem:[#allocation3 + $0x21] sm:$0xff] }
 0x5c9   :  { %v4715_v61 = vadd.f32 %v4633_v15, %v4181_v63  ;;  %v4185_v15 = vadd.f32 %v4111_v43, %v3651_v47  ;;  %v5679_v43 = vld [vmem:[#allocation3 + $0x9] sm:$0xff] }
 0x5cb   :  { %v4783_v37 = vadd.f32 %v10893_v23, %v4715_v61  ;;  %v3049_v19 = vpop.f32.mrf.mxu1 }
 0x5cd   :  { %v4847_v12 = vmax.f32 %v4783_v37, 0.0  ;;  %v3583_v58 = vpop.f32.mrf.mxu2  ;;  %v4117_v17 = vpop.f32.mrf.mxu3 }
 0x5cf   :  { %4912 = vst.msk [vmem:[#allocation2 + $0x1b8] sm:$0xff] %vm4856_vm2, %v4847_v12 }
 0x5d0   :  { %v4636_v27 = vpop.f32.mrf.mxu0 }
 0x5d1   :  { %v4716_v57 = vadd.f32 %v4636_v27, %v4182_v48 }
 0x5d3   :  { %v4784_v62 = vadd.f32 %v10893_v23, %v4716_v57  ;;  %v3052_v27 = vpop.f32.mrf.mxu1  ;;  %v7272_v57 = vld [vmem:[%s11536_s3 + $0x40] sm:$0xff] }
 0x5d4   :  { %6117 = vmatpush.msra.mxu3 %v7272_v57 }
 0x5d5   :  { %v4848_v51 = vmax.f32 %v4784_v62, 0.0  ;;  %v3586_v26 = vpop.f32.mrf.mxu2 }
 0x5d6   :  { %v5070_v38 = vld [vmem:[#allocation2 + $0x1b0] ss:$2 sm:$0x7f]  ;;  %v5072_v56 = vld [vmem:[#allocation2 + $0x1b1] ss:$2 sm:$0x7f] }
 0x5d7   :  { %v5074_v8 = vmax.f32 %v5070_v38, %v5072_v56  ;;  %4913 = vst.msk [vmem:[#allocation2 + $0x1c0] sm:$0xff] %vm4856_vm2, %v4848_v51  ;;  %v4120_v38 = vpop.f32.mrf.mxu3 }
 0x5d8   :  { %v4639_v35 = vpop.f32.mrf.mxu0 }
 0x5d9   :  { %v4717_v18 = vadd.f32 %v4639_v35, %v4183_v1  ;;  %v5075_v36 = vmax.f32 %v5073_v28, %v5074_v8 }
 0x5db   :  { %v4785_v49 = vadd.f32 %v10893_v23, %v4717_v18  ;;  %5076 = vst.msk [vmem:[#allocation3 + $0x54] sm:$0x7f] %vm4931_vm3, %v5075_v36  ;;  %v3055_v56 = vpop.f32.mrf.mxu1 }
 0x5dd   :  { %v4849_v55 = vmax.f32 %v4785_v49, 0.0  ;;  %v3589_v32 = vpop.f32.mrf.mxu2  ;;  %v5556_v49 = vld [vmem:[#allocation3 + $0x8] sm:$0xff] }
 0x5de   :  { %v5445_v32 = vld [vmem:[#allocation3 + $0x67] sm:$0x3] }
 0x5df   :  { %4914 = vst.msk [vmem:[#allocation2 + $0x1c8] sm:$0xff] %vm4856_vm2, %v4849_v55  ;;  %v4123_v34 = vpop.f32.mrf.mxu3  ;;  %v7320_v55 = vld [vmem:[#allocation3 + $0x10] sm:$0xff] }
 0x5e0   :  { %v4642_v46 = vpop.f32.mrf.mxu0 }
 0x5e1   :  { %v4718_v7 = vadd.f32 %v4642_v46, %v4184_v53  ;;  %v7322_v53 = vld [vmem:[#allocation3 + $0x18] sm:$0xff] }
 0x5e2   :  { %v11014_v21 = vld [vmem:[#allocation3 + $0x51] sm:$0xff] }
 0x5e3   :  { %v11016_v41 = vld [vmem:[#allocation3 + $0x50] sm:$0xff]  ;;  %v4786_v63 = vadd.f32 %v10893_v23, %v4718_v7  ;;  %7172 = vmatmul.msk.f32.gmra.mxu1 %vm4856_vm2, %v11014_v21  ;;  %v11064_v46 = vpop.f32.mrf.mxu1  ;;  %v11070_v7 = vld [vmem:[#allocation3 + $0x20] sm:$0xff] }
 0x5e4   :  { %v5320_v29 = vld [vmem:[#allocation3 + $0x52] sm:$0xff]  ;;  %7185 = vmatmul.msk.f32.gmra.mxu2 %vm4856_vm2, %v11016_v41 }
 0x5e5   :  { %7199 = vmatmul.msk.f32.gmra.mxu3 %vm4856_vm2, %v5320_v29  ;;  %v4850_v40 = vmax.f32 %v4786_v63, 0.0  ;;  %v11075_v29 = vpop.f32.mrf.mxu2  ;;  %v11151_v11 = vld [vmem:[#allocation3 + $0x4f] sm:$0xff] }
 0x5e6   :  { %v5078_v4 = vld [vmem:[#allocation2 + $0x1c0] ss:$2 sm:$0x7f]  ;;  %v5080_v48 = vld [vmem:[#allocation2 + $0x1c1] ss:$2 sm:$0x7f] }
 0x5e7   :  { %4915 = vst.msk [vmem:[#allocation2 + $0x1d0] sm:$0xff] %vm4856_vm2, %v4850_v40  ;;  %v5085_v10 = vmax.f32 %v5078_v4, %v5080_v48  ;;  %v11077_v47 = vpop.f32.mrf.mxu3  ;;  %v11081_v40 = vld [vmem:[#allocation3 + $0x27] sm:$0xff] }
 0x5e8   :  { %v4645_v30 = vpop.f32.mrf.mxu0  ;;  %v11137_v4 = vld [vmem:[#allocation3 + $0x47] sm:$0xff] }
 0x5e9   :  { %v4719_v61 = vadd.f32 %v4645_v30, %v4185_v15 }
 0x5eb   :  { %v4787_v37 = vadd.f32 %v10893_v23, %v4719_v61  ;;  %v7244_v23 = vld [vmem:[%s11536_s3 + $0x30] sm:$0xff]  ;;  %v11079_v63 = vpop.f32.mrf.mxu1 }
 0x5ec   :  { %5871 = vmatpush.msra.mxu1 %v7244_v23  ;;  %v11095_v61 = vld [vmem:[#allocation3 + $0x2f] sm:$0xff] }
 0x5ed   :  { %v4851_v12 = vmax.f32 %v4787_v37, 0.0  ;;  %v11089_v14 = vpop.f32.mrf.mxu2  ;;  %v11109_v37 = vld [vmem:[#allocation3 + $0x37] sm:$0xff] }
 0x5ef   :  { %4916 = vst.msk [vmem:[#allocation2 + $0x1d8] sm:$0xff] %vm4856_vm2, %v4851_v12  ;;  %v11091_v15 = vpop.f32.mrf.mxu3  ;;  %v11123_v12 = vld [vmem:[#allocation3 + $0x3f] sm:$0xff] }
 0x5f0   :  { %v4648_v0 = vpop.f32.mrf.mxu0 }
 0x5f3   :  { %v11093_v30 = vpop.f32.mrf.mxu1 }
 0x5f6   :  { %v5082_v60 = vld [vmem:[#allocation2 + $0x1d0] ss:$2 sm:$0x7f]  ;;  %v5084_v62 = vld [vmem:[#allocation2 + $0x1d1] ss:$2 sm:$0x7f] }
 0x5f7   :  { %v5086_v54 = vmax.f32 %v5082_v60, %v5084_v62 }
 0x5f8   :  { %v4651_v51 = vpop.f32.mrf.mxu0 }
 0x5f9   :  { %v5087_v24 = vmax.f32 %v5085_v10, %v5086_v54 }
 0x5fb   :  { %5088 = vst.msk [vmem:[#allocation3 + $0x5b] sm:$0x7f] %vm4931_vm3, %v5087_v24  ;;  %v11107_v19 = vpop.f32.mrf.mxu1 }
 0x600   :  { %v4654_v33 = vpop.f32.mrf.mxu0 }
 0x601   :  { %v5568_v33 = vld [vmem:[#allocation3 + $0x68] sm:$0x3] }
 0x602   :  { %v11037_v1 = vld [vmem:[#allocation3 + $0x59] sm:$0xff]  ;;  %v5117_v18 = vld [vmem:[#allocation3 + $0x61] sm:$0x3] }
 0x603   :  { %v11039_v28 = vld [vmem:[#allocation3 + $0x58] sm:$0xff]  ;;  %7173 = vmatmul.msk.f32.gmra.mxu1 %vm4856_vm2, %v11037_v1  ;;  %v5103_v36 = vld [vmem:[#allocation3 + $0x60] sm:$0x3]  ;;  %v11121_v58 = vpop.f32.mrf.mxu1 }
 0x604   :  { %v5321_v8 = vld [vmem:[#allocation3 + $0x5a] sm:$0xff]  ;;  %7186 = vmatmul.msk.f32.gmra.mxu2 %vm4856_vm2, %v11039_v28 }
 0x605   :  { %7200 = vmatmul.msk.f32.gmra.mxu3 %vm4856_vm2, %v5321_v8  ;;  %v11165_v26 = vld [vmem:[#allocation3 + $0x57] sm:$0xff]  ;;  %v11179_v10 = vld [vmem:[#allocation3 + $0x5f] sm:$0xff] }
 0x606   :  { %v11181_v54 = vld [vmem:[#allocation3 + $0x60] sm:$0xff] }
 0x607   :  { %v5690_v51 = vld [vmem:[#allocation3 + $0x61] sm:$0xff] }
 0x608   :  { %v4657_v35 = vpop.f32.mrf.mxu0 }
 0x60b   :  { %7174 = vmatmul.msk.f32.gmra.mxu1 %vm4856_vm2, %v5117_v18  ;;  %v11135_v0 = vpop.f32.mrf.mxu1  ;;  %v6048_v18 = vld [vmem:[#allocation3 + $0x10] sm:$0xff] }
 0x60c   :  { %7187 = vmatmul.msk.f32.gmra.mxu2 %vm4856_vm2, %v5103_v36  ;;  %v6188_v36 = vld [vmem:[%s11538_s5] sm:$0xff] }
 0x60d   :  { %7201 = vmatmul.msk.f32.gmra.mxu3 %vm4856_vm2, %v5322_v52  ;;  %v5802_v52 = vld [vmem:[#allocation3 + $0xe] sm:$0xff] }
 0x613   :  { %7203 = vmatmul.msk.f32.vlgmr.msrb.gmra.mxu1 %vm4856_vm2, %v5433_v44  ;;  %v11149_v27 = vpop.f32.mrf.mxu1 }
 0x614   :  { %7217 = vmatmul.msk.f32.vlgmr.msra.gmra.mxu2 %vm4856_vm2, %v5556_v49  ;;  %6247 = vmatpush.msrb.mxu1 %v6188_v36 }
 0x615   :  { %7231 = vmatmul.msk.f32.vlgmr.msrb.gmra.mxu3 %vm4856_vm2, %v5679_v43 }
 0x61b   :  { %7204 = vmatmul.msk.f32.gmra.mxu1 %vm4856_vm2, %v11052_v42  ;;  %v11163_v23 = vpop.f32.mrf.mxu1 }
 0x61c   :  { %7218 = vmatmul.msk.f32.gmra.mxu2 %vm4856_vm2, %v7320_v55  ;;  %v5803_v55 = vld [vmem:[#allocation3 + $0x16] sm:$0xff] }
 0x61d   :  { %7232 = vmatmul.msk.f32.gmra.mxu3 %vm4856_vm2, %v7321_v3 }
 0x623   :  { %7205 = vmatmul.msk.f32.gmra.mxu1 %vm4856_vm2, %v11058_v13  ;;  %v11177_v62 = vpop.f32.mrf.mxu1 }
 0x624   :  { %7219 = vmatmul.msk.f32.gmra.mxu2 %vm4856_vm2, %v7322_v53 }
 0x625   :  { %7233 = vmatmul.msk.f32.gmra.mxu3 %vm4856_vm2, %v7323_v5 }
 0x62b   :  { %7206 = vmatmul.msk.f32.gmra.mxu1 %vm4856_vm2, %v11066_v31 }
 0x62c   :  { %7220 = vmatmul.msk.f32.gmra.mxu2 %vm4856_vm2, %v11070_v7 }
 0x62d   :  { %7234 = vmatmul.msk.f32.gmra.mxu3 %vm4856_vm2, %v7325_v20 }
 0x633   :  { %7207 = vmatmul.msk.f32.gmra.mxu1 %vm4856_vm2, %v11081_v40 }
 0x634   :  { %7221 = vmatmul.msk.f32.gmra.mxu2 %vm4856_vm2, %v10714_v2  ;;  %v11103_v2 = vpop.f32.mrf.mxu2 }
 0x635   :  { %7235 = vmatmul.msk.f32.gmra.mxu3 %vm4856_vm2, %v10712_v6  ;;  %v11105_v6 = vpop.f32.mrf.mxu3 }
 0x63b   :  { %7208 = vmatmul.msk.f32.gmra.mxu1 %vm4856_vm2, %v11095_v61 }
 0x63c   :  { %7222 = vmatmul.msk.f32.gmra.mxu2 %vm4856_vm2, %v10776_v22  ;;  %v11117_v22 = vpop.f32.mrf.mxu2 }
 0x63d   :  { %7236 = vmatmul.msk.f32.gmra.mxu3 %vm4856_vm2, %v10837_v45  ;;  %v11119_v45 = vpop.f32.mrf.mxu3 }
 0x640   :  { %v11192_v56 = vpop.f32.mrf.mxu1 }
 0x643   :  { %7209 = vmatmul.msk.f32.gmra.mxu1 %vm4856_vm2, %v11109_v37 }
 0x644   :  { %7223 = vmatmul.msk.f32.gmra.mxu2 %vm4856_vm2, %v10912_v50  ;;  %v11131_v17 = vpop.f32.mrf.mxu2 }
 0x645   :  { %7237 = vmatmul.msk.f32.gmra.mxu3 %vm4856_vm2, %v10910_v9  ;;  %v11133_v9 = vpop.f32.mrf.mxu3 }
 0x64b   :  { %7210 = vmatmul.msk.f32.gmra.mxu1 %vm4856_vm2, %v11123_v12 }
 0x64c   :  { %7224 = vmatmul.msk.f32.gmra.mxu2 %vm4856_vm2, %v10962_v16  ;;  %v11145_v48 = vpop.f32.mrf.mxu2 }
 0x64d   :  { %7238 = vmatmul.msk.f32.gmra.mxu3 %vm4856_vm2, %v10960_v39  ;;  %v11147_v39 = vpop.f32.mrf.mxu3 }
 0x653   :  { %7211 = vmatmul.msk.f32.gmra.mxu1 %vm4856_vm2, %v11137_v4 }
 0x654   :  { %7225 = vmatmul.msk.f32.gmra.mxu2 %vm4856_vm2, %v10988_v59  ;;  %v11159_v57 = vpop.f32.mrf.mxu2 }
 0x655   :  { %7239 = vmatmul.msk.f32.gmra.mxu3 %vm4856_vm2, %v10986_v25  ;;  %v11161_v25 = vpop.f32.mrf.mxu3 }
 0x65b   :  { %7212 = vmatmul.msk.f32.gmra.mxu1 %vm4856_vm2, %v11151_v11 }
 0x65c   :  { %7226 = vmatmul.msk.f32.gmra.mxu2 %vm4856_vm2, %v11016_v41  ;;  %v11173_v60 = vpop.f32.mrf.mxu2 }
 0x65d   :  { %7240 = vmatmul.msk.f32.gmra.mxu3 %vm4856_vm2, %v11014_v21  ;;  %v11175_v21 = vpop.f32.mrf.mxu3 }
 0x660   :  { %v11201_v35 = vpop.f32.mrf.mxu1 }
 0x663   :  { %7213 = vmatmul.msk.f32.gmra.mxu1 %vm4856_vm2, %v11165_v26 }
 0x664   :  { %7227 = vmatmul.msk.f32.gmra.mxu2 %vm4856_vm2, %v11039_v28  ;;  %v11188_v24 = vpop.f32.mrf.mxu2 }
 0x665   :  { %7241 = vmatmul.msk.f32.gmra.mxu3 %vm4856_vm2, %v11037_v1  ;;  %v11190_v38 = vpop.f32.mrf.mxu3  ;;  %v5691_v1 = vld [vmem:[#allocation3 + $0x69] sm:$0x3] }
 0x66b   :  { %7214 = vmatmul.msk.f32.gmra.mxu1 %vm4856_vm2, %v11179_v10 }
 0x66c   :  { %7228 = vmatmul.msk.f32.gmra.mxu2 %vm4856_vm2, %v11181_v54  ;;  %v11197_v8 = vpop.f32.mrf.mxu2 }
 0x66d   :  { %7242 = vmatmul.msk.f32.gmra.mxu3 %vm4856_vm2, %v5690_v51  ;;  %v11199_v34 = vpop.f32.mrf.mxu3 }
 0x673   :  { %7215 = vmatmul.msk.f32.gmra.mxu1 %vm4856_vm2, %v5445_v32  ;;  %v5804_v32 = vld [vmem:[#allocation3 + $0x1e] sm:$0xff] }
 0x674   :  { %7229 = vmatmul.msk.f32.gmra.mxu2 %vm4856_vm2, %v5568_v33  ;;  %v11210_v44 = vpop.f32.mrf.mxu2 }
 0x675   :  { %7243 = vmatmul.msk.f32.gmra.mxu3 %vm4856_vm2, %v5691_v1  ;;  %v11212_v49 = vpop.f32.mrf.mxu3 }
 0x67b   :  { %7245 = vmatmul.msk.f32.vlgmr.msra.gmra.mxu1 %vm4856_vm2, %v5802_v52 }
 0x67c   :  { %7259 = vmatmul.msk.f32.vlgmr.msrb.gmra.mxu2 %vm4856_vm2, %v11052_v42  ;;  %v6049_v42 = vld [vmem:[#allocation3 + $0x18] sm:$0xff] }
 0x67d   :  { %7273 = vmatmul.msk.f32.vlgmr.msra.gmra.mxu3 %vm4856_vm2, %v6048_v18 }
 0x680   :  { %v5209_v43 = vpop.f32.mrf.mxu1 }
 0x683   :  { %7246 = vmatmul.msk.f32.gmra.mxu1 %vm4856_vm2, %v5803_v55 }
 0x684   :  { %7260 = vmatmul.msk.f32.gmra.mxu2 %vm4856_vm2, %v11058_v13  ;;  %v5272_v13 = vadd.f32 %v11075_v29, %v11064_v46  ;;  %v5275_v46 = vadd.f32 %v11089_v14, %v11079_v63 }
 0x685   :  { %7274 = vmatmul.msk.f32.gmra.mxu3 %vm4856_vm2, %v6049_v42 }
 0x686   :  { %v5420_v55 = vadd.f32 %v11077_v47, %v5272_v13  ;;  %v5421_v47 = vadd.f32 %v11091_v15, %v5275_v46  ;;  %v5810_v46 = vld [vmem:[#allocation3 + $0x4e] sm:$0xff] }
 0x687   :  { %v5304_v3 = vpop.f32.mrf.mxu2 }
 0x688   :  { %v5305_v53 = vadd.f32 %v5304_v3, %v5209_v43  ;;  %v5414_v5 = vpop.f32.mrf.mxu3  ;;  %v5212_v20 = vpop.f32.mrf.mxu1  ;;  %v5805_v43 = vld [vmem:[#allocation3 + $0x26] sm:$0xff] }
 0x68a   :  { %v11218_v51 = vadd.f32 %v5414_v5, %v5305_v53 }
 0x68b   :  { %7247 = vmatmul.msk.f32.gmra.mxu1 %vm4856_vm2, %v5804_v32 }
 0x68c   :  { %7261 = vmatmul.msk.f32.gmra.mxu2 %vm4856_vm2, %v11066_v31  ;;  %v7326_v31 = vld [vmem:[#allocation3 + $0x28] sm:$0xff] }
 0x68d   :  { %7275 = vmatmul.msk.f32.gmra.mxu3 %vm4856_vm2, %v11070_v7 }
 0x68f   :  { %v5307_v33 = vpop.f32.mrf.mxu2 }
 0x690   :  { %v5308_v1 = vadd.f32 %v5307_v33, %v5212_v20  ;;  %v5417_v52 = vpop.f32.mrf.mxu3  ;;  %v5504_v18 = vpop.f32.mrf.mxu1  ;;  %v5806_v20 = vld [vmem:[#allocation3 + $0x2e] sm:$0xff] }
 0x691   :  { %v5543_v7 = vadd.f32 %v5504_v18, %v5420_v55 }
 0x692   :  { %v11227_v36 = vadd.f32 %v5417_v52, %v5308_v1  ;;  %v5807_v52 = vld [vmem:[#allocation3 + $0x36] sm:$0xff] }
 0x693   :  { %7248 = vmatmul.msk.f32.gmra.mxu1 %vm4856_vm2, %v5805_v43  ;;  %v5808_v43 = vld [vmem:[#allocation3 + $0x3e] sm:$0xff] }
 0x694   :  { %7262 = vmatmul.msk.f32.gmra.mxu2 %vm4856_vm2, %v11081_v40  ;;  %v7327_v40 = vld [vmem:[#allocation3 + $0x30] sm:$0xff] }
 0x695   :  { %7276 = vmatmul.msk.f32.gmra.mxu3 %vm4856_vm2, %v7326_v31  ;;  %v5809_v31 = vld [vmem:[#allocation3 + $0x46] sm:$0xff] }
 0x697   :  { %v5627_v42 = vpop.f32.mrf.mxu2 }
 0x698   :  { %v5666_v29 = vadd.f32 %v5627_v42, %v5543_v7  ;;  %v5750_v3 = vpop.f32.mrf.mxu3  ;;  %v5507_v53 = vpop.f32.mrf.mxu1  ;;  %v5287_v42 = vadd.f32 %v11145_v48, %v11135_v0  ;;  %v5811_v48 = vld [vmem:[#allocation3 + $0x56] sm:$0xff] }
 0x699   :  { %v5544_v32 = vadd.f32 %v5507_v53, %v5421_v47  ;;  %v5290_v47 = vadd.f32 %v11159_v57, %v11149_v27 }
 0x69a   :  { %v11236_v5 = vadd.f32 %v5750_v3, %v5666_v29  ;;  %v5425_v29 = vadd.f32 %v11147_v39, %v5287_v42 }
 0x69b   :  { %7249 = vmatmul.msk.f32.gmra.mxu1 %vm4856_vm2, %v5806_v20  ;;  %v5426_v39 = vadd.f32 %v11161_v25, %v5290_v47 }
 0x69c   :  { %7263 = vmatmul.msk.f32.gmra.mxu2 %vm4856_vm2, %v11095_v61 }
 0x69d   :  { %7277 = vmatmul.msk.f32.gmra.mxu3 %vm4856_vm2, %v7327_v40  ;;  %v5293_v40 = vadd.f32 %v11173_v60, %v11163_v23  ;;  %v5296_v23 = vadd.f32 %v11188_v24, %v11177_v62  ;;  %v5299_v62 = vadd.f32 %v11197_v8, %v11192_v56  ;;  %v5302_v56 = vadd.f32 %v11210_v44, %v11201_v35 }
 0x69f   :  { %v5630_v33 = vpop.f32.mrf.mxu2  ;;  %v5427_v25 = vadd.f32 %v11175_v21, %v5293_v40  ;;  %v6059_v21 = vld [vmem:[#allocation3 + $0x68] sm:$0xff]  ;;  %v5428_v42 = vadd.f32 %v11190_v38, %v5296_v23  ;;  %v5429_v38 = vadd.f32 %v11199_v34, %v5299_v62  ;;  %v11341_v62 = vld [vmem:[%s11537_s4] ss:$0 sm:$0xff] }
 0x6a0   :  { %v5667_v13 = vadd.f32 %v5630_v33, %v5544_v32  ;;  %v5753_v63 = vpop.f32.mrf.mxu3  ;;  %v11243_v14 = vpop.f32.mrf.mxu1 }
 0x6a2   :  { %v11245_v1 = vadd.f32 %v5753_v63, %v5667_v13  ;;  %v5812_v13 = vld [vmem:[#allocation3 + $0x5e] sm:$0xff] }
 0x6a3   :  { %7250 = vmatmul.msk.f32.gmra.mxu1 %vm4856_vm2, %v5807_v52 }
 0x6a4   :  { %7264 = vmatmul.msk.f32.gmra.mxu2 %vm4856_vm2, %v11109_v37 }
 0x6a5   :  { %7278 = vmatmul.msk.f32.gmra.mxu3 %vm4856_vm2, %v10912_v50 }
 0x6a7   :  { %v11252_v15 = vpop.f32.mrf.mxu2 }
 0x6a8   :  { %v11254_v61 = vpop.f32.mrf.mxu3  ;;  %v11256_v18 = vpop.f32.mrf.mxu1 }
 0x6ab   :  { %7251 = vmatmul.msk.f32.gmra.mxu1 %vm4856_vm2, %v5808_v43  ;;  %v5813_v43 = vld [vmem:[#allocation3 + $0x66] sm:$0xff] }
 0x6ac   :  { %7265 = vmatmul.msk.f32.gmra.mxu2 %vm4856_vm2, %v11123_v12 }
 0x6ad   :  { %7279 = vmatmul.msk.f32.gmra.mxu3 %vm4856_vm2, %v10962_v16 }
 0x6af   :  { %v11263_v55 = vpop.f32.mrf.mxu2 }
 0x6b0   :  { %v11265_v37 = vpop.f32.mrf.mxu3  ;;  %v11267_v50 = vpop.f32.mrf.mxu1 }
 0x6b3   :  { %7252 = vmatmul.msk.f32.gmra.mxu1 %vm4856_vm2, %v5809_v31  ;;  %v5936_v31 = vld [vmem:[#allocation3 + $0x67] sm:$0xff] }
 0x6b4   :  { %7266 = vmatmul.msk.f32.gmra.mxu2 %vm4856_vm2, %v11137_v4 }
 0x6b5   :  { %7280 = vmatmul.msk.f32.gmra.mxu3 %vm4856_vm2, %v10988_v59 }
 0x6b7   :  { %v11274_v7 = vpop.f32.mrf.mxu2 }
 0x6b8   :  { %v11276_v12 = vpop.f32.mrf.mxu3  ;;  %v5519_v16 = vpop.f32.mrf.mxu1 }
 0x6b9   :  { %v5548_v59 = vadd.f32 %v5519_v16, %v5425_v29 }
 0x6bb   :  { %7253 = vmatmul.msk.f32.gmra.mxu1 %vm4856_vm2, %v5810_v46 }
 0x6bc   :  { %7267 = vmatmul.msk.f32.gmra.mxu2 %vm4856_vm2, %v11151_v11 }
 0x6bd   :  { %7281 = vmatmul.msk.f32.gmra.mxu3 %vm4856_vm2, %v11016_v41 }
 0x6bf   :  { %v5642_v4 = vpop.f32.mrf.mxu2 }
 0x6c0   :  { %v5671_v3 = vadd.f32 %v5642_v4, %v5548_v59  ;;  %v5765_v53 = vpop.f32.mrf.mxu3  ;;  %v5522_v20 = vpop.f32.mrf.mxu1  ;;  %v5814_v59 = vld [vmem:[#allocation3 + $0x6e] sm:$0x3] }
 0x6c1   :  { %v5549_v41 = vadd.f32 %v5522_v20, %v5426_v39  ;;  %v5937_v4 = vld [vmem:[#allocation3 + $0x6f] sm:$0x3] }
 0x6c2   :  { %v11288_v0 = vadd.f32 %v5765_v53, %v5671_v3  ;;  %v6060_v53 = vld [vmem:[#allocation3 + $0x70] sm:$0x3] }
 0x6c3   :  { %7254 = vmatmul.msk.f32.gmra.mxu1 %vm4856_vm2, %v5811_v48 }
 0x6c4   :  { %7268 = vmatmul.msk.f32.gmra.mxu2 %vm4856_vm2, %v11165_v26 }
 0x6c5   :  { %7282 = vmatmul.msk.f32.gmra.mxu3 %vm4856_vm2, %v11039_v28 }
 0x6c7   :  { %v5645_v11 = vpop.f32.mrf.mxu2 }
 0x6c8   :  { %v5672_v32 = vadd.f32 %v5645_v11, %v5549_v41  ;;  %v5768_v27 = vpop.f32.mrf.mxu3  ;;  %v5525_v57 = vpop.f32.mrf.mxu1  ;;  %v5430_v11 = vadd.f32 %v11212_v49, %v5302_v56 }
 0x6c9   :  { %v5550_v28 = vadd.f32 %v5525_v57, %v5427_v25 }
 0x6ca   :  { %v11298_v33 = vadd.f32 %v5768_v27, %v5672_v32 }
 0x6cb   :  { %7255 = vmatmul.msk.f32.gmra.mxu1 %vm4856_vm2, %v5812_v13 }
 0x6cc   :  { %7269 = vmatmul.msk.f32.gmra.mxu2 %vm4856_vm2, %v11179_v10 }
 0x6cd   :  { %7283 = vmatmul.msk.f32.gmra.mxu3 %vm4856_vm2, %v11181_v54 }
 0x6cf   :  { %v5648_v26 = vpop.f32.mrf.mxu2 }
 0x6d0   :  { %v5673_v60 = vadd.f32 %v5648_v26, %v5550_v28  ;;  %v5771_v63 = vpop.f32.mrf.mxu3  ;;  %v5528_v52 = vpop.f32.mrf.mxu1 }
 0x6d1   :  { %v5551_v10 = vadd.f32 %v5528_v52, %v5428_v42 }
 0x6d2   :  { %v11308_v16 = vadd.f32 %v5771_v63, %v5673_v60 }
 0x6d3   :  { %7256 = vmatmul.msk.f32.gmra.mxu1 %vm4856_vm2, %v5813_v43 }
 0x6d4   :  { %7270 = vmatmul.msk.f32.gmra.mxu2 %vm4856_vm2, %v5936_v31 }
 0x6d5   :  { %7284 = vmatmul.msk.f32.gmra.mxu3 %vm4856_vm2, %v6059_v21 }
 0x6d7   :  { %v5651_v54 = vpop.f32.mrf.mxu2 }
 0x6d8   :  { %v5674_v24 = vadd.f32 %v5651_v54, %v5551_v10  ;;  %v5774_v46 = vpop.f32.mrf.mxu3  ;;  %v5531_v29 = vpop.f32.mrf.mxu1 }
 0x6d9   :  { %v5552_v20 = vadd.f32 %v5531_v29, %v5429_v38 }
 0x6da   :  { %v11316_v3 = vadd.f32 %v5774_v46, %v5674_v24 }
 0x6db   :  { %7257 = vmatmul.msk.f32.gmra.mxu1 %vm4856_vm2, %v5814_v59 }
 0x6dc   :  { %7271 = vmatmul.msk.f32.gmra.mxu2 %vm4856_vm2, %v5937_v4 }
 0x6dd   :  { %7285 = vmatmul.msk.f32.gmra.mxu3 %vm4856_vm2, %v6060_v53 }
 0x6df   :  { %v5654_v47 = vpop.f32.mrf.mxu2 }
 0x6e0   :  { %v5675_v8 = vadd.f32 %v5654_v47, %v5552_v20  ;;  %v5777_v48 = vpop.f32.mrf.mxu3  ;;  %v5534_v39 = vpop.f32.mrf.mxu1 }
 0x6e1   :  { %v5553_v40 = vadd.f32 %v5534_v39, %v5430_v11 }
 0x6e2   :  { %v11324_v41 = vadd.f32 %v5777_v48, %v5675_v8 }
 0x6e7   :  { %v5657_v34 = vpop.f32.mrf.mxu2 }
 0x6e8   :  { %v5676_v32 = vadd.f32 %v5657_v34, %v5553_v40  ;;  %v5780_v27 = vpop.f32.mrf.mxu3  ;;  %v5537_v57 = vpop.f32.mrf.mxu1 }
 0x6e9   :  { %v5554_v25 = vadd.f32 %v5537_v57, %v11218_v51  ;;  %v5278_v51 = vadd.f32 %v11103_v2, %v11093_v30  ;;  %v5281_v2 = vadd.f32 %v11117_v22, %v11107_v19  ;;  %v5284_v22 = vadd.f32 %v11131_v17, %v11121_v58 }
 0x6ea   :  { %v11327_v13 = vadd.f32 %v5780_v27, %v5676_v32 }
 0x6eb   :  { %v5422_v46 = vadd.f32 %v11105_v6, %v5278_v51  ;;  %v5423_v47 = vadd.f32 %v11119_v45, %v5281_v2 }
 0x6ef   :  { %v5660_v28 = vpop.f32.mrf.mxu2 }
 0x6f0   :  { %v5677_v26 = vadd.f32 %v5660_v28, %v5554_v25  ;;  %v5783_v23 = vpop.f32.mrf.mxu3  ;;  %v5540_v35 = vpop.f32.mrf.mxu1 }
 0x6f1   :  { %v5555_v60 = vadd.f32 %v5540_v35, %v11227_v36 }
 0x6f2   :  { %v11330_v44 = vadd.f32 %v5783_v23, %v5677_v26 }
 0x6f7   :  { %v5663_v63 = vpop.f32.mrf.mxu2 }
 0x6f8   :  { %v5678_v52 = vadd.f32 %v5663_v63, %v5555_v60  ;;  %v5786_v49 = vpop.f32.mrf.mxu3  ;;  %v5873_v43 = vpop.f32.mrf.mxu1 }
 0x6f9   :  { %v5912_v21 = vadd.f32 %v5873_v43, %v11236_v5  ;;  %v5545_v5 = vadd.f32 %v11243_v14, %v5422_v46 }
 0x6fa   :  { %v11333_v31 = vadd.f32 %v5786_v49, %v5678_v52 }
 0x6fb   :  { %v5668_v4 = vadd.f32 %v11252_v15, %v5545_v5 }
 0x6fd   :  { %v5791_v56 = vadd.f32 %v11254_v61, %v5668_v4  ;;  %v5424_v61 = vadd.f32 %v11133_v9, %v5284_v22 }
 0x6ff   :  { %v5996_v42 = vpop.f32.mrf.mxu2  ;;  %v5547_v34 = vadd.f32 %v11267_v50, %v5424_v61 }
 0x700   :  { %v6035_v10 = vadd.f32 %v5996_v42, %v5912_v21  ;;  %v6119_v54 = vpop.f32.mrf.mxu3  ;;  %v5876_v36 = vpop.f32.mrf.mxu1 }
 0x701   :  { %v5913_v59 = vadd.f32 %v5876_v36, %v11245_v1  ;;  %v5546_v1 = vadd.f32 %v11256_v18, %v5423_v47  ;;  %v5670_v17 = vadd.f32 %v11274_v7, %v5547_v34 }
 0x702   :  { %v6158_v24 = vadd.f32 %v6119_v54, %v6035_v10 }
 0x703   :  { %v5669_v15 = vadd.f32 %v11263_v55, %v5546_v1  ;;  %v5793_v9 = vadd.f32 %v11276_v12, %v5670_v17 }
 0x704   :  { %v11345_v29 = vadd.f32 %v11341_v62, %v6158_v24 }
 0x705   :  { %v5792_v40 = vadd.f32 %v11265_v37, %v5669_v15 }
 0x706   :  { %7286 = vmatmul.msk.f32.vlgmr.msrb.gmra.mxu1 %vm4856_vm2, %v11345_v29 }
 0x707   :  { %v5999_v30 = vpop.f32.mrf.mxu2 }
 0x708   :  { %v6036_v53 = vadd.f32 %v5999_v30, %v5913_v59  ;;  %v6122_v38 = vpop.f32.mrf.mxu3  ;;  %v5879_v20 = vpop.f32.mrf.mxu1 }
 0x709   :  { %v5914_v8 = vadd.f32 %v5879_v20, %v5791_v56 }
 0x70a   :  { %v6159_v6 = vadd.f32 %v6122_v38, %v6036_v53 }
 0x70c   :  { %v11357_v14 = vadd.f32 %v11341_v62, %v6159_v6 }
 0x70e   :  { %7287 = vmatmul.msk.f32.gmra.mxu1 %vm4856_vm2, %v11357_v14 }
 0x70f   :  { %v6002_v19 = vpop.f32.mrf.mxu2 }
 0x710   :  { %v6037_v48 = vadd.f32 %v6002_v19, %v5914_v8  ;;  %v6125_v39 = vpop.f32.mrf.mxu3  ;;  %v5882_v45 = vpop.f32.mrf.mxu1  ;;  %v6373_v19 = vld [vmem:[%s11540_s7] sm:$0xff] }
 0x711   :  { %v5915_v32 = vadd.f32 %v5882_v45, %v5792_v40  ;;  %6419 = vmatpush.msrb.mxu3 %v6373_v19 }
 0x712   :  { %v6160_v11 = vadd.f32 %v6125_v39, %v6037_v48 }
 0x714   :  { %v11368_v18 = vadd.f32 %v11341_v62, %v6160_v11 }
 0x716   :  { %7288 = vmatmul.msk.f32.gmra.mxu1 %vm4856_vm2, %v11368_v18 }
 0x717   :  { %v6005_v58 = vpop.f32.mrf.mxu2 }
 0x718   :  { %v6038_v55 = vadd.f32 %v6005_v58, %v5915_v32  ;;  %v6128_v27 = vpop.f32.mrf.mxu3  ;;  %v5885_v57 = vpop.f32.mrf.mxu1 }
 0x719   :  { %v5916_v28 = vadd.f32 %v5885_v57, %v5793_v9 }
 0x71a   :  { %v6161_v25 = vadd.f32 %v6128_v27, %v6038_v55 }
 0x71c   :  { %v11376_v37 = vadd.f32 %v11341_v62, %v6161_v25 }
 0x71e   :  { %7289 = vmatmul.msk.f32.gmra.mxu1 %vm4856_vm2, %v11376_v37 }
 0x71f   :  { %v6008_v50 = vpop.f32.mrf.mxu2 }
 0x720   :  { %v6039_v26 = vadd.f32 %v6008_v50, %v5916_v28  ;;  %v6131_v23 = vpop.f32.mrf.mxu3  ;;  %v5888_v35 = vpop.f32.mrf.mxu1 }
 0x721   :  { %v5917_v63 = vadd.f32 %v5888_v35, %v11288_v0 }
 0x722   :  { %v6162_v60 = vadd.f32 %v6131_v23, %v6039_v26 }
 0x724   :  { %v11381_v7 = vadd.f32 %v11341_v62, %v6162_v60 }
 0x726   :  { %7290 = vmatmul.msk.f32.gmra.mxu1 %vm4856_vm2, %v11381_v7 }
 0x727   :  { %v6011_v12 = vpop.f32.mrf.mxu2 }
 0x728   :  { %v6040_v52 = vadd.f32 %v6011_v12, %v5917_v63  ;;  %v6134_v49 = vpop.f32.mrf.mxu3  ;;  %v5891_v43 = vpop.f32.mrf.mxu1  ;;  %v11442_v63 = vld [vmem:[%s11539_s6] ss:$0 sm:$0xff]  ;;  %s6557_s6 = sshll.u32 %s7355_s23, 4  ;;  %s6558_s6 = int_to_ptr.vmem [resolvable:$true] %s6557_s6 }
 0x729   :  { %v5918_v51 = vadd.f32 %v5891_v43, %v11298_v33 }
 0x72a   :  { %v6163_v21 = vadd.f32 %v6134_v49, %v6040_v52 }
 0x72c   :  { %v11387_v42 = vadd.f32 %v11341_v62, %v6163_v21 }
 0x72e   :  { %7291 = vmatmul.msk.f32.gmra.mxu1 %vm4856_vm2, %v11387_v42 }
 0x72f   :  { %v6014_v10 = vpop.f32.mrf.mxu2 }
 0x730   :  { %v6041_v54 = vadd.f32 %v6014_v10, %v5918_v51  ;;  %v6137_v36 = vpop.f32.mrf.mxu3  ;;  %v5894_v0 = vpop.f32.mrf.mxu1 }
 0x731   :  { %v5919_v5 = vadd.f32 %v5894_v0, %v11308_v16 }
 0x732   :  { %v6164_v24 = vadd.f32 %v6137_v36, %v6041_v54 }
 0x734   :  { %v11393_v46 = vadd.f32 %v11341_v62, %v6164_v24 }
 0x736   :  { %7292 = vmatmul.msk.f32.gmra.mxu1 %vm4856_vm2, %v11393_v46 }
 0x737   :  { %v6017_v59 = vpop.f32.mrf.mxu2 }
 0x738   :  { %v6042_v30 = vadd.f32 %v6017_v59, %v5919_v5  ;;  %v6140_v2 = vpop.f32.mrf.mxu3  ;;  %v5897_v33 = vpop.f32.mrf.mxu1 }
 0x739   :  { %v5920_v38 = vadd.f32 %v5897_v33, %v11316_v3  ;;  %v7299_v3 = vld [vmem:[%s11540_s7 + $0x8] sm:$0xff] }
 0x73a   :  { %v6165_v4 = vadd.f32 %v6140_v2, %v6042_v30  ;;  %6396 = vmatpush.msra.mxu2 %v7299_v3 }
 0x73c   :  { %v11399_v53 = vadd.f32 %v11341_v62, %v6165_v4 }
 0x73e   :  { %7293 = vmatmul.msk.f32.gmra.mxu1 %vm4856_vm2, %v11399_v53 }
 0x73f   :  { %v6020_v20 = vpop.f32.mrf.mxu2 }
 0x740   :  { %v6043_v6 = vadd.f32 %v6020_v20, %v5920_v38  ;;  %v6143_v47 = vpop.f32.mrf.mxu3  ;;  %v5900_v16 = vpop.f32.mrf.mxu1 }
 0x741   :  { %v5921_v8 = vadd.f32 %v5900_v16, %v11324_v41 }
 0x742   :  { %v6166_v56 = vadd.f32 %v6143_v47, %v6043_v6 }
 0x744   :  { %v11405_v1 = vadd.f32 %v11341_v62, %v6166_v56 }
 0x746   :  { %7294 = vmatmul.msk.f32.gmra.mxu1 %vm4856_vm2, %v11405_v1 }
 0x747   :  { %v6023_v22 = vpop.f32.mrf.mxu2 }
 0x748   :  { %v6044_v15 = vadd.f32 %v6023_v22, %v5921_v8  ;;  %v6146_v48 = vpop.f32.mrf.mxu3  ;;  %v5903_v39 = vpop.f32.mrf.mxu1 }
 0x749   :  { %v5922_v11 = vadd.f32 %v5903_v39, %v11327_v13 }
 0x74a   :  { %v6167_v45 = vadd.f32 %v6146_v48, %v6044_v15 }
 0x74c   :  { %v11417_v41 = vadd.f32 %v11341_v62, %v6167_v45 }
 0x74e   :  { %7295 = vmatmul.msk.f32.gmra.mxu1 %vm4856_vm2, %v11417_v41 }
 0x74f   :  { %v6026_v61 = vpop.f32.mrf.mxu2 }
 0x750   :  { %v6045_v40 = vadd.f32 %v6026_v61, %v5922_v11  ;;  %v6149_v34 = vpop.f32.mrf.mxu3  ;;  %v5906_v32 = vpop.f32.mrf.mxu1 }
 0x751   :  { %v5923_v55 = vadd.f32 %v5906_v32, %v11330_v44 }
 0x752   :  { %v6168_v58 = vadd.f32 %v6149_v34, %v6045_v40 }
 0x754   :  { %v11423_v17 = vadd.f32 %v11341_v62, %v6168_v58 }
 0x756   :  { %7296 = vmatmul.msk.f32.gmra.mxu1 %vm4856_vm2, %v11423_v17 }
 0x757   :  { %v6029_v27 = vpop.f32.mrf.mxu2 }
 0x758   :  { %v6046_v57 = vadd.f32 %v6029_v27, %v5923_v55  ;;  %v6152_v25 = vpop.f32.mrf.mxu3  ;;  %v5909_v9 = vpop.f32.mrf.mxu1 }
 0x759   :  { %v5924_v50 = vadd.f32 %v5909_v9, %v11333_v31 }
 0x75a   :  { %v6169_v13 = vadd.f32 %v6152_v25, %v6046_v57  ;;  %v7304_v57 = vld [vmem:[%s11540_s7 + $0x18] sm:$0xff] }
 0x75b   :  { %6474 = vmatpush.msra.mxu3 %v7304_v57 }
 0x75c   :  { %v11429_v28 = vadd.f32 %v11341_v62, %v6169_v13 }
 0x75e   :  { %7297 = vmatmul.msk.f32.gmra.mxu1 %vm4856_vm2, %v11429_v28 }
 0x75f   :  { %v6032_v26 = vpop.f32.mrf.mxu2 }
 0x760   :  { %v6047_v23 = vadd.f32 %v6032_v26, %v5924_v50  ;;  %v6155_v35 = vpop.f32.mrf.mxu3 }
 0x762   :  { %v6170_v44 = vadd.f32 %v6155_v35, %v6047_v23 }
 0x764   :  { %v11435_v60 = vadd.f32 %v11341_v62, %v6170_v44 }
 0x766   :  { %7298 = vmatmul.msk.f32.gmra.mxu1 %vm4856_vm2, %v11435_v60 }
 0x783   :  { %v6249_v12 = vpop.f32.mrf.mxu1 }
 0x784   :  { %v6250_v31 = vadd.f32 %v11442_v63, %v6249_v12 }
 0x786   :  { %v6288_v52 = vadd.f32 %v6250_v31, %v11345_v29 }
 0x788   :  { %v6301_v49 = vmax.f32 %v6288_v52, 0.0 }
 0x78a   :  { %6314 = vst.msk [vmem:[#allocation2] sm:$0xff] %vm4856_vm2, %v6301_v49 }
 0x78b   :  { %v6252_v43 = vpop.f32.mrf.mxu1 }
 0x78c   :  { %v6253_v62 = vadd.f32 %v11442_v63, %v6252_v43 }
 0x78e   :  { %v6289_v21 = vadd.f32 %v6253_v62, %v11357_v14 }
 0x790   :  { %v6302_v51 = vmax.f32 %v6289_v21, 0.0 }
 0x791   :  { %v6328_v0 = vld [vmem:[#allocation2] ss:$2 sm:$0x3]  ;;  %v6329_v24 = vld [vmem:[#allocation2 + $0x1] ss:$2 sm:$0x3] }
 0x792   :  { %6315 = vst.msk [vmem:[#allocation2 + $0x8] sm:$0xff] %vm4856_vm2, %v6302_v51  ;;  %v6334_v30 = vmax.f32 %v6328_v0, %v6329_v24 }
 0x793   :  { %v6255_v10 = vpop.f32.mrf.mxu1 }
 0x794   :  { %v6256_v54 = vadd.f32 %v11442_v63, %v6255_v10 }
 0x796   :  { %v6290_v36 = vadd.f32 %v6256_v54, %v11368_v18 }
 0x798   :  { %v6303_v5 = vmax.f32 %v6290_v36, 0.0 }
 0x799   :  { %v6331_v29 = vld [vmem:[#allocation2 + $0x7] ss:$2 sm:$0x3]  ;;  %v6333_v59 = vld [vmem:[#allocation2 + $0x8] ss:$2 sm:$0x3] }
 0x79a   :  { %6316 = vst.msk [vmem:[#allocation2 + $0x10] sm:$0xff] %vm4856_vm2, %v6303_v5  ;;  %v6335_v2 = vmax.f32 %v6331_v29, %v6333_v59 }
 0x79b   :  { %v6258_v33 = vpop.f32.mrf.mxu1 }
 0x79c   :  { %v6259_v14 = vadd.f32 %v11442_v63, %v6258_v33  ;;  %v6336_v4 = vmax.f32 %v6334_v30, %v6335_v2 }
 0x79e   :  { %v6291_v38 = vadd.f32 %v6259_v14, %v11376_v37  ;;  %6337 = vst.msk [vmem:[#allocation4] sm:$0x3] %vm6326_vm4, %v6336_v4 }
 0x7a0   :  { %v6304_v20 = vmax.f32 %v6291_v38, 0.0 }
 0x7a1   :  { %v6339_v16 = vld [vmem:[#allocation2 + $0xe] ss:$2 sm:$0x3]  ;;  %v6341_v56 = vld [vmem:[#allocation2 + $0xf] ss:$2 sm:$0x3] }
 0x7a2   :  { %6317 = vst.msk [vmem:[#allocation2 + $0x18] sm:$0xff] %vm4856_vm2, %v6304_v20  ;;  %v6343_v3 = vld [vmem:[#allocation2 + $0x15] ss:$2 sm:$0x3]  ;;  %v6346_v22 = vmax.f32 %v6339_v16, %v6341_v56  ;;  %v6522_v16 = vld [vmem:[%s11544_s11 + $0x18] sm:$0xff] }
 0x7a3   :  { %v6261_v18 = vpop.f32.mrf.mxu1  ;;  %v6521_v56 = vld [vmem:[%s11544_s11 + $0x10] sm:$0xff] }
 0x7a4   :  { %v6262_v6 = vadd.f32 %v11442_v63, %v6261_v18 }
 0x7a6   :  { %v6292_v47 = vadd.f32 %v6262_v6, %v11381_v7 }
 0x7a8   :  { %v6305_v8 = vmax.f32 %v6292_v47, 0.0  ;;  %v6486_v47 = vld [vmem:[%s11542_s9] sm:$0xff] }
 0x7a9   :  { %v6345_v19 = vld [vmem:[#allocation2 + $0x16] ss:$2 sm:$0x3] }
 0x7aa   :  { %6318 = vst.msk [vmem:[#allocation2 + $0x20] sm:$0xff] %vm4856_vm2, %v6305_v8  ;;  %v6347_v15 = vmax.f32 %v6343_v3, %v6345_v19 }
 0x7ab   :  { %v6264_v37 = vpop.f32.mrf.mxu1 }
 0x7ac   :  { %v6265_v48 = vadd.f32 %v11442_v63, %v6264_v37  ;;  %v6348_v39 = vmax.f32 %v6346_v22, %v6347_v15  ;;  %v7316_v37 = vld [vmem:[%s11541_s8] ss:$0 sm:$0xff] }
 0x7ae   :  { %v6293_v45 = vadd.f32 %v6265_v48, %v11387_v42  ;;  %6349 = vst.msk [vmem:[#allocation4 + $0x2] sm:$0x3] %vm6326_vm4, %v6348_v39  ;;  %v7302_v42 = vld [vmem:[%s11540_s7 + $0x10] sm:$0xff] }
 0x7af   :  { %6446 = vmatpush.msrb.mxu2 %v7302_v42 }
 0x7b0   :  { %v6306_v11 = vmax.f32 %v6293_v45, 0.0 }
 0x7b2   :  { %6319 = vst.msk [vmem:[#allocation2 + $0x28] sm:$0xff] %vm4856_vm2, %v6306_v11 }
 0x7b3   :  { %v6267_v7 = vpop.f32.mrf.mxu1 }
 0x7b4   :  { %v6268_v61 = vadd.f32 %v11442_v63, %v6267_v7  ;;  %v6520_v7 = vld [vmem:[%s11544_s11 + $0x8] sm:$0xff] }
 0x7b6   :  { %v6294_v40 = vadd.f32 %v6268_v61, %v11393_v46  ;;  %v6519_v61 = vld [vmem:[%s11544_s11] sm:$0xff]  ;;  %s6559_s11 = sshll.u32 %s11546_s13, 4  ;;  %s6560_s11 = int_to_ptr.hbm [resolvable:$true] %s6559_s11 }
 0x7b8   :  { %v6307_v34 = vmax.f32 %v6294_v40, 0.0  ;;  %v7317_v40 = vld [vmem:[%s11543_s10] ss:$0 sm:$0xff] }
 0x7ba   :  { %6320 = vst.msk [vmem:[#allocation2 + $0x30] sm:$0xff] %vm4856_vm2, %v6307_v34 }
 0x7bb   :  { %v6270_v32 = vpop.f32.mrf.mxu1 }
 0x7bc   :  { %v6271_v58 = vadd.f32 %v11442_v63, %v6270_v32 }
 0x7be   :  { %v6295_v55 = vadd.f32 %v6271_v58, %v11399_v53 }
 0x7c0   :  { %v6308_v27 = vmax.f32 %v6295_v55, 0.0  ;;  %v7318_v55 = vld [vmem:[%s11545_s12] ss:$0 sm:$0xff] }
 0x7c1   :  { %v6350_v9 = vld [vmem:[#allocation2 + $0x31] ss:$2 sm:$0x3]  ;;  %v6352_v53 = vld [vmem:[#allocation2 + $0x32] ss:$2 sm:$0x3] }
 0x7c2   :  { %6321 = vst.msk [vmem:[#allocation2 + $0x38] sm:$0xff] %vm4856_vm2, %v6308_v27  ;;  %v6357_v35 = vmax.f32 %v6350_v9, %v6352_v53 }
 0x7c3   :  { %v6273_v46 = vpop.f32.mrf.mxu1 }
 0x7c4   :  { %v6274_v25 = vadd.f32 %v11442_v63, %v6273_v46 }
 0x7c6   :  { %v6296_v13 = vadd.f32 %v6274_v25, %v11405_v1 }
 0x7c8   :  { %v6309_v50 = vmax.f32 %v6296_v13, 0.0 }
 0x7c9   :  { %v6354_v26 = vld [vmem:[#allocation2 + $0x38] ss:$2 sm:$0x3]  ;;  %v6356_v23 = vld [vmem:[#allocation2 + $0x39] ss:$2 sm:$0x3] }
 0x7ca   :  { %6322 = vst.msk [vmem:[#allocation2 + $0x40] sm:$0xff] %vm4856_vm2, %v6309_v50  ;;  %v6358_v44 = vmax.f32 %v6354_v26, %v6356_v23 }
 0x7cb   :  { %v6276_v12 = vpop.f32.mrf.mxu1 }
 0x7cc   :  { %v6277_v31 = vadd.f32 %v11442_v63, %v6276_v12  ;;  %v6359_v52 = vmax.f32 %v6357_v35, %v6358_v44 }
 0x7ce   :  { %v6297_v49 = vadd.f32 %v6277_v31, %v11417_v41  ;;  %6360 = vst.msk [vmem:[#allocation4 + $0x4] sm:$0x3] %vm6326_vm4, %v6359_v52 }
 0x7d0   :  { %v6310_v43 = vmax.f32 %v6297_v49, 0.0 }
 0x7d1   :  { %v6362_v54 = vld [vmem:[#allocation2 + $0x3f] ss:$2 sm:$0x3]  ;;  %v6363_v36 = vld [vmem:[#allocation2 + $0x40] ss:$2 sm:$0x3] }
 0x7d2   :  { %6323 = vst.msk [vmem:[#allocation2 + $0x48] sm:$0xff] %vm4856_vm2, %v6310_v43  ;;  %v6368_v5 = vmax.f32 %v6362_v54, %v6363_v36 }
 0x7d3   :  { %v6279_v1 = vpop.f32.mrf.mxu1 }
 0x7d4   :  { %v6280_v62 = vadd.f32 %v11442_v63, %v6279_v1 }
 0x7d5   :  { %v6375_v21 = vld [vmem:[#allocation4 + $0x1] ss:$4 sm:$0x3]  ;;  %v6372_v51 = vld [vmem:[#allocation4] ss:$4 sm:$0x3] }
 0x7d6   :  { %v6298_v10 = vadd.f32 %v6280_v62, %v11423_v17  ;;  %7300 = vmatmul.msk.f32.vlgmr.msra.gmra.mxu2 %vm4856_vm2, %v6375_v21  ;;  %7301 = vmatmul.msk.f32.vlgmr.msrb.gmra.mxu3 %vm4856_vm2, %v6372_v51 }
 0x7d7   :  { %6542 = vmatpush.msrb.mxu3 %v6522_v16 }
 0x7d8   :  { %v6311_v0 = vmax.f32 %v6298_v10, 0.0 }
 0x7d9   :  { %v6365_v41 = vld [vmem:[#allocation2 + $0x46] ss:$2 sm:$0x3]  ;;  %v6367_v24 = vld [vmem:[#allocation2 + $0x47] ss:$2 sm:$0x3]  ;;  %6543 = vmatpush.msrb.mxu3 %v6521_v56 }
 0x7da   :  { %6324 = vst.msk [vmem:[#allocation2 + $0x50] sm:$0xff] %vm4856_vm2, %v6311_v0  ;;  %v6369_v29 = vmax.f32 %v6365_v41, %v6367_v24 }
 0x7db   :  { %v6282_v59 = vpop.f32.mrf.mxu1  ;;  %6544 = vmatpush.msrb.mxu3 %v6520_v7 }
 0x7dc   :  { %v6283_v30 = vadd.f32 %v11442_v63, %v6282_v59  ;;  %v6370_v2 = vmax.f32 %v6368_v5, %v6369_v29 }
 0x7dd   :  { %6545 = vmatpush.msrb.mxu3 %v6519_v61 }
 0x7de   :  { %v6299_v33 = vadd.f32 %v6283_v30, %v11429_v28  ;;  %6371 = vst.msk [vmem:[#allocation4 + $0x6] sm:$0x3] %vm6326_vm4, %v6370_v2  ;;  %v6489_v28 = vld [vmem:[%s11542_s9 + $0x18] sm:$0xff] }
 0x7df   :  { %6510 = vmatpush.msra.mxu2 %v6489_v28 }
 0x7e0   :  { %v6312_v17 = vmax.f32 %v6299_v33, 0.0 }
 0x7e2   :  { %6325 = vst.msk [vmem:[#allocation2 + $0x58] sm:$0xff] %vm4856_vm2, %v6312_v17 }
 0x7e3   :  { %v6285_v14 = vpop.f32.mrf.mxu1 }
 0x7e4   :  { %v6286_v4 = vadd.f32 %v11442_v63, %v6285_v14  ;;  %v6488_v63 = vld [vmem:[%s11542_s9 + $0x10] sm:$0xff] }
 0x7e5   :  { %v6425_v38 = vld [vmem:[#allocation4 + $0x2] ss:$4 sm:$0x3]  ;;  %v6453_v20 = vld [vmem:[#allocation4 + $0x3] ss:$4 sm:$0x3]  ;;  %6511 = vmatpush.msra.mxu2 %v6488_v63 }
 0x7e6   :  { %v6300_v18 = vadd.f32 %v6286_v4, %v11435_v60  ;;  %7303 = vmatmul.msk.f32.vlgmr.msrb.gmra.mxu2 %vm4856_vm2, %v6425_v38  ;;  %7305 = vmatmul.msk.f32.vlgmr.msra.gmra.mxu3 %vm4856_vm2, %v6453_v20  ;;  %v6487_v60 = vld [vmem:[%s11542_s9 + $0x8] sm:$0xff] }
 0x7e7   :  { %6512 = vmatpush.msra.mxu2 %v6487_v60 }
 0x7e8   :  { %v6313_v6 = vmax.f32 %v6300_v18, 0.0 }
 0x7e9   :  { %6513 = vmatpush.msra.mxu2 %v6486_v47 }
 0x7ea   :  { %6327 = vst.msk [vmem:[#allocation2 + $0x60] sm:$0x3] %vm6326_vm4, %v6313_v6 }
 0x859   :  { %v6398_v8 = vpop.f32.mrf.mxu2  ;;  %v6421_v3 = vpop.f32.mrf.mxu3 }
 0x85a   :  { %v6422_v19 = vadd.f32 %v6421_v3, %v6398_v8 }
 0x869   :  { %v6448_v22 = vpop.f32.mrf.mxu2  ;;  %v6476_v48 = vpop.f32.mrf.mxu3 }
 0x86a   :  { %v6451_v15 = vadd.f32 %v6448_v22, %v6422_v19 }
 0x86c   :  { %v6479_v39 = vadd.f32 %v6476_v48, %v6451_v15 }
 0x86e   :  { %v6484_v45 = vadd.f32 %v7316_v37, %v6479_v39 }
 0x870   :  { %v6485_v11 = vmax.f32 %v6484_v45, 0.0 }
 0x872   :  { %7306 = vmatmul.msk.f32.vlgmr.msra.gmra.mxu2 %vm6494_vm5, %v6485_v11 }
 0x8f5   :  { %v6515_v34 = vpop.f32.mrf.mxu2 }
 0x8f6   :  { %v6516_v32 = vadd.f32 %v7317_v40, %v6515_v34 }
 0x8f8   :  { %v6518_v58 = vmax.f32 %v6516_v32, 0.0 }
 0x8fa   :  { %7307 = vmatmul.msk.f32.vlgmr.msrb.gmra.mxu3 %vm6494_vm5, %v6518_v58 }
 0x97d   :  { %v6547_v27 = vpop.f32.mrf.mxu3 }
 0x97e   :  { %v6548_v42 = vadd.f32 %v7318_v55, %v6547_v27 }
 0x980   :  { %6551 = vst.msk [vmem:[#allocation5] sm:$0x3] %vm6550_vm6, %v6548_v42 }
 0x981   :  { %6562 = dma.vmem_to_hbm [thread:$0]  %s6558_s6, 32, %s6560_s11, [#allocation6]  }
 0x982   :  { %7352 = dma.done.wait [#allocation6], 32  }
 0x983   :  { %7353 = vsyncadd [#allocation6], 4294967264 }
 0x984   :  { %6567 = vsyncpa [#allocation6], 1 }

</bundles_post_ra>
